<compile_context>
chip_gen: v6e
topology: v6e:2x2x1
jax: 0.10.0
libtpu: 0.0.40
codegen_flags: <defaults>
</compile_context>

<pallas_src>
import functools

import jax
import jax.numpy as jnp
import numpy as np
from jax.experimental import pallas as pl
from jax.experimental.pallas import tpu as pltpu

NEG_SLOPE = 0.2
BN_EPS = 1e-5
LANE = 128


def _round_up(x, m):
    return (x + m - 1) // m * m


def _default_row_tile():
    # v5e/v6e: 128 MiB VMEM per TensorCore -> bigger row tiles; v7x: 64 MiB -> 512.
    try:
        vmem = getattr(pltpu.get_tpu_info(), "vmem_capacity_bytes", 64 << 20)
    except Exception:  # noqa: BLE001 - conservative fallback if the query fails
        vmem = 64 << 20
    return 1024 if vmem >= (100 << 20) else 512


ROW_TILE = _default_row_tile()


# ----------------------------- Pallas kernel ------------------------------- #

def _conv_tap_kernel(b_ref, w_ref, *rest, offs, tm, neg_slope, with_stats, single_tile):
    """One grid step: rows [i*tm, (i+1)*tm) of one image's conv output.

    b_ref : (Lb, C4p)        bf16  flattened space-to-depth input (+ halo + padding)
    w_ref : (4, C4p, Coutp)  bf16  per-tap weight matrices
    mask_ref (stats only): (tm, 1) f32 — 1.0 for valid output rows, 0.0 for junk
    y_ref : (tm, Coutp)            conv output rows (optionally LeakyReLU'd)
    stats_ref (stats only): (8, Coutp) f32 — row0 = sum, row1 = sum of squares
    """
    if with_stats:
        mask_ref, y_ref, stats_ref = rest
    else:
        (y_ref,) = rest

    coutp = w_ref.shape[-1]
    if single_tile:
        base = 0                                        # fully static slices
    else:
        base = pl.multiple_of(pl.program_id(1) * tm, 8)

    acc = jnp.zeros((tm, coutp), jnp.float32)
    for t, off in enumerate(offs):                      # 4 taps of the 2x2 s2d conv
        lhs = b_ref[pl.ds(base + off, tm), :]           # (tm, C4p) bf16
        acc = acc + jnp.dot(lhs, w_ref[t], preferred_element_type=jnp.float32)

    if with_stats:
        # Moments from the f32 accumulator, junk rows masked out.
        ym = acc * mask_ref[...]
        s1 = jnp.sum(ym, axis=0, keepdims=True)         # (1, Coutp)
        s2 = jnp.sum(ym * ym, axis=0, keepdims=True)
        rid = jax.lax.broadcasted_iota(jnp.int32, (8, coutp), 0)
        stats_ref[...] = jnp.where(rid == 0, jnp.broadcast_to(s1, (8, coutp)),
                                   jnp.where(rid == 1, jnp.broadcast_to(s2, (8, coutp)),
                                             0.0))

    if neg_slope != 1.0:                                # fused LeakyReLU (layer 1)
        acc = jnp.where(acc >= 0.0, acc, neg_slope * acc)
    y_ref[...] = acc.astype(y_ref.dtype)


# ------------------------------- JAX glue ---------------------------------- #

def _build_b(act_nhwc, c4p, lb):
    """zero-pad (p=1) + 2x2 space-to-depth + flatten spatial -> (N, lb, c4p) bf16."""
    n, h, w, c = act_nhwc.shape
    oh1, ow1 = h // 2 + 1, w // 2 + 1
    xp = jnp.pad(act_nhwc, ((0, 0), (1, 1), (1, 1), (0, 0)))        # (n, 2*oh1, 2*ow1, c)
    b = xp.reshape(n, oh1, 2, ow1, 2, c)
    b = b.transpose(0, 1, 3, 2, 4, 5).reshape(n, oh1 * ow1, 4 * c)  # ch = p*2c + q*c + cc
    b = jnp.pad(b, ((0, 0), (0, lb - oh1 * ow1), (0, c4p - 4 * c)))
    return b.astype(jnp.bfloat16)


def _build_w2(w_oihw, c4p, coutp):
    """(Cout, Cin, 4, 4) -> (4 taps, 4*Cin(pad), Cout(pad)) matching the s2d layout."""
    cout, cin = w_oihw.shape[0], w_oihw.shape[1]
    w = jnp.transpose(w_oihw, (2, 3, 1, 0))                         # (kh, kw, cin, cout)
    w = w.reshape(2, 2, 2, 2, cin, cout)                            # (a, p, b, q, cin, cout)
    w = jnp.transpose(w, (0, 2, 1, 3, 4, 5)).reshape(4, 4 * cin, cout)
    w = jnp.pad(w, ((0, 0), (0, c4p - 4 * cin), (0, coutp - cout)))  # zero pad K / Cout
    return w.astype(jnp.bfloat16)


def _build_mask(m_valid, ow1, ow, mp):
    r = np.arange(mp)
    valid = (r < m_valid) & (r % ow1 != ow)                         # drop the junk column
    return jnp.asarray(valid.astype(np.float32)[:, None])           # (mp, 1)


def _vmem_budget(lb, c4p, tm, coutp, out_itemsize):
    """Per-layer VMEM estimate (double-buffered blocks + live f32 accumulator)."""
    b_buf = _round_up(lb, 16) * _round_up(c4p, LANE) * 2
    w_buf = 4 * _round_up(c4p, 16) * coutp * 2
    y_buf = _round_up(tm, 16) * coutp * out_itemsize
    st_buf = 8 * coutp * 4
    mask_buf = _round_up(tm, 16) * LANE * 4
    acc = tm * coutp * 4
    total = 2 * (b_buf + w_buf + y_buf + st_buf + mask_buf) + acc
    return int(min(max(2 * total + (8 << 20), 24 << 20), 44 << 20))


def conv4x4_s2(act_nhwc, w_oihw, *, neg_slope, with_stats, out_dtype):
    """Conv2d(k=4, s=2, p=1, bias=False) on NHWC input via the 4-tap s2d matmul kernel."""
    n, h, w, c = act_nhwc.shape
    assert h % 2 == 0 and w % 2 == 0, "stride-2 conv expects even spatial dims"
    oh, ow = h // 2, w // 2
    ow1 = ow + 1
    cout = w_oihw.shape[0]
    coutp = _round_up(cout, LANE)           # lane-dense stores for every layer
    c4p = _round_up(4 * c, 8)
    m = oh * ow1                            # per-image output rows incl. one junk column
    tm = min(_round_up(m, 8), ROW_TILE)
    m_tiles = -(-m // tm)
    mp = tm * m_tiles
    lb = _round_up(mp + ow1 + 1, 8)         # rows the last tap of the last tile may touch

    b = _build_b(act_nhwc, c4p, lb)
    w2 = _build_w2(w_oihw, c4p, coutp)
    offs = (0, 1, ow1, ow1 + 1)

    kernel = functools.partial(_conv_tap_kernel, offs=offs, tm=tm, neg_slope=neg_slope,
                               with_stats=with_stats, single_tile=(m_tiles == 1))

    in_specs = [pl.BlockSpec((None, lb, c4p), lambda nn, ii: (nn, 0, 0)),
                pl.BlockSpec((4, c4p, coutp), lambda nn, ii: (0, 0, 0))]
    inputs = [b, w2]
    out_shapes = [jax.ShapeDtypeStruct((n, mp, coutp), out_dtype)]
    out_specs = [pl.BlockSpec((None, tm, coutp), lambda nn, ii: (nn, ii, 0))]
    if with_stats:
        inputs.append(_build_mask(m, ow1, ow, mp))
        in_specs.append(pl.BlockSpec((tm, 1), lambda nn, ii: (ii, 0)))
        out_shapes.append(jax.ShapeDtypeStruct((8 * n * m_tiles, coutp), jnp.float32))
        out_specs.append(pl.BlockSpec((8, coutp),
                                      lambda nn, ii, mt=m_tiles: (nn * mt + ii, 0)))

    out = pl.pallas_call(
        kernel,
        out_shape=tuple(out_shapes),
        grid_spec=pltpu.PrefetchScalarGridSpec(
            num_scalar_prefetch=0,
            grid=(n, m_tiles),
            in_specs=in_specs,
            out_specs=tuple(out_specs)),
        compiler_params=pltpu.CompilerParams(
            dimension_semantics=("parallel", "parallel"),
            vmem_limit_bytes=_vmem_budget(lb, c4p, tm, coutp,
                                          jnp.dtype(out_dtype).itemsize)),
    )(*inputs)

    y = out[0]
    stats = out[1] if with_stats else None
    meta = dict(n=n, oh=oh, ow=ow, ow1=ow1, m=m, cout=cout, coutp=coutp)
    return y, stats, meta


def _extract_valid(y, meta, scale=None, shift=None, act=False):
    """(N, Mp, Coutp) -> (N, OH, OW, Cout).  BN affine + LeakyReLU are folded into this
    (XLA-fused) re-layout pass so no extra full HBM round-trip is required."""
    n, oh, ow, ow1 = meta["n"], meta["oh"], meta["ow"], meta["ow1"]
    y = y[:, :meta["m"], :].reshape(n, oh, ow1, -1)[:, :, :ow, :meta["cout"]]
    y = y.astype(jnp.float32)
    if scale is not None:
        y = y * scale + shift
    if act:
        y = jnp.where(y >= 0.0, y, NEG_SLOPE * y)
    return y


def _conv_bn_lrelu(a_nhwc, w, gamma, beta):
    # Conv with fused per-tile (sum, sumsq) moments; tiny cross-tile reduce in XLA.
    y, stats, m = conv4x4_s2(a_nhwc, w, neg_slope=1.0, with_stats=True,
                             out_dtype=jnp.bfloat16)
    st = stats.reshape(-1, 8, m["coutp"])
    s1 = jnp.sum(st[:, 0, :], axis=0)[: m["cout"]]
    s2 = jnp.sum(st[:, 1, :], axis=0)[: m["cout"]]
    count = float(m["n"] * m["oh"] * m["ow"])
    mean = s1 / count
    var = jnp.maximum(s2 / count - mean * mean, 0.0)   # biased var (training-mode BN)
    scale = gamma / jnp.sqrt(var + BN_EPS)
    shift = beta - mean * scale
    return _extract_valid(y, m, scale=scale, shift=shift, act=True)


def patch_image_discriminator_forward(x_nchw, params):
    # TODO(synk): use_noise=True Gaussian-noise branch not implemented (module default False).
    x = jnp.transpose(x_nchw, (0, 2, 3, 1)).astype(jnp.float32)     # NCHW -> NHWC

    # Noise (identity) -> Conv -> LeakyReLU(0.2)  (activation fused in the kernel)
    y, _, m = conv4x4_s2(x, params["w1"], neg_slope=NEG_SLOPE, with_stats=False,
                         out_dtype=jnp.bfloat16)
    a = _extract_valid(y, m)

    # Noise -> Conv -> BatchNorm -> LeakyReLU  (x2)
    a = _conv_bn_lrelu(a, params["w2"], params["g2"], params["b2"])
    a = _conv_bn_lrelu(a, params["w3"], params["g3"], params["b3"])

    # Noise -> Conv (Cout=1 lane-padded to 128 inside the kernel, no activation)
    y, _, m = conv4x4_s2(a, params["w4"], neg_slope=1.0, with_stats=False,
                         out_dtype=jnp.float32)
    h = _extract_valid(y, m)                                        # (N, OH, OW, 1)
    h = jnp.transpose(h, (0, 3, 1, 2))                              # (N, 1, OH, OW)
    return jnp.squeeze(h), None                                     # matches `return (h, None)`


# --------------------------- params / reference ----------------------------- #

def init_params(key, n_channels, ndf):
    ks = jax.random.split(key, 4)

    def conv_w(k, cout, cin):
        bound = 1.0 / np.sqrt(cin * 16)
        return jax.random.uniform(k, (cout, cin, 4, 4), jnp.float32, -bound, bound)

    return {
        "w1": conv_w(ks[0], ndf, n_channels),
        "w2": conv_w(ks[1], ndf * 2, ndf),
        "g2": jnp.ones((ndf * 2,), jnp.float32),
        "b2": jnp.zeros((ndf * 2,), jnp.float32),
        "w3": conv_w(ks[2], ndf * 4, ndf * 2),
        "g3": jnp.ones((ndf * 4,), jnp.float32),
        "b3": jnp.zeros((ndf * 4,), jnp.float32),
        "w4": conv_w(ks[3], 1, ndf * 4),
    }


def ref_forward(x_nchw, params):
    def conv(x, w):
        return jax.lax.conv_general_dilated(
            x, w, window_strides=(2, 2), padding=((1, 1), (1, 1)),
            dimension_numbers=("NCHW", "OIHW", "NCHW"))

    def lrelu(v):
        return jnp.where(v >= 0, v, NEG_SLOPE * v)

    def bn(v, g, b):
        mean = jnp.mean(v, axis=(0, 2, 3), keepdims=True)
        var = jnp.mean(jnp.square(v - mean), axis=(0, 2, 3), keepdims=True)
        return (v - mean) / jnp.sqrt(var + BN_EPS) * g[None, :, None, None] + b[None, :, None, None]

    h = lrelu(conv(x_nchw, params["w1"]))
    h = lrelu(bn(conv(h, params["w2"]), params["g2"], params["b2"]))
    h = lrelu(bn(conv(h, params["w3"]), params["g3"], params["b3"]))
    h = conv(h, params["w4"])
    return jnp.squeeze(h)


if __name__ == "__main__":
    key = jax.random.PRNGKey(0)
    kx, kp = jax.random.split(key)

    n_channels, ndf = 3, 8            # small synthetic config (PyTorch default ndf=64)
    x = jax.random.normal(kx, (2, n_channels, 32, 32), jnp.float32)
    params = init_params(kp, n_channels, ndf)

    fwd = jax.jit(patch_image_discriminator_forward)
    h, aux = fwd(x, params)
    h = jax.block_until_ready(h)

    ref = ref_forward(x, params)
    # bf16 MXU inputs AND bf16 inter-layer activations vs. the f32 lax.conv reference
    # -> looser tolerance (structural bugs would show O(1) errors, not a few percent).
    np.testing.assert_allclose(np.asarray(h), np.asarray(ref), rtol=5e-2, atol=5e-2)
    assert aux is None
    print("KERNEL_OK")
</pallas_src>

<mosaic_0001>
module attributes {stable_mosaic.version = 11 : i64} {
  func.func @_conv_tap_kernel(%arg0: i32, %arg1: i32, %arg2: memref<1x296x16xbf16, #tpu.memory_space<vmem>>, %arg3: memref<4x16x128xbf16, #tpu.memory_space<vmem>>, %arg4: memref<1x272x128xbf16, #tpu.memory_space<vmem>>) attributes {dimension_semantics = [#tpu.dimension_semantics<parallel>, #tpu.dimension_semantics<parallel>], iteration_bounds = array<i64: 2, 1>, scalar_prefetch = 0 : i64, scratch_operands = 0 : i64, tpu.core_type = #tpu.core_type<tc>, window_params = [{transform_indices = @transform_0, window_bounds = array<i64: 1, 296, 16>}, {pipeline_mode = #tpu.pipeline_mode<synchronous>, transform_indices = @transform_1, window_bounds = array<i64: 4, 16, 128>}, {transform_indices = @transform_2, window_bounds = array<i64: 1, 272, 128>}]} {
    %cst = arith.constant 0.000000e+00 : f32
    %0 = vector.broadcast %cst : f32 to vector<272x128xf32>
    %c0 = arith.constant 0 : index
    %c0_0 = arith.constant 0 : index
    %c0_1 = arith.constant 0 : index
    %1 = vector.load %arg2[%c0, %c0_0, %c0_1] : memref<1x296x16xbf16, #tpu.memory_space<vmem>>, vector<1x272x16xbf16>
    %2 = vector.shape_cast %1 : vector<1x272x16xbf16> to vector<272x16xbf16>
    %c0_2 = arith.constant 0 : index
    %c0_3 = arith.constant 0 : index
    %c0_4 = arith.constant 0 : index
    %3 = vector.load %arg3[%c0_2, %c0_3, %c0_4] : memref<4x16x128xbf16, #tpu.memory_space<vmem>>, vector<1x16x128xbf16>
    %4 = vector.shape_cast %3 : vector<1x16x128xbf16> to vector<16x128xbf16>
    %cst_5 = arith.constant dense<0.000000e+00> : vector<272x128xf32>
    %5 = tpu.matmul %2, %4, %cst_5 {dimension_numbers = #tpu.dot_dimension_numbers<[1], [0], [0], [1], [0, 0, 1, 1], [], []>} : vector<272x16xbf16>, vector<16x128xbf16>, vector<272x128xf32> -> vector<272x128xf32>
    %6 = arith.addf %0, %5 : vector<272x128xf32>
    %c0_6 = arith.constant 0 : index
    %c1 = arith.constant 1 : index
    %c0_7 = arith.constant 0 : index
    %7 = vector.load %arg2[%c0_6, %c1, %c0_7] : memref<1x296x16xbf16, #tpu.memory_space<vmem>>, vector<1x272x16xbf16>
    %8 = vector.shape_cast %7 : vector<1x272x16xbf16> to vector<272x16xbf16>
    %c1_8 = arith.constant 1 : index
    %c0_9 = arith.constant 0 : index
    %c0_10 = arith.constant 0 : index
    %9 = vector.load %arg3[%c1_8, %c0_9, %c0_10] : memref<4x16x128xbf16, #tpu.memory_space<vmem>>, vector<1x16x128xbf16>
    %10 = vector.shape_cast %9 : vector<1x16x128xbf16> to vector<16x128xbf16>
    %cst_11 = arith.constant dense<0.000000e+00> : vector<272x128xf32>
    %11 = tpu.matmul %8, %10, %cst_11 {dimension_numbers = #tpu.dot_dimension_numbers<[1], [0], [0], [1], [0, 0, 1, 1], [], []>} : vector<272x16xbf16>, vector<16x128xbf16>, vector<272x128xf32> -> vector<272x128xf32>
    %12 = arith.addf %6, %11 : vector<272x128xf32>
    %c0_12 = arith.constant 0 : index
    %c17 = arith.constant 17 : index
    %c0_13 = arith.constant 0 : index
    %13 = vector.load %arg2[%c0_12, %c17, %c0_13] : memref<1x296x16xbf16, #tpu.memory_space<vmem>>, vector<1x272x16xbf16>
    %14 = vector.shape_cast %13 : vector<1x272x16xbf16> to vector<272x16xbf16>
    %c2 = arith.constant 2 : index
    %c0_14 = arith.constant 0 : index
    %c0_15 = arith.constant 0 : index
    %15 = vector.load %arg3[%c2, %c0_14, %c0_15] : memref<4x16x128xbf16, #tpu.memory_space<vmem>>, vector<1x16x128xbf16>
    %16 = vector.shape_cast %15 : vector<1x16x128xbf16> to vector<16x128xbf16>
    %cst_16 = arith.constant dense<0.000000e+00> : vector<272x128xf32>
    %17 = tpu.matmul %14, %16, %cst_16 {dimension_numbers = #tpu.dot_dimension_numbers<[1], [0], [0], [1], [0, 0, 1, 1], [], []>} : vector<272x16xbf16>, vector<16x128xbf16>, vector<272x128xf32> -> vector<272x128xf32>
    %18 = arith.addf %12, %17 : vector<272x128xf32>
    %c0_17 = arith.constant 0 : index
    %c18 = arith.constant 18 : index
    %c0_18 = arith.constant 0 : index
    %19 = vector.load %arg2[%c0_17, %c18, %c0_18] : memref<1x296x16xbf16, #tpu.memory_space<vmem>>, vector<1x272x16xbf16>
    %20 = vector.shape_cast %19 : vector<1x272x16xbf16> to vector<272x16xbf16>
    %c3 = arith.constant 3 : index
    %c0_19 = arith.constant 0 : index
    %c0_20 = arith.constant 0 : index
    %21 = vector.load %arg3[%c3, %c0_19, %c0_20] : memref<4x16x128xbf16, #tpu.memory_space<vmem>>, vector<1x16x128xbf16>
    %22 = vector.shape_cast %21 : vector<1x16x128xbf16> to vector<16x128xbf16>
    %cst_21 = arith.constant dense<0.000000e+00> : vector<272x128xf32>
    %23 = tpu.matmul %20, %22, %cst_21 {dimension_numbers = #tpu.dot_dimension_numbers<[1], [0], [0], [1], [0, 0, 1, 1], [], []>} : vector<272x16xbf16>, vector<16x128xbf16>, vector<272x128xf32> -> vector<272x128xf32>
    %24 = arith.addf %18, %23 : vector<272x128xf32>
    %cst_22 = arith.constant 0.000000e+00 : f32
    %25 = vector.broadcast %cst_22 : f32 to vector<272x128xf32>
    %26 = arith.cmpf oge, %24, %25 : vector<272x128xf32>
    %cst_23 = arith.constant 2.000000e-01 : f32
    %27 = vector.broadcast %cst_23 : f32 to vector<272x128xf32>
    %28 = arith.mulf %27, %24 : vector<272x128xf32>
    %29 = arith.select %26, %24, %28 : vector<272x128xi1>, vector<272x128xf32>
    %30 = arith.truncf %29 : vector<272x128xf32> to vector<272x128xbf16>
    %c0_24 = arith.constant 0 : index
    %c0_25 = arith.constant 0 : index
    %c0_26 = arith.constant 0 : index
    %31 = vector.load %arg4[%c0_24, %c0_25, %c0_26] : memref<1x272x128xbf16, #tpu.memory_space<vmem>>, vector<1x272x128xbf16>
    %32 = vector.shape_cast %31 : vector<1x272x128xbf16> to vector<272x128xbf16>
    %33 = vector.shape_cast %30 : vector<272x128xbf16> to vector<1x272x128xbf16>
    tpu.vector_store %arg4[%c0_24, %c0_25, %c0_26], %33 {strides = array<i32>} : memref<1x272x128xbf16, #tpu.memory_space<vmem>>, vector<1x272x128xbf16>,
    return
  }
  func.func @transform_0(%arg0: i32, %arg1: i32) -> (i32, i32, i32) {
    %c0_i32 = arith.constant 0 : i32
    %c0_i32_0 = arith.constant 0 : i32
    %c0_i32_1 = arith.constant 0 : i32
    return %arg0, %c0_i32, %c0_i32_0 : i32, i32, i32
  }
  func.func @transform_1(%arg0: i32, %arg1: i32) -> (i32, i32, i32) {
    %c0_i32 = arith.constant 0 : i32
    %c0_i32_0 = arith.constant 0 : i32
    %c0_i32_1 = arith.constant 0 : i32
    %c0_i32_2 = arith.constant 0 : i32
    return %c0_i32, %c0_i32_0, %c0_i32_1 : i32, i32, i32
  }
  func.func @transform_2(%arg0: i32, %arg1: i32) -> (i32, i32, i32) {
    %c0_i32 = arith.constant 0 : i32
    %c0_i32_0 = arith.constant 0 : i32
    return %arg0, %arg1, %c0_i32 : i32, i32, i32
  }
}

module attributes {stable_mosaic.version = 11 : i64} {
  func.func @_conv_tap_kernel(%arg0: i32, %arg1: i32, %arg2: memref<1x88x32xbf16, #tpu.memory_space<vmem>>, %arg3: memref<4x32x128xbf16, #tpu.memory_space<vmem>>, %arg4: memref<72x1xf32, #tpu.memory_space<vmem>>, %arg5: memref<1x72x128xbf16, #tpu.memory_space<vmem>>, %arg6: memref<8x128xf32, #tpu.memory_space<vmem>>) attributes {dimension_semantics = [#tpu.dimension_semantics<parallel>, #tpu.dimension_semantics<parallel>], iteration_bounds = array<i64: 2, 1>, scalar_prefetch = 0 : i64, scratch_operands = 0 : i64, tpu.core_type = #tpu.core_type<tc>, window_params = [{transform_indices = @transform_0, window_bounds = array<i64: 1, 88, 32>}, {pipeline_mode = #tpu.pipeline_mode<synchronous>, transform_indices = @transform_1, window_bounds = array<i64: 4, 32, 128>}, {transform_indices = @transform_2, window_bounds = array<i64: 72, 1>}, {transform_indices = @transform_3, window_bounds = array<i64: 1, 72, 128>}, {transform_indices = @transform_4, window_bounds = array<i64: 8, 128>}]} {
    %cst = arith.constant 0.000000e+00 : f32
    %0 = vector.broadcast %cst : f32 to vector<72x128xf32>
    %c0 = arith.constant 0 : index
    %c0_0 = arith.constant 0 : index
    %c0_1 = arith.constant 0 : index
    %1 = vector.load %arg2[%c0, %c0_0, %c0_1] : memref<1x88x32xbf16, #tpu.memory_space<vmem>>, vector<1x72x32xbf16>
    %2 = vector.shape_cast %1 : vector<1x72x32xbf16> to vector<72x32xbf16>
    %c0_2 = arith.constant 0 : index
    %c0_3 = arith.constant 0 : index
    %c0_4 = arith.constant 0 : index
    %3 = vector.load %arg3[%c0_2, %c0_3, %c0_4] : memref<4x32x128xbf16, #tpu.memory_space<vmem>>, vector<1x32x128xbf16>
    %4 = vector.shape_cast %3 : vector<1x32x128xbf16> to vector<32x128xbf16>
    %cst_5 = arith.constant dense<0.000000e+00> : vector<72x128xf32>
    %5 = tpu.matmul %2, %4, %cst_5 {dimension_numbers = #tpu.dot_dimension_numbers<[1], [0], [0], [1], [0, 0, 1, 1], [], []>} : vector<72x32xbf16>, vector<32x128xbf16>, vector<72x128xf32> -> vector<72x128xf32>
    %6 = arith.addf %0, %5 : vector<72x128xf32>
    %c0_6 = arith.constant 0 : index
    %c1 = arith.constant 1 : index
    %c0_7 = arith.constant 0 : index
    %7 = vector.load %arg2[%c0_6, %c1, %c0_7] : memref<1x88x32xbf16, #tpu.memory_space<vmem>>, vector<1x72x32xbf16>
    %8 = vector.shape_cast %7 : vector<1x72x32xbf16> to vector<72x32xbf16>
    %c1_8 = arith.constant 1 : index
    %c0_9 = arith.constant 0 : index
    %c0_10 = arith.constant 0 : index
    %9 = vector.load %arg3[%c1_8, %c0_9, %c0_10] : memref<4x32x128xbf16, #tpu.memory_space<vmem>>, vector<1x32x128xbf16>
    %10 = vector.shape_cast %9 : vector<1x32x128xbf16> to vector<32x128xbf16>
    %cst_11 = arith.constant dense<0.000000e+00> : vector<72x128xf32>
    %11 = tpu.matmul %8, %10, %cst_11 {dimension_numbers = #tpu.dot_dimension_numbers<[1], [0], [0], [1], [0, 0, 1, 1], [], []>} : vector<72x32xbf16>, vector<32x128xbf16>, vector<72x128xf32> -> vector<72x128xf32>
    %12 = arith.addf %6, %11 : vector<72x128xf32>
    %c0_12 = arith.constant 0 : index
    %c9 = arith.constant 9 : index
    %c0_13 = arith.constant 0 : index
    %13 = vector.load %arg2[%c0_12, %c9, %c0_13] : memref<1x88x32xbf16, #tpu.memory_space<vmem>>, vector<1x72x32xbf16>
    %14 = vector.shape_cast %13 : vector<1x72x32xbf16> to vector<72x32xbf16>
    %c2 = arith.constant 2 : index
    %c0_14 = arith.constant 0 : index
    %c0_15 = arith.constant 0 : index
    %15 = vector.load %arg3[%c2, %c0_14, %c0_15] : memref<4x32x128xbf16, #tpu.memory_space<vmem>>, vector<1x32x128xbf16>
    %16 = vector.shape_cast %15 : vector<1x32x128xbf16> to vector<32x128xbf16>
    %cst_16 = arith.constant dense<0.000000e+00> : vector<72x128xf32>
    %17 = tpu.matmul %14, %16, %cst_16 {dimension_numbers = #tpu.dot_dimension_numbers<[1], [0], [0], [1], [0, 0, 1, 1], [], []>} : vector<72x32xbf16>, vector<32x128xbf16>, vector<72x128xf32> -> vector<72x128xf32>
    %18 = arith.addf %12, %17 : vector<72x128xf32>
    %c0_17 = arith.constant 0 : index
    %c10 = arith.constant 10 : index
    %c0_18 = arith.constant 0 : index
    %19 = vector.load %arg2[%c0_17, %c10, %c0_18] : memref<1x88x32xbf16, #tpu.memory_space<vmem>>, vector<1x72x32xbf16>
    %20 = vector.shape_cast %19 : vector<1x72x32xbf16> to vector<72x32xbf16>
    %c3 = arith.constant 3 : index
    %c0_19 = arith.constant 0 : index
    %c0_20 = arith.constant 0 : index
    %21 = vector.load %arg3[%c3, %c0_19, %c0_20] : memref<4x32x128xbf16, #tpu.memory_space<vmem>>, vector<1x32x128xbf16>
    %22 = vector.shape_cast %21 : vector<1x32x128xbf16> to vector<32x128xbf16>
    %cst_21 = arith.constant dense<0.000000e+00> : vector<72x128xf32>
    %23 = tpu.matmul %20, %22, %cst_21 {dimension_numbers = #tpu.dot_dimension_numbers<[1], [0], [0], [1], [0, 0, 1, 1], [], []>} : vector<72x32xbf16>, vector<32x128xbf16>, vector<72x128xf32> -> vector<72x128xf32>
    %24 = arith.addf %18, %23 : vector<72x128xf32>
    %c0_22 = arith.constant 0 : index
    %c0_23 = arith.constant 0 : index
    %25 = vector.load %arg4[%c0_22, %c0_23] : memref<72x1xf32, #tpu.memory_space<vmem>>, vector<72x1xf32>
    %26 = vector.broadcast %25 : vector<72x1xf32> to vector<72x128xf32>
    %27 = arith.mulf %24, %26 : vector<72x128xf32>
    %cst_24 = arith.constant dense<0.000000e+00> : vector<128xf32>
    %28 = vector.multi_reduction <add>, %27, %cst_24 [0] : vector<72x128xf32> to vector<128xf32>
    %29 = vector.shape_cast %28 : vector<128xf32> to vector<1x128xf32>
    %30 = arith.mulf %27, %27 : vector<72x128xf32>
    %cst_25 = arith.constant dense<0.000000e+00> : vector<128xf32>
    %31 = vector.multi_reduction <add>, %30, %cst_25 [0] : vector<72x128xf32> to vector<128xf32>
    %32 = vector.shape_cast %31 : vector<128xf32> to vector<1x128xf32>
    %33 = tpu.iota {dimensions = array<i32: 0>} : vector<8x128xi32>
    %c0_i32 = arith.constant 0 : i32
    %34 = vector.broadcast %c0_i32 : i32 to vector<8x128xi32>
    %35 = arith.cmpi eq, %33, %34 : vector<8x128xi32>
    %36 = vector.shape_cast %29 : vector<1x128xf32> to vector<1x128xf32>
    %37 = vector.broadcast %36 : vector<1x128xf32> to vector<8x128xf32>
    %c1_i32 = arith.constant 1 : i32
    %38 = vector.broadcast %c1_i32 : i32 to vector<8x128xi32>
    %39 = arith.cmpi eq, %33, %38 : vector<8x128xi32>
    %40 = vector.shape_cast %32 : vector<1x128xf32> to vector<1x128xf32>
    %41 = vector.broadcast %40 : vector<1x128xf32> to vector<8x128xf32>
    %cst_26 = arith.constant 0.000000e+00 : f32
    %42 = vector.broadcast %cst_26 : f32 to vector<8x128xf32>
    %43 = arith.select %39, %41, %42 : vector<8x128xi1>, vector<8x128xf32>
    %44 = arith.select %35, %37, %43 : vector<8x128xi1>, vector<8x128xf32>
    %c0_27 = arith.constant 0 : index
    %c0_28 = arith.constant 0 : index
    %45 = vector.load %arg6[%c0_27, %c0_28] : memref<8x128xf32, #tpu.memory_space<vmem>>, vector<8x128xf32>
    tpu.vector_store %arg6[%c0_27, %c0_28], %44 {strides = array<i32>} : memref<8x128xf32, #tpu.memory_space<vmem>>, vector<8x128xf32>,
    %46 = arith.truncf %24 : vector<72x128xf32> to vector<72x128xbf16>
    %c0_29 = arith.constant 0 : index
    %c0_30 = arith.constant 0 : index
    %c0_31 = arith.constant 0 : index
    %47 = vector.load %arg5[%c0_29, %c0_30, %c0_31] : memref<1x72x128xbf16, #tpu.memory_space<vmem>>, vector<1x72x128xbf16>
    %48 = vector.shape_cast %47 : vector<1x72x128xbf16> to vector<72x128xbf16>
    %49 = vector.shape_cast %46 : vector<72x128xbf16> to vector<1x72x128xbf16>
    tpu.vector_store %arg5[%c0_29, %c0_30, %c0_31], %49 {strides = array<i32>} : memref<1x72x128xbf16, #tpu.memory_space<vmem>>, vector<1x72x128xbf16>,
    return
  }
  func.func @transform_0(%arg0: i32, %arg1: i32) -> (i32, i32, i32) {
    %c0_i32 = arith.constant 0 : i32
    %c0_i32_0 = arith.constant 0 : i32
    %c0_i32_1 = arith.constant 0 : i32
    return %arg0, %c0_i32, %c0_i32_0 : i32, i32, i32
  }
  func.func @transform_1(%arg0: i32, %arg1: i32) -> (i32, i32, i32) {
    %c0_i32 = arith.constant 0 : i32
    %c0_i32_0 = arith.constant 0 : i32
    %c0_i32_1 = arith.constant 0 : i32
    %c0_i32_2 = arith.constant 0 : i32
    return %c0_i32, %c0_i32_0, %c0_i32_1 : i32, i32, i32
  }
  func.func @transform_2(%arg0: i32, %arg1: i32) -> (i32, i32) {
    %c0_i32 = arith.constant 0 : i32
    %c0_i32_0 = arith.constant 0 : i32
    return %arg1, %c0_i32 : i32, i32
  }
  func.func @transform_3(%arg0: i32, %arg1: i32) -> (i32, i32, i32) {
    %c0_i32 = arith.constant 0 : i32
    %c0_i32_0 = arith.constant 0 : i32
    return %arg0, %arg1, %c0_i32 : i32, i32, i32
  }
  func.func @transform_4(%arg0: i32, %arg1: i32) -> (i32, i32) {
    %c1_i32 = arith.constant 1 : i32
    %0 = arith.muli %arg0, %c1_i32 : i32
    %1 = arith.addi %0, %arg1 : i32
    %c0_i32 = arith.constant 0 : i32
    %c0_i32_0 = arith.constant 0 : i32
    return %1, %c0_i32 : i32, i32
  }
}

module attributes {stable_mosaic.version = 11 : i64} {
  func.func @_conv_tap_kernel(%arg0: i32, %arg1: i32, %arg2: memref<1x32x64xbf16, #tpu.memory_space<vmem>>, %arg3: memref<4x64x128xbf16, #tpu.memory_space<vmem>>, %arg4: memref<24x1xf32, #tpu.memory_space<vmem>>, %arg5: memref<1x24x128xbf16, #tpu.memory_space<vmem>>, %arg6: memref<8x128xf32, #tpu.memory_space<vmem>>) attributes {dimension_semantics = [#tpu.dimension_semantics<parallel>, #tpu.dimension_semantics<parallel>], iteration_bounds = array<i64: 2, 1>, scalar_prefetch = 0 : i64, scratch_operands = 0 : i64, tpu.core_type = #tpu.core_type<tc>, window_params = [{transform_indices = @transform_0, window_bounds = array<i64: 1, 32, 64>}, {pipeline_mode = #tpu.pipeline_mode<synchronous>, transform_indices = @transform_1, window_bounds = array<i64: 4, 64, 128>}, {transform_indices = @transform_2, window_bounds = array<i64: 24, 1>}, {transform_indices = @transform_3, window_bounds = array<i64: 1, 24, 128>}, {transform_indices = @transform_4, window_bounds = array<i64: 8, 128>}]} {
    %cst = arith.constant 0.000000e+00 : f32
    %0 = vector.broadcast %cst : f32 to vector<24x128xf32>
    %c0 = arith.constant 0 : index
    %c0_0 = arith.constant 0 : index
    %c0_1 = arith.constant 0 : index
    %1 = vector.load %arg2[%c0, %c0_0, %c0_1] : memref<1x32x64xbf16, #tpu.memory_space<vmem>>, vector<1x24x64xbf16>
    %2 = vector.shape_cast %1 : vector<1x24x64xbf16> to vector<24x64xbf16>
    %c0_2 = arith.constant 0 : index
    %c0_3 = arith.constant 0 : index
    %c0_4 = arith.constant 0 : index
    %3 = vector.load %arg3[%c0_2, %c0_3, %c0_4] : memref<4x64x128xbf16, #tpu.memory_space<vmem>>, vector<1x64x128xbf16>
    %4 = vector.shape_cast %3 : vector<1x64x128xbf16> to vector<64x128xbf16>
    %cst_5 = arith.constant dense<0.000000e+00> : vector<24x128xf32>
    %5 = tpu.matmul %2, %4, %cst_5 {dimension_numbers = #tpu.dot_dimension_numbers<[1], [0], [0], [1], [0, 0, 1, 1], [], []>} : vector<24x64xbf16>, vector<64x128xbf16>, vector<24x128xf32> -> vector<24x128xf32>
    %6 = arith.addf %0, %5 : vector<24x128xf32>
    %c0_6 = arith.constant 0 : index
    %c1 = arith.constant 1 : index
    %c0_7 = arith.constant 0 : index
    %7 = vector.load %arg2[%c0_6, %c1, %c0_7] : memref<1x32x64xbf16, #tpu.memory_space<vmem>>, vector<1x24x64xbf16>
    %8 = vector.shape_cast %7 : vector<1x24x64xbf16> to vector<24x64xbf16>
    %c1_8 = arith.constant 1 : index
    %c0_9 = arith.constant 0 : index
    %c0_10 = arith.constant 0 : index
    %9 = vector.load %arg3[%c1_8, %c0_9, %c0_10] : memref<4x64x128xbf16, #tpu.memory_space<vmem>>, vector<1x64x128xbf16>
    %10 = vector.shape_cast %9 : vector<1x64x128xbf16> to vector<64x128xbf16>
    %cst_11 = arith.constant dense<0.000000e+00> : vector<24x128xf32>
    %11 = tpu.matmul %8, %10, %cst_11 {dimension_numbers = #tpu.dot_dimension_numbers<[1], [0], [0], [1], [0, 0, 1, 1], [], []>} : vector<24x64xbf16>, vector<64x128xbf16>, vector<24x128xf32> -> vector<24x128xf32>
    %12 = arith.addf %6, %11 : vector<24x128xf32>
    %c0_12 = arith.constant 0 : index
    %c5 = arith.constant 5 : index
    %c0_13 = arith.constant 0 : index
    %13 = vector.load %arg2[%c0_12, %c5, %c0_13] : memref<1x32x64xbf16, #tpu.memory_space<vmem>>, vector<1x24x64xbf16>
    %14 = vector.shape_cast %13 : vector<1x24x64xbf16> to vector<24x64xbf16>
    %c2 = arith.constant 2 : index
    %c0_14 = arith.constant 0 : index
    %c0_15 = arith.constant 0 : index
    %15 = vector.load %arg3[%c2, %c0_14, %c0_15] : memref<4x64x128xbf16, #tpu.memory_space<vmem>>, vector<1x64x128xbf16>
    %16 = vector.shape_cast %15 : vector<1x64x128xbf16> to vector<64x128xbf16>
    %cst_16 = arith.constant dense<0.000000e+00> : vector<24x128xf32>
    %17 = tpu.matmul %14, %16, %cst_16 {dimension_numbers = #tpu.dot_dimension_numbers<[1], [0], [0], [1], [0, 0, 1, 1], [], []>} : vector<24x64xbf16>, vector<64x128xbf16>, vector<24x128xf32> -> vector<24x128xf32>
    %18 = arith.addf %12, %17 : vector<24x128xf32>
    %c0_17 = arith.constant 0 : index
    %c6 = arith.constant 6 : index
    %c0_18 = arith.constant 0 : index
    %19 = vector.load %arg2[%c0_17, %c6, %c0_18] : memref<1x32x64xbf16, #tpu.memory_space<vmem>>, vector<1x24x64xbf16>
    %20 = vector.shape_cast %19 : vector<1x24x64xbf16> to vector<24x64xbf16>
    %c3 = arith.constant 3 : index
    %c0_19 = arith.constant 0 : index
    %c0_20 = arith.constant 0 : index
    %21 = vector.load %arg3[%c3, %c0_19, %c0_20] : memref<4x64x128xbf16, #tpu.memory_space<vmem>>, vector<1x64x128xbf16>
    %22 = vector.shape_cast %21 : vector<1x64x128xbf16> to vector<64x128xbf16>
    %cst_21 = arith.constant dense<0.000000e+00> : vector<24x128xf32>
    %23 = tpu.matmul %20, %22, %cst_21 {dimension_numbers = #tpu.dot_dimension_numbers<[1], [0], [0], [1], [0, 0, 1, 1], [], []>} : vector<24x64xbf16>, vector<64x128xbf16>, vector<24x128xf32> -> vector<24x128xf32>
    %24 = arith.addf %18, %23 : vector<24x128xf32>
    %c0_22 = arith.constant 0 : index
    %c0_23 = arith.constant 0 : index
    %25 = vector.load %arg4[%c0_22, %c0_23] : memref<24x1xf32, #tpu.memory_space<vmem>>, vector<24x1xf32>
    %26 = vector.broadcast %25 : vector<24x1xf32> to vector<24x128xf32>
    %27 = arith.mulf %24, %26 : vector<24x128xf32>
    %cst_24 = arith.constant dense<0.000000e+00> : vector<128xf32>
    %28 = vector.multi_reduction <add>, %27, %cst_24 [0] : vector<24x128xf32> to vector<128xf32>
    %29 = vector.shape_cast %28 : vector<128xf32> to vector<1x128xf32>
    %30 = arith.mulf %27, %27 : vector<24x128xf32>
    %cst_25 = arith.constant dense<0.000000e+00> : vector<128xf32>
    %31 = vector.multi_reduction <add>, %30, %cst_25 [0] : vector<24x128xf32> to vector<128xf32>
    %32 = vector.shape_cast %31 : vector<128xf32> to vector<1x128xf32>
    %33 = tpu.iota {dimensions = array<i32: 0>} : vector<8x128xi32>
    %c0_i32 = arith.constant 0 : i32
    %34 = vector.broadcast %c0_i32 : i32 to vector<8x128xi32>
    %35 = arith.cmpi eq, %33, %34 : vector<8x128xi32>
    %36 = vector.shape_cast %29 : vector<1x128xf32> to vector<1x128xf32>
    %37 = vector.broadcast %36 : vector<1x128xf32> to vector<8x128xf32>
    %c1_i32 = arith.constant 1 : i32
    %38 = vector.broadcast %c1_i32 : i32 to vector<8x128xi32>
    %39 = arith.cmpi eq, %33, %38 : vector<8x128xi32>
    %40 = vector.shape_cast %32 : vector<1x128xf32> to vector<1x128xf32>
    %41 = vector.broadcast %40 : vector<1x128xf32> to vector<8x128xf32>
    %cst_26 = arith.constant 0.000000e+00 : f32
    %42 = vector.broadcast %cst_26 : f32 to vector<8x128xf32>
    %43 = arith.select %39, %41, %42 : vector<8x128xi1>, vector<8x128xf32>
    %44 = arith.select %35, %37, %43 : vector<8x128xi1>, vector<8x128xf32>
    %c0_27 = arith.constant 0 : index
    %c0_28 = arith.constant 0 : index
    %45 = vector.load %arg6[%c0_27, %c0_28] : memref<8x128xf32, #tpu.memory_space<vmem>>, vector<8x128xf32>
    tpu.vector_store %arg6[%c0_27, %c0_28], %44 {strides = array<i32>} : memref<8x128xf32, #tpu.memory_space<vmem>>, vector<8x128xf32>,
    %46 = arith.truncf %24 : vector<24x128xf32> to vector<24x128xbf16>
    %c0_29 = arith.constant 0 : index
    %c0_30 = arith.constant 0 : index
    %c0_31 = arith.constant 0 : index
    %47 = vector.load %arg5[%c0_29, %c0_30, %c0_31] : memref<1x24x128xbf16, #tpu.memory_space<vmem>>, vector<1x24x128xbf16>
    %48 = vector.shape_cast %47 : vector<1x24x128xbf16> to vector<24x128xbf16>
    %49 = vector.shape_cast %46 : vector<24x128xbf16> to vector<1x24x128xbf16>
    tpu.vector_store %arg5[%c0_29, %c0_30, %c0_31], %49 {strides = array<i32>} : memref<1x24x128xbf16, #tpu.memory_space<vmem>>, vector<1x24x128xbf16>,
    return
  }
  func.func @transform_0(%arg0: i32, %arg1: i32) -> (i32, i32, i32) {
    %c0_i32 = arith.constant 0 : i32
    %c0_i32_0 = arith.constant 0 : i32
    %c0_i32_1 = arith.constant 0 : i32
    return %arg0, %c0_i32, %c0_i32_0 : i32, i32, i32
  }
  func.func @transform_1(%arg0: i32, %arg1: i32) -> (i32, i32, i32) {
    %c0_i32 = arith.constant 0 : i32
    %c0_i32_0 = arith.constant 0 : i32
    %c0_i32_1 = arith.constant 0 : i32
    %c0_i32_2 = arith.constant 0 : i32
    return %c0_i32, %c0_i32_0, %c0_i32_1 : i32, i32, i32
  }
  func.func @transform_2(%arg0: i32, %arg1: i32) -> (i32, i32) {
    %c0_i32 = arith.constant 0 : i32
    %c0_i32_0 = arith.constant 0 : i32
    return %arg1, %c0_i32 : i32, i32
  }
  func.func @transform_3(%arg0: i32, %arg1: i32) -> (i32, i32, i32) {
    %c0_i32 = arith.constant 0 : i32
    %c0_i32_0 = arith.constant 0 : i32
    return %arg0, %arg1, %c0_i32 : i32, i32, i32
  }
  func.func @transform_4(%arg0: i32, %arg1: i32) -> (i32, i32) {
    %c1_i32 = arith.constant 1 : i32
    %0 = arith.muli %arg0, %c1_i32 : i32
    %1 = arith.addi %0, %arg1 : i32
    %c0_i32 = arith.constant 0 : i32
    %c0_i32_0 = arith.constant 0 : i32
    return %1, %c0_i32 : i32, i32
  }
}

module attributes {stable_mosaic.version = 11 : i64} {
  func.func @_conv_tap_kernel(%arg0: i32, %arg1: i32, %arg2: memref<1x16x128xbf16, #tpu.memory_space<vmem>>, %arg3: memref<4x128x128xbf16, #tpu.memory_space<vmem>>, %arg4: memref<1x8x128xf32, #tpu.memory_space<vmem>>) attributes {dimension_semantics = [#tpu.dimension_semantics<parallel>, #tpu.dimension_semantics<parallel>], iteration_bounds = array<i64: 2, 1>, scalar_prefetch = 0 : i64, scratch_operands = 0 : i64, tpu.core_type = #tpu.core_type<tc>, window_params = [{transform_indices = @transform_0, window_bounds = array<i64: 1, 16, 128>}, {pipeline_mode = #tpu.pipeline_mode<synchronous>, transform_indices = @transform_1, window_bounds = array<i64: 4, 128, 128>}, {transform_indices = @transform_2, window_bounds = array<i64: 1, 8, 128>}]} {
    %cst = arith.constant 0.000000e+00 : f32
    %0 = vector.broadcast %cst : f32 to vector<8x128xf32>
    %c0 = arith.constant 0 : index
    %c0_0 = arith.constant 0 : index
    %c0_1 = arith.constant 0 : index
    %1 = vector.load %arg2[%c0, %c0_0, %c0_1] : memref<1x16x128xbf16, #tpu.memory_space<vmem>>, vector<1x8x128xbf16>
    %2 = vector.shape_cast %1 : vector<1x8x128xbf16> to vector<8x128xbf16>
    %c0_2 = arith.constant 0 : index
    %c0_3 = arith.constant 0 : index
    %c0_4 = arith.constant 0 : index
    %3 = vector.load %arg3[%c0_2, %c0_3, %c0_4] : memref<4x128x128xbf16, #tpu.memory_space<vmem>>, vector<1x128x128xbf16>
    %4 = vector.shape_cast %3 : vector<1x128x128xbf16> to vector<128x128xbf16>
    %cst_5 = arith.constant dense<0.000000e+00> : vector<8x128xf32>
    %5 = tpu.matmul %2, %4, %cst_5 {dimension_numbers = #tpu.dot_dimension_numbers<[1], [0], [0], [1], [0, 0, 1, 1], [], []>} : vector<8x128xbf16>, vector<128x128xbf16>, vector<8x128xf32> -> vector<8x128xf32>
    %6 = arith.addf %0, %5 : vector<8x128xf32>
    %c0_6 = arith.constant 0 : index
    %c1 = arith.constant 1 : index
    %c0_7 = arith.constant 0 : index
    %7 = vector.load %arg2[%c0_6, %c1, %c0_7] : memref<1x16x128xbf16, #tpu.memory_space<vmem>>, vector<1x8x128xbf16>
    %8 = vector.shape_cast %7 : vector<1x8x128xbf16> to vector<8x128xbf16>
    %c1_8 = arith.constant 1 : index
    %c0_9 = arith.constant 0 : index
    %c0_10 = arith.constant 0 : index
    %9 = vector.load %arg3[%c1_8, %c0_9, %c0_10] : memref<4x128x128xbf16, #tpu.memory_space<vmem>>, vector<1x128x128xbf16>
    %10 = vector.shape_cast %9 : vector<1x128x128xbf16> to vector<128x128xbf16>
    %cst_11 = arith.constant dense<0.000000e+00> : vector<8x128xf32>
    %11 = tpu.matmul %8, %10, %cst_11 {dimension_numbers = #tpu.dot_dimension_numbers<[1], [0], [0], [1], [0, 0, 1, 1], [], []>} : vector<8x128xbf16>, vector<128x128xbf16>, vector<8x128xf32> -> vector<8x128xf32>
    %12 = arith.addf %6, %11 : vector<8x128xf32>
    %c0_12 = arith.constant 0 : index
    %c3 = arith.constant 3 : index
    %c0_13 = arith.constant 0 : index
    %13 = vector.load %arg2[%c0_12, %c3, %c0_13] : memref<1x16x128xbf16, #tpu.memory_space<vmem>>, vector<1x8x128xbf16>
    %14 = vector.shape_cast %13 : vector<1x8x128xbf16> to vector<8x128xbf16>
    %c2 = arith.constant 2 : index
    %c0_14 = arith.constant 0 : index
    %c0_15 = arith.constant 0 : index
    %15 = vector.load %arg3[%c2, %c0_14, %c0_15] : memref<4x128x128xbf16, #tpu.memory_space<vmem>>, vector<1x128x128xbf16>
    %16 = vector.shape_cast %15 : vector<1x128x128xbf16> to vector<128x128xbf16>
    %cst_16 = arith.constant dense<0.000000e+00> : vector<8x128xf32>
    %17 = tpu.matmul %14, %16, %cst_16 {dimension_numbers = #tpu.dot_dimension_numbers<[1], [0], [0], [1], [0, 0, 1, 1], [], []>} : vector<8x128xbf16>, vector<128x128xbf16>, vector<8x128xf32> -> vector<8x128xf32>
    %18 = arith.addf %12, %17 : vector<8x128xf32>
    %c0_17 = arith.constant 0 : index
    %c4 = arith.constant 4 : index
    %c0_18 = arith.constant 0 : index
    %19 = vector.load %arg2[%c0_17, %c4, %c0_18] : memref<1x16x128xbf16, #tpu.memory_space<vmem>>, vector<1x8x128xbf16>
    %20 = vector.shape_cast %19 : vector<1x8x128xbf16> to vector<8x128xbf16>
    %c3_19 = arith.constant 3 : index
    %c0_20 = arith.constant 0 : index
    %c0_21 = arith.constant 0 : index
    %21 = vector.load %arg3[%c3_19, %c0_20, %c0_21] : memref<4x128x128xbf16, #tpu.memory_space<vmem>>, vector<1x128x128xbf16>
    %22 = vector.shape_cast %21 : vector<1x128x128xbf16> to vector<128x128xbf16>
    %cst_22 = arith.constant dense<0.000000e+00> : vector<8x128xf32>
    %23 = tpu.matmul %20, %22, %cst_22 {dimension_numbers = #tpu.dot_dimension_numbers<[1], [0], [0], [1], [0, 0, 1, 1], [], []>} : vector<8x128xbf16>, vector<128x128xbf16>, vector<8x128xf32> -> vector<8x128xf32>
    %24 = arith.addf %18, %23 : vector<8x128xf32>
    %c0_23 = arith.constant 0 : index
    %c0_24 = arith.constant 0 : index
    %c0_25 = arith.constant 0 : index
    %25 = vector.load %arg4[%c0_23, %c0_24, %c0_25] : memref<1x8x128xf32, #tpu.memory_space<vmem>>, vector<1x8x128xf32>
    %26 = vector.shape_cast %25 : vector<1x8x128xf32> to vector<8x128xf32>
    %27 = vector.shape_cast %24 : vector<8x128xf32> to vector<1x8x128xf32>
    tpu.vector_store %arg4[%c0_23, %c0_24, %c0_25], %27 {strides = array<i32>} : memref<1x8x128xf32, #tpu.memory_space<vmem>>, vector<1x8x128xf32>,
    return
  }
  func.func @transform_0(%arg0: i32, %arg1: i32) -> (i32, i32, i32) {
    %c0_i32 = arith.constant 0 : i32
    %c0_i32_0 = arith.constant 0 : i32
    %c0_i32_1 = arith.constant 0 : i32
    return %arg0, %c0_i32, %c0_i32_0 : i32, i32, i32
  }
  func.func @transform_1(%arg0: i32, %arg1: i32) -> (i32, i32, i32) {
    %c0_i32 = arith.constant 0 : i32
    %c0_i32_0 = arith.constant 0 : i32
    %c0_i32_1 = arith.constant 0 : i32
    %c0_i32_2 = arith.constant 0 : i32
    return %c0_i32, %c0_i32_0, %c0_i32_1 : i32, i32, i32
  }
  func.func @transform_2(%arg0: i32, %arg1: i32) -> (i32, i32, i32) {
    %c0_i32 = arith.constant 0 : i32
    %c0_i32_0 = arith.constant 0 : i32
    return %arg0, %arg1, %c0_i32 : i32, i32, i32
  }
}

</mosaic_0001>

<bundles_post_ra>
// kernel: patch_image_discriminator_forward.4
= control target key start
LH: loop header
LB: loop body
LE: loop exit
PB: predicated region body
PF: predicated region fallthrough
CT: control target
= control target key end

     0   :  { %s2810_s9 = smov 0   ;;  %s2812_s10 = smov 0   ;;  %s3279_s0 = inlined_call_operand.vmem [shape: bf16[2,296,16], index: 0, kind: input, shape index: {}]   ;;  %s3280_s1 = inlined_call_operand.vmem [shape: bf16[4,16,128], index: 1, kind: input, shape index: {}]   ;;  %s3281_s2 = inlined_call_operand.vmem [shape: bf16[2,272,128], index: 2, kind: output, shape index: {}]  }
   0x1   :  { %s2814_s11 = smov 0  }
   0x2 LB: > { %s24_s12 = sadd.s32 1, %s2787_s10  ;;  %p2059_p0 = scmp.ge.s32.totalorder %s2791_s11, 1  ;;  %s2791_s11 = sphi %s2814_s11, %s12_s11   ;;  %s2787_s10 = sphi %s2812_s10, %s3283_s10   ;;  %s2783_s9 = sphi %s2810_s9, %s3282_s9  }
   0x3   : > { %p26_p1 = scmp.ge.s32.totalorder %s24_s12, 2  ;;  %p126_p2 = scmp.lt.s32.totalorder %s2791_s11, 3 }
   0x5   : > { %s3285_s12 = smov (%p26_p1, %s24_s12), 0  ;;  %p127_p3 = pnand %p2059_p0, %p126_p2 }
   0x6   : > { %p152_p4 = scmp.lt.s32.totalorder (!%p127_p3), %s2783_s9, 1 }
   0x7   : > { %130 = sbr.rel (%p127_p3) target bundleno = 495 (0x1ef), region = 28 }
   0xc   : > { %v2728_v0 = vld [vmem:[%s3280_s1] sm:$0xff]   ;;  %v2793_v1 = vmov 0.0   ;;  %v2729_v2 = vld [vmem:[%s3280_s1 + $0x8] sm:$0xff]   ;;  %vm2794_vm0 = vmmov 0   ;;  %s3287_s9 = smov (!%p152_p4, %s2783_s9), 1  ;;  %vm443_vm1 = vcmask 130048  }
   0xd   : > { %2490 = vmatprep.subr.bf16.mxu1 %v2793_v1  ;;  %2420 = vmatprep.subr.bf16.mxu0 %v2793_v1  ;;  %s2700_s17 = smul.u32 148, %s3287_s9  ;;  %v2733_v3 = vld [vmem:[%s3280_s1 + $0x18] sm:$0xff]   ;;  %vm296_vm2 = vsmask.f32 7424  ;;  %v2732_v12 = vld [vmem:[%s3280_s1 + $0x10] sm:$0xff]   ;;  %vm1406_vm3 = vcmask 1046528  }
   0xe   : > { %2491 = vmatpush3.bf16.msra.mxu1 %v2728_v0  ;;  %2492 = vmatprep.mubr.msk.bf16.mxu1 %vm2794_vm0, %v2793_v1  ;;  %s2701_s25 = smul.u32 136, %s3287_s9 }
   0xf   : > { %2421 = vmatpush3.bf16.msra.mxu0 %v2729_v2  ;;  %2422 = vmatprep.mubr.msk.bf16.mxu0 %vm2794_vm0, %v2793_v1  ;;  %s2848_s20 = scalar_lea.vmem %s3279_s0, %s2700_s17 }
  0x10   : > { %2560 = vmatprep.subr.bf16.mxu0 %v2793_v1  ;;  %2630 = vmatprep.subr.bf16.mxu1 %v2793_v1  ;;  %v2730_v4 = vld [vmem:[%s2848_s20] sm:$0xff]   ;;  %v2731_v5 = vld [vmem:[%s2848_s20 + $0x8] sm:$0xff]   ;;  %v2734_v9 = vld [vmem:[%s2848_s20 + $0x10] sm:$0xff]   ;;  %s3220_s28 = scalar_lea.vmem %s3281_s2, %s2701_s25 }
  0x11   : > { %2493 = vmatmul.mubr.msk.bf16.vlgmr.msra.gmra.mxu1 %vm443_vm1, %v2730_v4  ;;  %v298_v6 = vshrl.u32 %v2730_v4, 16  ;;  %v300_v7 = vshll.u32 %v2730_v4, 16  ;;  %v305_v8 = vshll.u32 %v2731_v5, 16  ;;  %v309_v14 = vshrl.u32 %v2731_v5, 16  ;;  %v2735_v19 = vld [vmem:[%s2848_s20 + $0x18] sm:$0xff]   ;;  %v2736_v25 = vld [vmem:[%s2848_s20 + $0x20] sm:$0xff]  }
  0x12   : > { %2631 = vmatpush3.bf16.msra.mxu1 %v2733_v3  ;;  %2496 = vmatprep.mubr.msk.bf16.mxu1 %vm2794_vm0, %v2793_v1  ;;  %v313_v15 = vshll.u32 %v2734_v9, 16  ;;  %v317_v21 = vshrl.u32 %v2734_v9, 16  ;;  %v321_v22 = vshll.u32 %v2735_v19, 16  ;;  %v325_v27 = vshrl.u32 %v2735_v19, 16  ;;  %v2737_v31 = vld [vmem:[%s2848_s20 + $0x28] sm:$0xff]   ;;  %v2738_v35 = vld [vmem:[%s2848_s20 + $0x30] sm:$0xff]  }
  0x13   : > { %v302_v10 = vrot.slane %v300_v7, 1  ;;  %v307_v11 = vrot.slane %v305_v8, 1  ;;  %v329_v28 = vshll.u32 %v2736_v25, 16  ;;  %v333_v33 = vshrl.u32 %v2736_v25, 16  ;;  %v2739_v43 = vld [vmem:[%s2848_s20 + $0x38] sm:$0xff]   ;;  %v2740_v49 = vld [vmem:[%s2848_s20 + $0x40] sm:$0xff]  }
  0x14   : > { %v315_v18 = vrot.slane %v313_v15, 1  ;;  %v323_v24 = vrot.slane %v321_v22, 1  ;;  %v337_v34 = vshll.u32 %v2737_v31, 16  ;;  %v341_v38 = vshrl.u32 %v2737_v31, 16  ;;  %v2741_v55 = vld [vmem:[%s2848_s20 + $0x48] sm:$0xff]   ;;  %v2742_v61 = vld [vmem:[%s2848_s20 + $0x50] sm:$0xff]  }
  0x15   : > { %v303_v13 = vor.u32 %v302_v10, %v298_v6  ;;  %v311_v17 = vor.u32 %v309_v14, %v307_v11  ;;  %v331_v30 = vrot.slane %v329_v28, 1  ;;  %v345_v39 = vshll.u32 %v2738_v35, 16  ;;  %v2743_v4 = vld [vmem:[%s2848_s20 + $0x58] sm:$0xff]   ;;  %v2744_v10 = vld [vmem:[%s2848_s20 + $0x60] sm:$0xff]   ;;  %v2746_v22 = vld [vmem:[%s2848_s20 + $0x70] sm:$0xff]  }
  0x16   : > { %v319_v23 = vor.u32 %v317_v21, %v315_v18  ;;  %v327_v29 = vor.u32 %v325_v27, %v323_v24  ;;  %v339_v37 = vrot.slane %v337_v34, 1  ;;  %v349_v45 = vshrl.u32 %v2738_v35, 16  ;;  %v2747_v28 = vld [vmem:[%s2848_s20 + $0x78] sm:$0xff]   ;;  %v2748_v34 = vld [vmem:[%s2848_s20 + $0x80] sm:$0xff]  }
  0x17   : > { %v308_v16 = vsel %vm296_vm2, %v303_v13, %v307_v11  ;;  %v316_v20 = vsel %vm296_vm2, %v311_v17, %v315_v18  ;;  %v335_v36 = vor.u32 %v333_v33, %v331_v30  ;;  %v347_v42 = vrot.slane %v345_v39, 1 }
  0x18   : > { %2423 = vmatmul.mubr.msk.bf16.vlgmr.msra.gmra.mxu0 %vm443_vm1, %v308_v16  ;;  %v324_v26 = vsel %vm296_vm2, %v319_v23, %v323_v24  ;;  %v332_v32 = vsel %vm296_vm2, %v327_v29, %v331_v30  ;;  %v343_v41 = vor.u32 %v341_v38, %v339_v37  ;;  %v353_v46 = vshll.u32 %v2739_v43, 16  ;;  %v2745_v16 = vld [vmem:[%s2848_s20 + $0x68] sm:$0xff]  }
  0x19   : > { %2561 = vmatpush3.bf16.msra.mxu0 %v2732_v12  ;;  %2497 = vmatmul.mubr.msk.bf16.gmra.mxu1 %vm443_vm1, %v2731_v5  ;;  %v340_v40 = vsel %vm296_vm2, %v335_v36, %v339_v37  ;;  %v351_v47 = vor.u32 %v349_v45, %v347_v42  ;;  %v357_v51 = vshrl.u32 %v2739_v43, 16  ;;  %v361_v52 = vshll.u32 %v2740_v49, 16 }
  0x1a   : > { %2426 = vmatprep.mubr.msk.bf16.mxu0 %vm2794_vm0, %v2793_v1  ;;  %2500 = vmatprep.mubr.msk.bf16.mxu1 %vm2794_vm0, %v2793_v1  ;;  %v348_v44 = vsel %vm296_vm2, %v343_v41, %v347_v42  ;;  %v355_v48 = vrot.slane %v353_v46, 1  ;;  %v365_v57 = vshrl.u32 %v2740_v49, 16  ;;  %v369_v58 = vshll.u32 %v2741_v55, 16  ;;  %v873_v41 = vld [vmem:[%s2848_s20 + $0x8] sm:$0xf] }
  0x1b   : > { %v363_v54 = vrot.slane %v361_v52, 1  ;;  %v373_v63 = vshrl.u32 %v2741_v55, 16  ;;  %v377_v0 = vshll.u32 %v2742_v61, 16  ;;  %v381_v6 = vshrl.u32 %v2742_v61, 16  ;;  %v874_v42 = vld [vmem:[%s2848_s20 + $0xc] sm:$0xf] }
  0x1c   : > { %v356_v50 = vsel %vm296_vm2, %v351_v47, %v355_v48  ;;  %v359_v53 = vor.u32 %v357_v51, %v355_v48  ;;  %v371_v60 = vrot.slane %v369_v58, 1  ;;  %v385_v7 = vshll.u32 %v2743_v4, 16  ;;  %v2751_v48 = vld [vmem:[%s2848_s20 + $0x10] sm:$0xff]  }
  0x1d   : > { %v367_v59 = vor.u32 %v365_v57, %v363_v54  ;;  %v379_v3 = vrot.slane %v377_v0, 1  ;;  %v389_v12 = vshrl.u32 %v2743_v4, 16  ;;  %v393_v13 = vshll.u32 %v2744_v10, 16 }
  0x1e   : > { %v364_v56 = vsel %vm296_vm2, %v359_v53, %v363_v54  ;;  %v375_v2 = vor.u32 %v373_v63, %v371_v60  ;;  %v397_v18 = vshrl.u32 %v2744_v10, 16  ;;  %v405_v24 = vshrl.u32 %v2745_v16, 16 }
  0x1f   : > { %v372_v62 = vsel %vm296_vm2, %v367_v59, %v371_v60  ;;  %v383_v8 = vor.u32 %v381_v6, %v379_v3  ;;  %v395_v15 = vrot.slane %v393_v13, 1  ;;  %v413_v30 = vshrl.u32 %v2746_v22, 16  ;;  %v2753_v60 = vld [vmem:[%s2848_s20 + $0x18] sm:$0xff]   ;;  %v2755_v13 = vld [vmem:[%s2848_s20 + $0x28] sm:$0xff]  }
  0x20   : > { %2427 = vmatmul.mubr.msk.bf16.gmra.mxu0 %vm443_vm1, %v316_v20  ;;  %v380_v5 = vsel %vm296_vm2, %v375_v2, %v379_v3  ;;  %v421_v36 = vshrl.u32 %v2747_v28, 16  ;;  %v425_v37 = vshll.u32 %v2748_v34, 16  ;;  %v429_v45 = vshrl.u32 %v2748_v34, 16 }
  0x21   : > { %2501 = vmatmul.mubr.msk.bf16.gmra.mxu1 %vm443_vm1, %v2734_v9  ;;  %2430 = vmatprep.mubr.msk.bf16.mxu0 %vm2794_vm0, %v2793_v1  ;;  %v387_v9 = vrot.slane %v385_v7, 1  ;;  %v399_v20 = vor.u32 %v397_v18, %v395_v15  ;;  %v2120_v47 = vcombine.low %v873_v41, %v874_v42  ;;  %v1408_v54 = vrot.slane %v2751_v48, 1 }
  0x22   : > { %2504 = vmatprep.mubr.msk.bf16.mxu1 %vm2794_vm0, %v2793_v1  ;;  %v427_v39 = vrot.slane %v425_v37, 1  ;;  %v1007_v58 = vshll.u32 %v2751_v48, 16  ;;  %v1410_v63 = vrot.slane %v2753_v60, 1  ;;  %v1011_v2 = vshrl.u32 %v2751_v48, 16  ;;  %v2758_v37 = vld [vmem:[%s2848_s20 + $0x40] sm:$0xff]  }
  0x23   : > { %v388_v11 = vsel %vm296_vm2, %v383_v8, %v387_v9  ;;  %v391_v14 = vor.u32 %v389_v12, %v387_v9  ;;  %v1002_v52 = vshll.u32 %v2120_v47, 16  ;;  %v1015_v3 = vshll.u32 %v2753_v60, 16 }
  0x25   : > { %v396_v17 = vsel %vm296_vm2, %v391_v14, %v395_v15  ;;  %v1004_v57 = vrot.slane %v1002_v52, 1  ;;  %v1017_v7 = vrot.slane %v1015_v3, 1 }
  0x28   : > { %2431 = vmatmul.mubr.msk.bf16.gmra.mxu0 %vm443_vm1, %v324_v26 }
  0x29   : > { %2505 = vmatmul.mubr.msk.bf16.gmra.mxu1 %vm443_vm1, %v2735_v19  ;;  %2434 = vmatprep.mubr.msk.bf16.mxu0 %vm2794_vm0, %v2793_v1  ;;  %v401_v19 = vshll.u32 %v2745_v16, 16 }
  0x2a   : > { %2508 = vmatprep.mubr.msk.bf16.mxu1 %vm2794_vm0, %v2793_v1 }
  0x2b   : > { %v403_v21 = vrot.slane %v401_v19, 1  ;;  %v1031_v19 = vshll.u32 %v2755_v13, 16 }
  0x2d   : > { %v404_v23 = vsel %vm296_vm2, %v399_v20, %v403_v21  ;;  %v407_v26 = vor.u32 %v405_v24, %v403_v21  ;;  %v2756_v21 = vld [vmem:[%s2848_s20 + $0x30] sm:$0xff]  }
  0x2e   : > { %v1416_v24 = vrot.slane %v2756_v21, 1 }
  0x30   : > { %2435 = vmatmul.mubr.msk.bf16.gmra.mxu0 %vm443_vm1, %v332_v32 }
  0x31   : > { %2509 = vmatmul.mubr.msk.bf16.gmra.mxu1 %vm443_vm1, %v2736_v25  ;;  %2438 = vmatprep.mubr.msk.bf16.mxu0 %vm2794_vm0, %v2793_v1  ;;  %v409_v25 = vshll.u32 %v2746_v22, 16 }
  0x32   : > { %2512 = vmatprep.mubr.msk.bf16.mxu1 %vm2794_vm0, %v2793_v1 }
  0x33   : > { %v411_v27 = vrot.slane %v409_v25, 1 }
  0x35   : > { %v412_v29 = vsel %vm296_vm2, %v407_v26, %v411_v27  ;;  %v415_v32 = vor.u32 %v413_v30, %v411_v27  ;;  %v1035_v26 = vshrl.u32 %v2755_v13, 16  ;;  %v1039_v27 = vshll.u32 %v2756_v21, 16 }
  0x38   : > { %2439 = vmatmul.mubr.msk.bf16.gmra.mxu0 %vm443_vm1, %v340_v40  ;;  %v2749_v40 = vld [vmem:[%s2848_s20 + $0x88] ss:$0 sps:$4 sm:$0x11]  }
  0x39   : > { %2513 = vmatmul.mubr.msk.bf16.gmra.mxu1 %vm443_vm1, %v2737_v31  ;;  %2442 = vmatprep.mubr.msk.bf16.mxu0 %vm2794_vm0, %v2793_v1  ;;  %v417_v31 = vshll.u32 %v2747_v28, 16  ;;  %v433_v46 = vshll.u32 %v2749_v40, 16  ;;  %v1420_v40 = vrot.slane %v2758_v37, 1 }
  0x3a   : > { %2516 = vmatprep.mubr.msk.bf16.mxu1 %vm2794_vm0, %v2793_v1 }
  0x3b   : > { %v419_v33 = vrot.slane %v417_v31, 1  ;;  %v435_v51 = vrot.slane %v433_v46, 1  ;;  %v1041_v31 = vrot.slane %v1039_v27, 1 }
  0x3d   : > { %v423_v38 = vor.u32 %v421_v36, %v419_v33 }
  0x40   : > { %2443 = vmatmul.mubr.msk.bf16.gmra.mxu0 %vm443_vm1, %v348_v44  ;;  %v428_v44 = vsel %vm296_vm2, %v423_v38, %v427_v39 }
  0x41   : > { %2517 = vmatmul.mubr.msk.bf16.gmra.mxu1 %vm443_vm1, %v2738_v35  ;;  %2446 = vmatprep.mubr.msk.bf16.mxu0 %vm2794_vm0, %v2793_v1  ;;  %v420_v35 = vsel %vm296_vm2, %v415_v32, %v419_v33 }
  0x42   : > { %2520 = vmatprep.mubr.msk.bf16.mxu1 %vm2794_vm0, %v2793_v1 }
  0x48   : > { %2447 = vmatmul.mubr.msk.bf16.gmra.mxu0 %vm443_vm1, %v356_v50  ;;  %v431_v50 = vor.u32 %v429_v45, %v427_v39  ;;  %v2759_v45 = vld [vmem:[%s2848_s20 + $0x48] sm:$0xff]  }
  0x49   : > { %2521 = vmatmul.mubr.msk.bf16.gmra.mxu1 %vm443_vm1, %v2739_v43  ;;  %2450 = vmatprep.mubr.msk.bf16.mxu0 %vm2794_vm0, %v2793_v1  ;;  %v1399_v43 = vld [vmem:[%s2848_s20 + $0x8] sm:$0xe]  ;;  %v1422_v48 = vrot.slane %v2759_v45, 1 }
  0x4a   : > { %2524 = vmatprep.mubr.msk.bf16.mxu1 %vm2794_vm0, %v2793_v1 }
  0x4b   : > { %v1423_v52 = vsel %vm1406_vm3, %v1420_v40, %v1422_v48 }
  0x50   : > { %2451 = vmatmul.mubr.msk.bf16.gmra.mxu0 %vm443_vm1, %v364_v56  ;;  %v1000_v56 = vshrl.u32 %v2120_v47, 16 }
  0x51   : > { %2525 = vmatmul.mubr.msk.bf16.gmra.mxu1 %vm443_vm1, %v2740_v49  ;;  %2454 = vmatprep.mubr.msk.bf16.mxu0 %vm2794_vm0, %v2793_v1  ;;  %v2158_v49 = vcombine.low %v1399_v43, %v874_v42  ;;  %v1055_v43 = vshll.u32 %v2758_v37, 16 }
  0x52   : > { %2528 = vmatprep.mubr.msk.bf16.mxu1 %vm2794_vm0, %v2793_v1 }
  0x53   : > { %v1407_v53 = vrot.slane %v2158_v49, 1  ;;  %v1057_v47 = vrot.slane %v1055_v43, 1 }
  0x55   : > { %v1409_v59 = vsel %vm1406_vm3, %v1407_v53, %v1408_v54  ;;  %v2760_v53 = vld [vmem:[%s2848_s20 + $0x50] sm:$0xff]  }
  0x58   : > { %2455 = vmatmul.mubr.msk.bf16.gmra.mxu0 %vm443_vm1, %v372_v62  ;;  %v1009_v62 = vrot.slane %v1007_v58, 1 }
  0x59   : > { %2529 = vmatmul.mubr.msk.bf16.gmra.mxu1 %vm443_vm1, %v2741_v55  ;;  %2458 = vmatprep.mubr.msk.bf16.mxu0 %vm2794_vm0, %v2793_v1  ;;  %v436_v55 = vsel %vm296_vm2, %v431_v50, %v435_v51  ;;  %v1059_v50 = vshrl.u32 %v2758_v37, 16  ;;  %v1063_v51 = vshll.u32 %v2759_v45, 16  ;;  %v2763_v37 = vld [vmem:[%s2848_s20 + $0x68] sm:$0xff]  }
  0x5a   : > { %2532 = vmatprep.mubr.msk.bf16.mxu1 %vm2794_vm0, %v2793_v1  ;;  %v1013_v6 = vor.u32 %v1011_v2, %v1009_v62 }
  0x5c   : > { %v1018_v9 = vsel %vm296_vm2, %v1013_v6, %v1017_v7 }
  0x60   : > { %2459 = vmatmul.mubr.msk.bf16.gmra.mxu0 %vm443_vm1, %v380_v5  ;;  %v2754_v5 = vld [vmem:[%s2848_s20 + $0x20] sm:$0xff]  }
  0x61   : > { %2533 = vmatmul.mubr.msk.bf16.gmra.mxu1 %vm443_vm1, %v2742_v61  ;;  %2462 = vmatprep.mubr.msk.bf16.mxu0 %vm2794_vm0, %v2793_v1  ;;  %v1005_v61 = vor.u32 %v1004_v57, %v1000_v56  ;;  %v1412_v8 = vrot.slane %v2754_v5, 1  ;;  %v1027_v18 = vshrl.u32 %v2754_v5, 16  ;;  %v1065_v56 = vrot.slane %v1063_v51, 1 }
  0x62   : > { %2536 = vmatprep.mubr.msk.bf16.mxu1 %vm2794_vm0, %v2793_v1  ;;  %v1424_v57 = vrot.slane %v2760_v53, 1 }
  0x63   : > { %v1010_v0 = vsel %vm296_vm2, %v1005_v61, %v1009_v62  ;;  %v1413_v12 = vsel %vm1406_vm3, %v1410_v63, %v1412_v8  ;;  %v1067_v61 = vshrl.u32 %v2759_v45, 16  ;;  %v1071_v62 = vshll.u32 %v2760_v53, 16 }
  0x64   : > { %v1430_v45 = vrot.slane %v2763_v37, 1 }
  0x65   : > { %v1069_v6 = vor.u32 %v1067_v61, %v1065_v56 }
  0x68   : > { %2463 = vmatmul.mubr.msk.bf16.gmra.mxu0 %vm443_vm1, %v388_v11  ;;  %v1023_v11 = vshll.u32 %v2754_v5, 16 }
  0x69   : > { %2537 = vmatmul.mubr.msk.bf16.gmra.mxu1 %vm443_vm1, %v2743_v4  ;;  %2466 = vmatprep.mubr.msk.bf16.mxu0 %vm2794_vm0, %v2793_v1  ;;  %v1411_v4 = vsel %vm1406_vm3, %v1408_v54, %v1410_v63  ;;  %v1425_v63 = vsel %vm1406_vm3, %v1422_v48, %v1424_v57 }
  0x6a   : > { %2540 = vmatprep.mubr.msk.bf16.mxu1 %vm2794_vm0, %v2793_v1  ;;  %v1025_v15 = vrot.slane %v1023_v11, 1 }
  0x70   : > { %2467 = vmatmul.mubr.msk.bf16.gmra.mxu0 %vm443_vm1, %v396_v17 }
  0x71   : > { %2541 = vmatmul.mubr.msk.bf16.gmra.mxu1 %vm443_vm1, %v2744_v10  ;;  %2470 = vmatprep.mubr.msk.bf16.mxu0 %vm2794_vm0, %v2793_v1  ;;  %v1019_v10 = vshrl.u32 %v2753_v60, 16 }
  0x72   : > { %2544 = vmatprep.mubr.msk.bf16.mxu1 %vm2794_vm0, %v2793_v1 }
  0x73   : > { %v1021_v14 = vor.u32 %v1019_v10, %v1017_v7  ;;  %v1073_v7 = vrot.slane %v1071_v62, 1 }
  0x75   : > { %v1026_v17 = vsel %vm296_vm2, %v1021_v14, %v1025_v15  ;;  %v1074_v14 = vsel %vm296_vm2, %v1069_v6, %v1073_v7 }
  0x78   : > { %2471 = vmatmul.mubr.msk.bf16.gmra.mxu0 %vm443_vm1, %v404_v23  ;;  %v1033_v23 = vrot.slane %v1031_v19, 1  ;;  %v2762_v19 = vld [vmem:[%s2848_s20 + $0x60] sm:$0xff]  }
  0x79   : > { %2545 = vmatmul.mubr.msk.bf16.gmra.mxu1 %vm443_vm1, %v2745_v16  ;;  %2474 = vmatprep.mubr.msk.bf16.mxu0 %vm2794_vm0, %v2793_v1  ;;  %v1414_v16 = vrot.slane %v2755_v13, 1  ;;  %v1428_v27 = vrot.slane %v2762_v19, 1  ;;  %v1091_v51 = vshrl.u32 %v2762_v19, 16 }
  0x7a   : > { %2548 = vmatprep.mubr.msk.bf16.mxu1 %vm2794_vm0, %v2793_v1  ;;  %v1037_v30 = vor.u32 %v1035_v26, %v1033_v23 }
  0x7b   : > { %v1415_v20 = vsel %vm1406_vm3, %v1412_v8, %v1414_v16 }
  0x7c   : > { %v1042_v33 = vsel %vm296_vm2, %v1037_v30, %v1041_v31 }
  0x80   : > { %2475 = vmatmul.mubr.msk.bf16.gmra.mxu0 %vm443_vm1, %v412_v29  ;;  %v2757_v29 = vld [vmem:[%s2848_s20 + $0x38] sm:$0xff]  }
  0x81   : > { %2549 = vmatmul.mubr.msk.bf16.gmra.mxu1 %vm443_vm1, %v2746_v22  ;;  %2478 = vmatprep.mubr.msk.bf16.mxu0 %vm2794_vm0, %v2793_v1  ;;  %v1029_v22 = vor.u32 %v1027_v18, %v1025_v15  ;;  %v1418_v32 = vrot.slane %v2757_v29, 1  ;;  %v1051_v42 = vshrl.u32 %v2757_v29, 16  ;;  %v1075_v15 = vshrl.u32 %v2760_v53, 16 }
  0x82   : > { %2552 = vmatprep.mubr.msk.bf16.mxu1 %vm2794_vm0, %v2793_v1 }
  0x83   : > { %v1034_v25 = vsel %vm296_vm2, %v1029_v22, %v1033_v23  ;;  %v1419_v36 = vsel %vm1406_vm3, %v1416_v24, %v1418_v32 }
  0x88   : > { %2479 = vmatmul.mubr.msk.bf16.gmra.mxu0 %vm443_vm1, %v420_v35  ;;  %v1047_v35 = vshll.u32 %v2757_v29, 16 }
  0x89   : > { %2553 = vmatmul.mubr.msk.bf16.gmra.mxu1 %vm443_vm1, %v2747_v28  ;;  %2482 = vmatprep.mubr.msk.bf16.mxu0 %vm2794_vm0, %v2793_v1  ;;  %v1417_v28 = vsel %vm1406_vm3, %v1414_v16, %v1416_v24  ;;  %v1077_v24 = vor.u32 %v1075_v15, %v1073_v7  ;;  %v1099_v7 = vshrl.u32 %v2763_v37, 16 }
  0x8a   : > { %2556 = vmatprep.mubr.msk.bf16.mxu1 %vm2794_vm0, %v2793_v1  ;;  %v1049_v39 = vrot.slane %v1047_v35, 1 }
  0x8c   : > { %v1053_v46 = vor.u32 %v1051_v42, %v1049_v39 }
  0x8e   : > { %v1058_v49 = vsel %vm296_vm2, %v1053_v46, %v1057_v47 }
  0x90   : > { %2483 = vmatmul.mubr.msk.bf16.gmra.mxu0 %vm443_vm1, %v428_v44  ;;  %v1421_v44 = vsel %vm1406_vm3, %v1418_v32, %v1420_v40 }
  0x91   : > { %2557 = vmatmul.mubr.msk.bf16.gmra.mxu1 %vm443_vm1, %v2748_v34  ;;  %2486 = vmatprep.mubr.msk.bf16.mxu0 %vm2794_vm0, %v2793_v1  ;;  %v1043_v34 = vshrl.u32 %v2756_v21, 16 }
  0x92   : > { %2632 = vmatprep.mubr.msk.bf16.mxu1 %vm2794_vm0, %v2793_v1 }
  0x93   : > { %v1045_v38 = vor.u32 %v1043_v34, %v1041_v31  ;;  %v1087_v34 = vshll.u32 %v2762_v19, 16 }
  0x95   : > { %v1050_v41 = vsel %vm296_vm2, %v1045_v38, %v1049_v39  ;;  %v1089_v43 = vrot.slane %v1087_v34, 1 }
  0x98   : > { %2487 = vmatmul.mubr.msk.bf16.gmra.mxu0 %vm443_vm1, %v436_v55  ;;  %v1061_v55 = vor.u32 %v1059_v50, %v1057_v47 }
  0x99   : > { %2633 = vmatmul.mubr.msk.bf16.vlgmr.msra.gmra.mxu1 %vm443_vm1, %v1409_v59  ;;  %2562 = vmatprep.mubr.msk.bf16.mxu0 %vm2794_vm0, %v2793_v1 }
  0x9a   : > { %2636 = vmatprep.mubr.msk.bf16.mxu1 %vm2794_vm0, %v2793_v1  ;;  %v1066_v60 = vsel %vm296_vm2, %v1061_v55, %v1065_v56  ;;  %v2764_v55 = vld [vmem:[%s2848_s20 + $0x70] sm:$0xff]  }
  0xa0   : > { %2563 = vmatmul.mubr.msk.bf16.vlgmr.msra.gmra.mxu0 %vm443_vm1, %v1010_v0  ;;  %v2761_v0 = vld [vmem:[%s2848_s20 + $0x58] sm:$0xff]  }
  0xa1   : > { %2637 = vmatmul.mubr.msk.bf16.gmra.mxu1 %vm443_vm1, %v1411_v4  ;;  %2566 = vmatprep.mubr.msk.bf16.mxu0 %vm2794_vm0, %v2793_v1  ;;  %v1079_v16 = vshll.u32 %v2761_v0, 16 }
  0xa2   : > { %2640 = vmatprep.mubr.msk.bf16.mxu1 %vm2794_vm0, %v2793_v1 }
  0xa8   : > { %2567 = vmatmul.mubr.msk.bf16.gmra.mxu0 %vm443_vm1, %v1018_v9  ;;  %v1426_v9 = vrot.slane %v2761_v0, 1 }
  0xa9   : > { %2641 = vmatmul.mubr.msk.bf16.gmra.mxu1 %vm443_vm1, %v1413_v12  ;;  %2570 = vmatprep.mubr.msk.bf16.mxu0 %vm2794_vm0, %v2793_v1 }
  0xaa   : > { %2644 = vmatprep.mubr.msk.bf16.mxu1 %vm2794_vm0, %v2793_v1  ;;  %v1427_v18 = vsel %vm1406_vm3, %v1424_v57, %v1426_v9 }
  0xb0   : > { %2571 = vmatmul.mubr.msk.bf16.gmra.mxu0 %vm443_vm1, %v1026_v17 }
  0xb1   : > { %2645 = vmatmul.mubr.msk.bf16.gmra.mxu1 %vm443_vm1, %v1415_v20  ;;  %2574 = vmatprep.mubr.msk.bf16.mxu0 %vm2794_vm0, %v2793_v1 }
  0xb2   : > { %2648 = vmatprep.mubr.msk.bf16.mxu1 %vm2794_vm0, %v2793_v1 }
  0xb8   : > { %2575 = vmatmul.mubr.msk.bf16.gmra.mxu0 %vm443_vm1, %v1034_v25  ;;  %v1081_v25 = vrot.slane %v1079_v16, 1 }
  0xb9   : > { %2649 = vmatmul.mubr.msk.bf16.gmra.mxu1 %vm443_vm1, %v1417_v28  ;;  %2578 = vmatprep.mubr.msk.bf16.mxu0 %vm2794_vm0, %v2793_v1 }
  0xba   : > { %2652 = vmatprep.mubr.msk.bf16.mxu1 %vm2794_vm0, %v2793_v1  ;;  %v1082_v32 = vsel %vm296_vm2, %v1077_v24, %v1081_v25 }
  0xc0   : > { %2579 = vmatmul.mubr.msk.bf16.gmra.mxu0 %vm443_vm1, %v1042_v33  ;;  %v1083_v33 = vshrl.u32 %v2761_v0, 16 }
  0xc1   : > { %2653 = vmatmul.mubr.msk.bf16.gmra.mxu1 %vm443_vm1, %v1419_v36  ;;  %2582 = vmatprep.mubr.msk.bf16.mxu0 %vm2794_vm0, %v2793_v1  ;;  %v1429_v36 = vsel %vm1406_vm3, %v1426_v9, %v1428_v27 }
  0xc2   : > { %2656 = vmatprep.mubr.msk.bf16.mxu1 %vm2794_vm0, %v2793_v1  ;;  %v1085_v42 = vor.u32 %v1083_v33, %v1081_v25 }
  0xc4   : > { %v1090_v50 = vsel %vm296_vm2, %v1085_v42, %v1089_v43 }
  0xc8   : > { %2583 = vmatmul.mubr.msk.bf16.gmra.mxu0 %vm443_vm1, %v1050_v41 }
  0xc9   : > { %2657 = vmatmul.mubr.msk.bf16.gmra.mxu1 %vm443_vm1, %v1421_v44  ;;  %2586 = vmatprep.mubr.msk.bf16.mxu0 %vm2794_vm0, %v2793_v1 }
  0xca   : > { %2660 = vmatprep.mubr.msk.bf16.mxu1 %vm2794_vm0, %v2793_v1 }
  0xd0   : > { %2587 = vmatmul.mubr.msk.bf16.gmra.mxu0 %vm443_vm1, %v1058_v49 }
  0xd1   : > { %v738_v54 = vpop.f32.mrf.mxu1  ;;  %2661 = vmatmul.mubr.msk.bf16.gmra.mxu1 %vm443_vm1, %v1423_v52  ;;  %2590 = vmatprep.mubr.msk.bf16.mxu0 %vm2794_vm0, %v2793_v1  ;;  %v1095_v52 = vshll.u32 %v2763_v37, 16 }
  0xd2   : > { %2664 = vmatprep.mubr.msk.bf16.mxu1 %vm2794_vm0, %v2793_v1 }
  0xd3   : > { %v2494_v58 = vpop.f32.mrf.mxu1  ;;  %v1097_v61 = vrot.slane %v1095_v52, 1  ;;  %v2767_v52 = vld [vmem:[%s2848_s20 + $0x88] sm:$0xff]  }
  0xd5   : > { %v741_v59 = vpop.f32.mrf.mxu1 }
  0xd7   : > { %v2495_v2 = vpop.f32.mrf.mxu1 }
  0xd8   : > { %v529_v3 = vpop.f32.mrf.mxu0  ;;  %2591 = vmatmul.mubr.msk.bf16.gmra.mxu0 %vm443_vm1, %v1066_v60 }
  0xd9   : > { %v3069_v4 = vadd.f32 %v738_v54, %v529_v3  ;;  %v746_v5 = vpop.f32.mrf.mxu1  ;;  %2665 = vmatmul.mubr.msk.bf16.gmra.mxu1 %vm443_vm1, %v1425_v63  ;;  %2594 = vmatprep.mubr.msk.bf16.mxu0 %vm2794_vm0, %v2793_v1  ;;  %v1431_v54 = vsel %vm1406_vm3, %v1428_v27, %v1430_v45  ;;  %v1432_v63 = vrot.slane %v2764_v55, 1  ;;  %v1107_v27 = vshrl.u32 %v2764_v55, 16 }
  0xda   : > { %v2424_v8 = vpop.f32.mrf.mxu0  ;;  %2668 = vmatprep.mubr.msk.bf16.mxu1 %vm2794_vm0, %v2793_v1 }
  0xdb   : > { %v2498_v10 = vpop.f32.mrf.mxu1  ;;  %v1103_v8 = vshll.u32 %v2764_v55, 16 }
  0xdc   : > { %v532_v11 = vpop.f32.mrf.mxu0  ;;  %v1433_v10 = vsel %vm1406_vm3, %v1430_v45, %v1432_v63 }
  0xdd   : > { %v3076_v12 = vadd.f32 %v741_v59, %v532_v11  ;;  %v749_v13 = vpop.f32.mrf.mxu1  ;;  %v1093_v59 = vor.u32 %v1091_v51, %v1089_v43  ;;  %v2765_v11 = vld [vmem:[%s2848_s20 + $0x78] sm:$0xff]  }
  0xde   : > { %v2425_v17 = vpop.f32.mrf.mxu0 }
  0xdf   : > { %v2499_v20 = vpop.f32.mrf.mxu1  ;;  %v1098_v6 = vsel %vm296_vm2, %v1093_v59, %v1097_v61  ;;  %v1101_v17 = vor.u32 %v1099_v7, %v1097_v61  ;;  %v1438_v61 = vrot.slane %v2767_v52, 1  ;;  %v1127_v7 = vshll.u32 %v2767_v52, 16 }
  0xe0   : > { %v537_v21 = vpop.f32.mrf.mxu0  ;;  %2595 = vmatmul.mubr.msk.bf16.gmra.mxu0 %vm443_vm1, %v1074_v14  ;;  %v1434_v20 = vrot.slane %v2765_v11, 1 }
  0xe1   : > { %v3082_v22 = vadd.f32 %v746_v5, %v537_v21  ;;  %v754_v23 = vpop.f32.mrf.mxu1  ;;  %2669 = vmatmul.mubr.msk.bf16.gmra.mxu1 %vm443_vm1, %v1427_v18  ;;  %2598 = vmatprep.mubr.msk.bf16.mxu0 %vm2794_vm0, %v2793_v1  ;;  %v1105_v18 = vrot.slane %v1103_v8, 1 }
  0xe2   : > { %v2428_v26 = vpop.f32.mrf.mxu0  ;;  %2672 = vmatprep.mubr.msk.bf16.mxu1 %vm2794_vm0, %v2793_v1 }
  0xe3   : > { %v2502_v28 = vpop.f32.mrf.mxu1  ;;  %v1106_v26 = vsel %vm296_vm2, %v1101_v17, %v1105_v18  ;;  %v1109_v37 = vor.u32 %v1107_v27, %v1105_v18  ;;  %v1129_v18 = vrot.slane %v1127_v7, 1 }
  0xe4   : > { %v540_v29 = vpop.f32.mrf.mxu0  ;;  %v1111_v28 = vshll.u32 %v2765_v11, 16 }
  0xe5   : > { %v3089_v30 = vadd.f32 %v749_v13, %v540_v29  ;;  %v757_v31 = vpop.f32.mrf.mxu1 }
  0xe6   : > { %v2429_v35 = vpop.f32.mrf.mxu0 }
  0xe7   : > { %v2503_v38 = vpop.f32.mrf.mxu1 }
  0xe8   : > { %v545_v39 = vpop.f32.mrf.mxu0  ;;  %2599 = vmatmul.mubr.msk.bf16.gmra.mxu0 %vm443_vm1, %v1082_v32  ;;  %v2766_v32 = vld [vmem:[%s2848_s20 + $0x80] sm:$0xff]   ;;  %v1113_v38 = vrot.slane %v1111_v28, 1  ;;  %v1131_v28 = vshrl.u32 %v2767_v52, 16 }
  0xe9   : > { %v3095_v40 = vadd.f32 %v754_v23, %v545_v39  ;;  %v762_v41 = vpop.f32.mrf.mxu1  ;;  %2673 = vmatmul.mubr.msk.bf16.gmra.mxu1 %vm443_vm1, %v1429_v36  ;;  %2602 = vmatprep.mubr.msk.bf16.mxu0 %vm2794_vm0, %v2793_v1 }
  0xea   : > { %v2432_v44 = vpop.f32.mrf.mxu0  ;;  %2676 = vmatprep.mubr.msk.bf16.mxu1 %vm2794_vm0, %v2793_v1 }
  0xeb   : > { %v2506_v46 = vpop.f32.mrf.mxu1 }
  0xec   : > { %v548_v47 = vpop.f32.mrf.mxu0  ;;  %v1114_v46 = vsel %vm296_vm2, %v1109_v37, %v1113_v38 }
  0xed   : > { %v3102_v48 = vadd.f32 %v757_v31, %v548_v47  ;;  %v765_v49 = vpop.f32.mrf.mxu1  ;;  %v1435_v31 = vsel %vm1406_vm3, %v1432_v63, %v1434_v20  ;;  %v1115_v47 = vshrl.u32 %v2765_v11, 16 }
  0xee   : > { %v2433_v53 = vpop.f32.mrf.mxu0 }
  0xef   : > { %v2507_v56 = vpop.f32.mrf.mxu1 }
  0xf0   : > { %v553_v57 = vpop.f32.mrf.mxu0  ;;  %2603 = vmatmul.mubr.msk.bf16.gmra.mxu0 %vm443_vm1, %v1090_v50 }
  0xf1   : > { %v3108_v58 = vadd.f32 %v762_v41, %v553_v57  ;;  %v770_v60 = vpop.f32.mrf.mxu1  ;;  %2677 = vmatmul.mubr.msk.bf16.gmra.mxu1 %vm443_vm1, %v1431_v54  ;;  %2606 = vmatprep.mubr.msk.bf16.mxu0 %vm2794_vm0, %v2793_v1  ;;  %v1436_v41 = vrot.slane %v2766_v32, 1  ;;  %v1117_v57 = vor.u32 %v1115_v47, %v1113_v38  ;;  %v1133_v38 = vor.u32 %v1131_v28, %v1129_v18 }
  0xf2   : > { %v2436_v62 = vpop.f32.mrf.mxu0  ;;  %2680 = vmatprep.mubr.msk.bf16.mxu1 %vm2794_vm0, %v2793_v1 }
  0xf3   : > { %v2510_v0 = vpop.f32.mrf.mxu1  ;;  %v1437_v51 = vsel %vm1406_vm3, %v1434_v20, %v1436_v41 }
  0xf4   : > { %v556_v2 = vpop.f32.mrf.mxu0 }
  0xf5   : > { %v3115_v3 = vadd.f32 %v765_v49, %v556_v2  ;;  %v773_v5 = vpop.f32.mrf.mxu1  ;;  %v1119_v49 = vshll.u32 %v2766_v32, 16 }
  0xf6   : > { %v2437_v9 = vpop.f32.mrf.mxu0 }
  0xf7   : > { %v2511_v13 = vpop.f32.mrf.mxu1  ;;  %v1121_v59 = vrot.slane %v1119_v49, 1  ;;  %v1439_v9 = vsel %vm1406_vm3, %v1436_v41, %v1438_v61 }
  0xf8   : > { %v561_v14 = vpop.f32.mrf.mxu0  ;;  %2607 = vmatmul.mubr.msk.bf16.gmra.mxu0 %vm443_vm1, %v1098_v6  ;;  %v1123_v6 = vshrl.u32 %v2766_v32, 16 }
  0xf9   : > { %v3121_v15 = vadd.f32 %v770_v60, %v561_v14  ;;  %v778_v16 = vpop.f32.mrf.mxu1  ;;  %2681 = vmatmul.mubr.msk.bf16.gmra.mxu1 %vm443_vm1, %v1433_v10  ;;  %2610 = vmatprep.mubr.msk.bf16.mxu0 %vm2794_vm0, %v2793_v1  ;;  %v2768_v10 = vld [vmem:[%s2848_s20 + $0x90] ss:$0 sps:$4 sm:$0x11]  }
  0xfa   : > { %v2440_v19 = vpop.f32.mrf.mxu0  ;;  %2684 = vmatprep.mubr.msk.bf16.mxu1 %vm2794_vm0, %v2793_v1  ;;  %v1125_v17 = vor.u32 %v1123_v6, %v1121_v59  ;;  %v1440_v20 = vrot.slane %v2768_v10, 1 }
  0xfb   : > { %v2514_v21 = vpop.f32.mrf.mxu1 }
  0xfc   : > { %v564_v23 = vpop.f32.mrf.mxu0  ;;  %v1130_v27 = vsel %vm296_vm2, %v1125_v17, %v1129_v18  ;;  %v1441_v32 = vsel %vm1406_vm3, %v1438_v61, %v1440_v20 }
  0xfd   : > { %v3128_v24 = vadd.f32 %v773_v5, %v564_v23  ;;  %v781_v25 = vpop.f32.mrf.mxu1  ;;  %v1122_v5 = vsel %vm296_vm2, %v1117_v57, %v1121_v59 }
  0xfe   : > { %v2441_v29 = vpop.f32.mrf.mxu0 }
  0xff   : > { %v2515_v33 = vpop.f32.mrf.mxu1  ;;  %v1135_v29 = vshll.u32 %v2768_v10, 16 }
 0x100   : > { %v569_v34 = vpop.f32.mrf.mxu0  ;;  %2611 = vmatmul.mubr.msk.bf16.gmra.mxu0 %vm443_vm1, %v1106_v26 }
 0x101   : > { %v3134_v35 = vadd.f32 %v778_v16, %v569_v34  ;;  %v786_v36 = vpop.f32.mrf.mxu1  ;;  %2685 = vmatmul.mubr.msk.bf16.gmra.mxu1 %vm443_vm1, %v1435_v31  ;;  %2614 = vmatprep.mubr.msk.bf16.mxu0 %vm2794_vm0, %v2793_v1 }
 0x102   : > { %v2444_v39 = vpop.f32.mrf.mxu0  ;;  %2688 = vmatprep.mubr.msk.bf16.mxu1 %vm2794_vm0, %v2793_v1 }
 0x103   : > { %v2518_v42 = vpop.f32.mrf.mxu1  ;;  %v1137_v39 = vrot.slane %v1135_v29, 1 }
 0x104   : > { %v572_v43 = vpop.f32.mrf.mxu0 }
 0x105   : > { %v3141_v44 = vadd.f32 %v781_v25, %v572_v43  ;;  %v789_v45 = vpop.f32.mrf.mxu1  ;;  %v1138_v47 = vsel %vm296_vm2, %v1133_v38, %v1137_v39 }
 0x106   : > { %v2445_v50 = vpop.f32.mrf.mxu0 }
 0x107   : > { %v2519_v53 = vpop.f32.mrf.mxu1 }
 0x108   : > { %v577_v54 = vpop.f32.mrf.mxu0  ;;  %2615 = vmatmul.mubr.msk.bf16.gmra.mxu0 %vm443_vm1, %v1114_v46 }
 0x109   : > { %v3147_v55 = vadd.f32 %v786_v36, %v577_v54  ;;  %v794_v56 = vpop.f32.mrf.mxu1  ;;  %2689 = vmatmul.mubr.msk.bf16.gmra.mxu1 %vm443_vm1, %v1437_v51  ;;  %2618 = vmatprep.mubr.msk.bf16.mxu0 %vm2794_vm0, %v2793_v1 }
 0x10a   : > { %v2448_v60 = vpop.f32.mrf.mxu0  ;;  %2692 = vmatprep.mubr.msk.bf16.mxu1 %vm2794_vm0, %v2793_v1 }
 0x10b   : > { %v2522_v62 = vpop.f32.mrf.mxu1 }
 0x10c   : > { %v580_v63 = vpop.f32.mrf.mxu0 }
 0x10d   : > { %v3154_v0 = vadd.f32 %v789_v45, %v580_v63  ;;  %v797_v2 = vpop.f32.mrf.mxu1 }
 0x10e   : > { %v2449_v8 = vpop.f32.mrf.mxu0 }
 0x10f   : > { %v2523_v11 = vpop.f32.mrf.mxu1 }
 0x110   : > { %v585_v13 = vpop.f32.mrf.mxu0  ;;  %2619 = vmatmul.mubr.msk.bf16.gmra.mxu0 %vm443_vm1, %v1122_v5 }
 0x111   : > { %v3160_v14 = vadd.f32 %v794_v56, %v585_v13  ;;  %v802_v16 = vpop.f32.mrf.mxu1  ;;  %2693 = vmatmul.mubr.msk.bf16.gmra.mxu1 %vm443_vm1, %v1439_v9  ;;  %2622 = vmatprep.mubr.msk.bf16.mxu0 %vm2794_vm0, %v2793_v1 }
 0x112   : > { %v2452_v19 = vpop.f32.mrf.mxu0  ;;  %2696 = vmatprep.mubr.msk.bf16.mxu1 %vm2794_vm0, %v2793_v1 }
 0x113   : > { %v2526_v21 = vpop.f32.mrf.mxu1 }
 0x114   : > { %v588_v23 = vpop.f32.mrf.mxu0 }
 0x115   : > { %v3167_v25 = vadd.f32 %v797_v2, %v588_v23  ;;  %v805_v26 = vpop.f32.mrf.mxu1 }
 0x116   : > { %v2453_v31 = vpop.f32.mrf.mxu0 }
 0x117   : > { %v2527_v33 = vpop.f32.mrf.mxu1 }
 0x118   : > { %v593_v34 = vpop.f32.mrf.mxu0  ;;  %2623 = vmatmul.mubr.msk.bf16.gmra.mxu0 %vm443_vm1, %v1130_v27 }
 0x119   : > { %v3172_v36 = vadd.f32 %v802_v16, %v593_v34  ;;  %v810_v37 = vpop.f32.mrf.mxu1  ;;  %2697 = vmatmul.mubr.msk.bf16.gmra.mxu1 %vm443_vm1, %v1441_v32  ;;  %2626 = vmatprep.mubr.msk.bf16.mxu0 %vm2794_vm0, %v2793_v1 }
 0x11a   : > { %v2456_v41 = vpop.f32.mrf.mxu0 }
 0x11b   : > { %v2530_v42 = vpop.f32.mrf.mxu1 }
 0x11c   : > { %v596_v43 = vpop.f32.mrf.mxu0 }
 0x11d   : > { %v3177_v45 = vadd.f32 %v805_v26, %v596_v43  ;;  %v813_v46 = vpop.f32.mrf.mxu1 }
 0x11e   : > { %v2457_v49 = vpop.f32.mrf.mxu0 }
 0x11f   : > { %v2531_v50 = vpop.f32.mrf.mxu1 }
 0x120   : > { %v601_v51 = vpop.f32.mrf.mxu0  ;;  %2627 = vmatmul.mubr.msk.bf16.gmra.mxu0 %vm443_vm1, %v1138_v47 }
 0x121   : > { %v3181_v52 = vadd.f32 %v810_v37, %v601_v51  ;;  %v818_v53 = vpop.f32.mrf.mxu1 }
 0x122   : > { %v2460_v54 = vpop.f32.mrf.mxu0 }
 0x123   : > { %v2534_v1 = vpop.f32.mrf.mxu1 }
 0x124   : > { %v604_v56 = vpop.f32.mrf.mxu0 }
 0x125   : > { %v3183_v57 = vadd.f32 %v813_v46, %v604_v56  ;;  %v821_v59 = vpop.f32.mrf.mxu1 }
 0x126   : > { %v2461_v60 = vpop.f32.mrf.mxu0 }
 0x127   : > { %v2535_v61 = vpop.f32.mrf.mxu1 }
 0x128   : > { %v609_v62 = vpop.f32.mrf.mxu0 }
 0x129   : > { %v3185_v63 = vadd.f32 %v818_v53, %v609_v62  ;;  %v826_v2 = vpop.f32.mrf.mxu1 }
 0x12a   : > { %v2464_v5 = vpop.f32.mrf.mxu0 }
 0x12b   : > { %v2538_v6 = vpop.f32.mrf.mxu1 }
 0x12c   : > { %v612_v7 = vpop.f32.mrf.mxu0 }
 0x12d   : > { %v3187_v8 = vadd.f32 %v821_v59, %v612_v7  ;;  %v829_v9 = vpop.f32.mrf.mxu1 }
 0x12e   : > { %v2465_v10 = vpop.f32.mrf.mxu0 }
 0x12f   : > { %v2539_v11 = vpop.f32.mrf.mxu1 }
 0x130   : > { %v617_v13 = vpop.f32.mrf.mxu0 }
 0x131   : > { %v3189_v16 = vadd.f32 %v826_v2, %v617_v13  ;;  %v834_v17 = vpop.f32.mrf.mxu1 }
 0x132   : > { %v2468_v18 = vpop.f32.mrf.mxu0 }
 0x133   : > { %v2542_v19 = vpop.f32.mrf.mxu1 }
 0x134   : > { %v620_v20 = vpop.f32.mrf.mxu0 }
 0x135   : > { %v3191_v21 = vadd.f32 %v829_v9, %v620_v20  ;;  %v837_v23 = vpop.f32.mrf.mxu1 }
 0x136   : > { %v2469_v26 = vpop.f32.mrf.mxu0 }
 0x137   : > { %v2543_v27 = vpop.f32.mrf.mxu1 }
 0x138   : > { %v625_v28 = vpop.f32.mrf.mxu0 }
 0x139   : > { %v3193_v29 = vadd.f32 %v834_v17, %v625_v28  ;;  %v842_v31 = vpop.f32.mrf.mxu1 }
 0x13a   : > { %v2472_v32 = vpop.f32.mrf.mxu0 }
 0x13b   : > { %v2546_v33 = vpop.f32.mrf.mxu1 }
 0x13c   : > { %v628_v34 = vpop.f32.mrf.mxu0 }
 0x13d   : > { %v3195_v37 = vadd.f32 %v837_v23, %v628_v34  ;;  %v845_v38 = vpop.f32.mrf.mxu1 }
 0x13e   : > { %v2473_v39 = vpop.f32.mrf.mxu0 }
 0x13f   : > { %v2547_v41 = vpop.f32.mrf.mxu1 }
 0x140   : > { %v633_v42 = vpop.f32.mrf.mxu0 }
 0x141   : > { %v3197_v43 = vadd.f32 %v842_v31, %v633_v42  ;;  %v850_v46 = vpop.f32.mrf.mxu1 }
 0x142   : > { %v2476_v47 = vpop.f32.mrf.mxu0 }
 0x143   : > { %v2550_v49 = vpop.f32.mrf.mxu1 }
 0x144   : > { %v636_v50 = vpop.f32.mrf.mxu0 }
 0x145   : > { %v3199_v51 = vadd.f32 %v845_v38, %v636_v50  ;;  %v853_v53 = vpop.f32.mrf.mxu1 }
 0x146   : > { %v2477_v54 = vpop.f32.mrf.mxu0 }
 0x147   : > { %v2551_v1 = vpop.f32.mrf.mxu1 }
 0x148   : > { %v641_v56 = vpop.f32.mrf.mxu0 }
 0x149   : > { %v3201_v59 = vadd.f32 %v850_v46, %v641_v56  ;;  %v858_v60 = vpop.f32.mrf.mxu1 }
 0x14a   : > { %v2480_v61 = vpop.f32.mrf.mxu0 }
 0x14b   : > { %v2554_v62 = vpop.f32.mrf.mxu1 }
 0x14c   : > { %v644_v2 = vpop.f32.mrf.mxu0 }
 0x14d   : > { %v3203_v5 = vadd.f32 %v853_v53, %v644_v2  ;;  %v861_v6 = vpop.f32.mrf.mxu1 }
 0x14e   : > { %v2481_v7 = vpop.f32.mrf.mxu0 }
 0x14f   : > { %v2555_v9 = vpop.f32.mrf.mxu1 }
 0x150   : > { %v649_v10 = vpop.f32.mrf.mxu0 }
 0x151   : > { %v3205_v11 = vadd.f32 %v858_v60, %v649_v10  ;;  %v866_v13 = vpop.f32.mrf.mxu1 }
 0x152   : > { %v2484_v17 = vpop.f32.mrf.mxu0 }
 0x153   : > { %v2558_v18 = vpop.f32.mrf.mxu1 }
 0x154   : > { %v652_v19 = vpop.f32.mrf.mxu0 }
 0x155   : > { %v3207_v20 = vadd.f32 %v861_v6, %v652_v19  ;;  %v869_v23 = vpop.f32.mrf.mxu1 }
 0x156   : > { %v2485_v26 = vpop.f32.mrf.mxu0 }
 0x157   : > { %v2559_v27 = vpop.f32.mrf.mxu1 }
 0x158   : > { %v657_v28 = vpop.f32.mrf.mxu0 }
 0x159   : > { %v3209_v31 = vadd.f32 %v866_v13, %v657_v28  ;;  %v1533_v32 = vpop.f32.mrf.mxu1 }
 0x15a   : > { %v2488_v33 = vpop.f32.mrf.mxu0 }
 0x15b   : > { %v2634_v34 = vpop.f32.mrf.mxu1 }
 0x15c   : > { %v660_v38 = vpop.f32.mrf.mxu0 }
 0x15d   : > { %v3211_v39 = vadd.f32 %v869_v23, %v660_v38  ;;  %v1536_v41 = vpop.f32.mrf.mxu1 }
 0x15e   : > { %v2489_v42 = vpop.f32.mrf.mxu0 }
 0x15f   : > { %v2635_v46 = vpop.f32.mrf.mxu1 }
 0x160   : > { %v1230_v47 = vpop.f32.mrf.mxu0 }
 0x161   : > { %v1365_v49 = vadd.f32 %v1230_v47, %v3069_v4  ;;  %v1541_v50 = vpop.f32.mrf.mxu1 }
 0x162   : > { %v2564_v53 = vpop.f32.mrf.mxu0 }
 0x163   : > { %v1668_v54 = vadd.f32 %v1533_v32, %v1365_v49  ;;  %v2638_v1 = vpop.f32.mrf.mxu1 }
 0x164   : > { %v1233_v56 = vpop.f32.mrf.mxu0 }
 0x165   : > { %v1366_v60 = vadd.f32 %v1233_v56, %v3076_v12  ;;  %v1544_v61 = vpop.f32.mrf.mxu1  ;;  %v1736_v2 = vmul.f32 0.2, %v1668_v54  ;;  %vm1702_vm4 = vcmp.ge.f32.partialorder %v1668_v54, 0.0 }
 0x166   : > { %v2565_v62 = vpop.f32.mrf.mxu0 }
 0x167   : > { %v1669_v6 = vadd.f32 %v1536_v41, %v1366_v60  ;;  %v2639_v7 = vpop.f32.mrf.mxu1  ;;  %v1770_v18 = vsel %vm1702_vm4, %v1668_v54, %v1736_v2 }
 0x168   : > { %v1238_v9 = vpop.f32.mrf.mxu0 }
 0x169   : > { %vm1703_vm5 = vcmp.ge.f32.partialorder %v1669_v6, 0.0  ;;  %v1737_v10 = vmul.f32 0.2, %v1669_v6  ;;  %v1367_v13 = vadd.f32 %v1238_v9, %v3082_v22  ;;  %v1549_v4 = vpop.f32.mrf.mxu1 }
 0x16a   : > { %v2568_v17 = vpop.f32.mrf.mxu0 }
 0x16b   : > { %v1771_v12 = vsel %vm1703_vm5, %v1669_v6, %v1737_v10  ;;  %v1670_v19 = vadd.f32 %v1541_v50, %v1367_v13  ;;  %v2642_v23 = vpop.f32.mrf.mxu1 }
 0x16c   : > { %v2250_v26 = vpack.c.bf16 %v1771_v12, %v1770_v18  ;;  %v1241_v27 = vpop.f32.mrf.mxu0 }
 0x16d   : > { %v1368_v28 = vadd.f32 %v1241_v27, %v3089_v30  ;;  %v1552_v32 = vpop.f32.mrf.mxu1  ;;  %v1738_v22 = vmul.f32 0.2, %v1670_v19  ;;  %vm1704_vm6 = vcmp.ge.f32.partialorder %v1670_v19, 0.0 }
 0x16e   : > { %2251 = vst [vmem:[%s3220_s28] sm:$0xff] %v2250_v26   ;;  %v2569_v33 = vpop.f32.mrf.mxu0 }
 0x16f   : > { %v1671_v34 = vadd.f32 %v1544_v61, %v1368_v28  ;;  %v2643_v38 = vpop.f32.mrf.mxu1  ;;  %v1772_v50 = vsel %vm1704_vm6, %v1670_v19, %v1738_v22 }
 0x170   : > { %v1246_v41 = vpop.f32.mrf.mxu0 }
 0x171   : > { %vm1705_vm7 = vcmp.ge.f32.partialorder %v1671_v34, 0.0  ;;  %v1739_v42 = vmul.f32 0.2, %v1671_v34  ;;  %v1369_v46 = vadd.f32 %v1246_v41, %v3095_v40  ;;  %v1557_v47 = vpop.f32.mrf.mxu1 }
 0x172   : > { %v2572_v49 = vpop.f32.mrf.mxu0 }
 0x173   : > { %v1773_v53 = vsel %vm1705_vm7, %v1671_v34, %v1739_v42  ;;  %v1672_v54 = vadd.f32 %v1549_v4, %v1369_v46  ;;  %v2646_v1 = vpop.f32.mrf.mxu1 }
 0x174   : > { %v2255_v30 = vpack.c.bf16 %v1773_v53, %v1772_v50  ;;  %v1249_v56 = vpop.f32.mrf.mxu0 }
 0x175   : > { %v1370_v60 = vadd.f32 %v1249_v56, %v3102_v48  ;;  %v1560_v62 = vpop.f32.mrf.mxu1  ;;  %v1740_v2 = vmul.f32 0.2, %v1672_v54  ;;  %vm1706_vm8 = vcmp.ge.f32.partialorder %v1672_v54, 0.0 }
 0x176   : > { %2332 = vst [vmem:[%s3220_s28 + $0x8] sm:$0xff] %v2255_v30   ;;  %v2573_v61 = vpop.f32.mrf.mxu0 }
 0x177   : > { %v1673_v6 = vadd.f32 %v1552_v32, %v1370_v60  ;;  %v2647_v7 = vpop.f32.mrf.mxu1  ;;  %v1774_v17 = vsel %vm1706_vm8, %v1672_v54, %v1740_v2 }
 0x178   : > { %v1254_v9 = vpop.f32.mrf.mxu0 }
 0x179   : > { %vm1707_vm9 = vcmp.ge.f32.partialorder %v1673_v6, 0.0  ;;  %v1741_v40 = vmul.f32 0.2, %v1673_v6  ;;  %v1371_v10 = vadd.f32 %v1254_v9, %v3108_v58  ;;  %v1565_v13 = vpop.f32.mrf.mxu1 }
 0x17a   : > { %v2576_v4 = vpop.f32.mrf.mxu0 }
 0x17b   : > { %v1775_v18 = vsel %vm1707_vm9, %v1673_v6, %v1741_v40  ;;  %v1674_v12 = vadd.f32 %v1557_v47, %v1371_v10  ;;  %v2650_v19 = vpop.f32.mrf.mxu1 }
 0x17c   : > { %v2260_v48 = vpack.c.bf16 %v1775_v18, %v1774_v17  ;;  %v1257_v23 = vpop.f32.mrf.mxu0 }
 0x17d   : > { %v1372_v26 = vadd.f32 %v1257_v23, %v3115_v3  ;;  %v1568_v27 = vpop.f32.mrf.mxu1  ;;  %v1742_v32 = vmul.f32 0.2, %v1674_v12  ;;  %vm1708_vm10 = vcmp.ge.f32.partialorder %v1674_v12, 0.0 }
 0x17e   : > { %2333 = vst [vmem:[%s3220_s28 + $0x10] sm:$0xff] %v2260_v48   ;;  %v2577_v28 = vpop.f32.mrf.mxu0 }
 0x17f   : > { %v1675_v33 = vadd.f32 %v1560_v62, %v1372_v26  ;;  %v2651_v22 = vpop.f32.mrf.mxu1  ;;  %v1776_v46 = vsel %vm1708_vm10, %v1674_v12, %v1742_v32 }
 0x180   : > { %v1262_v34 = vpop.f32.mrf.mxu0 }
 0x181   : > { %vm1709_vm11 = vcmp.ge.f32.partialorder %v1675_v33, 0.0  ;;  %v1743_v58 = vmul.f32 0.2, %v1675_v33  ;;  %v1373_v38 = vadd.f32 %v1262_v34, %v3121_v15  ;;  %v1573_v41 = vpop.f32.mrf.mxu1 }
 0x182   : > { %v2580_v42 = vpop.f32.mrf.mxu0 }
 0x183   : > { %v1777_v47 = vsel %vm1709_vm11, %v1675_v33, %v1743_v58  ;;  %v1676_v49 = vadd.f32 %v1565_v13, %v1373_v38  ;;  %v2654_v50 = vpop.f32.mrf.mxu1 }
 0x184   : > { %v2265_v3 = vpack.c.bf16 %v1777_v47, %v1776_v46  ;;  %v1265_v53 = vpop.f32.mrf.mxu0 }
 0x185   : > { %v1374_v54 = vadd.f32 %v1265_v53, %v3128_v24  ;;  %v1576_v1 = vpop.f32.mrf.mxu1  ;;  %v1744_v56 = vmul.f32 0.2, %v1676_v49  ;;  %vm1710_vm12 = vcmp.ge.f32.partialorder %v1676_v49, 0.0 }
 0x186   : > { %2334 = vst [vmem:[%s3220_s28 + $0x18] sm:$0xff] %v2265_v3   ;;  %v2581_v30 = vpop.f32.mrf.mxu0 }
 0x187   : > { %v1677_v60 = vadd.f32 %v1568_v27, %v1374_v54  ;;  %v2655_v62 = vpop.f32.mrf.mxu1  ;;  %v1778_v9 = vsel %vm1710_vm12, %v1676_v49, %v1744_v56 }
 0x188   : > { %v1270_v61 = vpop.f32.mrf.mxu0 }
 0x189   : > { %vm1711_vm13 = vcmp.ge.f32.partialorder %v1677_v60, 0.0  ;;  %v1745_v15 = vmul.f32 0.2, %v1677_v60  ;;  %v1375_v2 = vadd.f32 %v1270_v61, %v3134_v35  ;;  %v1581_v6 = vpop.f32.mrf.mxu1 }
 0x18a   : > { %v2584_v7 = vpop.f32.mrf.mxu0 }
 0x18b   : > { %v1779_v40 = vsel %vm1711_vm13, %v1677_v60, %v1745_v15  ;;  %v1678_v10 = vadd.f32 %v1573_v41, %v1375_v2  ;;  %v2658_v13 = vpop.f32.mrf.mxu1 }
 0x18c   : > { %v2270_v24 = vpack.c.bf16 %v1779_v40, %v1778_v9  ;;  %v1273_v4 = vpop.f32.mrf.mxu0 }
 0x18d   : > { %v1376_v17 = vadd.f32 %v1273_v4, %v3141_v44  ;;  %v1584_v18 = vpop.f32.mrf.mxu1  ;;  %v1746_v19 = vmul.f32 0.2, %v1678_v10  ;;  %vm1712_vm14 = vcmp.ge.f32.partialorder %v1678_v10, 0.0 }
 0x18e   : > { %2335 = vst [vmem:[%s3220_s28 + $0x20] sm:$0xff] %v2270_v24   ;;  %v2585_v12 = vpop.f32.mrf.mxu0 }
 0x18f   : > { %v1679_v48 = vadd.f32 %v1576_v1, %v1376_v17  ;;  %v2659_v23 = vpop.f32.mrf.mxu1  ;;  %v1780_v33 = vsel %vm1712_vm14, %v1678_v10, %v1746_v19 }
 0x190   : > { %v1278_v26 = vpop.f32.mrf.mxu0 }
 0x191   : > { %vm1713_vm15 = vcmp.ge.f32.partialorder %v1679_v48, 0.0  ;;  %v1747_v35 = vmul.f32 0.2, %v1679_v48  ;;  %v1377_v27 = vadd.f32 %v1278_v26, %v3147_v55  ;;  %v1589_v28 = vpop.f32.mrf.mxu1 }
 0x192   : > { %v2588_v32 = vpop.f32.mrf.mxu0 }
 0x193   : > { %v1781_v22 = vsel %vm1713_vm15, %v1679_v48, %v1747_v35  ;;  %v1680_v34 = vadd.f32 %v1581_v6, %v1377_v27  ;;  %v2662_v58 = vpop.f32.mrf.mxu1 }
 0x194   : > { %v2275_v44 = vpack.c.bf16 %v1781_v22, %v1780_v33  ;;  %v1281_v38 = vpop.f32.mrf.mxu0 }
 0x195   : > { %v1378_v41 = vadd.f32 %v1281_v38, %v3154_v0  ;;  %v1592_v42 = vpop.f32.mrf.mxu1  ;;  %v1748_v47 = vmul.f32 0.2, %v1680_v34  ;;  %vm1714_vm0 = vcmp.ge.f32.partialorder %v1680_v34, 0.0 }
 0x196   : > { %2336 = vst [vmem:[%s3220_s28 + $0x28] sm:$0xff] %v2275_v44   ;;  %v2589_v46 = vpop.f32.mrf.mxu0 }
 0x197   : > { %v1681_v49 = vadd.f32 %v1584_v18, %v1378_v41  ;;  %v2663_v50 = vpop.f32.mrf.mxu1  ;;  %v1782_v30 = vsel %vm1714_vm0, %v1680_v34, %v1748_v47 }
 0x198   : > { %v1286_v3 = vpop.f32.mrf.mxu0 }
 0x199   : > { %vm1715_vm1 = vcmp.ge.f32.partialorder %v1681_v49, 0.0  ;;  %v1749_v55 = vmul.f32 0.2, %v1681_v49  ;;  %v1379_v53 = vadd.f32 %v1286_v3, %v3160_v14  ;;  %v1597_v54 = vpop.f32.mrf.mxu1 }
 0x19a   : > { %v2592_v1 = vpop.f32.mrf.mxu0 }
 0x19b   : > { %v1783_v56 = vsel %vm1715_vm1, %v1681_v49, %v1749_v55  ;;  %v1682_v60 = vadd.f32 %v1589_v28, %v1379_v53  ;;  %v2666_v62 = vpop.f32.mrf.mxu1 }
 0x19c   : > { %v2280_v0 = vpack.c.bf16 %v1783_v56, %v1782_v30  ;;  %v1289_v61 = vpop.f32.mrf.mxu0 }
 0x19d   : > { %v1380_v15 = vadd.f32 %v1289_v61, %v3167_v25  ;;  %v1600_v2 = vpop.f32.mrf.mxu1  ;;  %v1750_v7 = vmul.f32 0.2, %v1682_v60  ;;  %vm1716_vm2 = vcmp.ge.f32.partialorder %v1682_v60, 0.0 }
 0x19e   : > { %2337 = vst [vmem:[%s3220_s28 + $0x30] sm:$0xff] %v2280_v0   ;;  %v2593_v6 = vpop.f32.mrf.mxu0 }
 0x19f   : > { %v1683_v9 = vadd.f32 %v1592_v42, %v1380_v15  ;;  %v2667_v40 = vpop.f32.mrf.mxu1  ;;  %v1784_v17 = vsel %vm1716_vm2, %v1682_v60, %v1750_v7 }
 0x1a0   : > { %v1294_v10 = vpop.f32.mrf.mxu0 }
 0x1a1   : > { %vm1717_vm3 = vcmp.ge.f32.partialorder %v1683_v9, 0.0  ;;  %v1751_v14 = vmul.f32 0.2, %v1683_v9  ;;  %v1381_v13 = vadd.f32 %v1294_v10, %v3172_v36  ;;  %v1605_v24 = vpop.f32.mrf.mxu1 }
 0x1a2   : > { %v2596_v4 = vpop.f32.mrf.mxu0 }
 0x1a3   : > { %v1785_v18 = vsel %vm1717_vm3, %v1683_v9, %v1751_v14  ;;  %v1684_v12 = vadd.f32 %v1597_v54, %v1381_v13  ;;  %v2670_v19 = vpop.f32.mrf.mxu1 }
 0x1a4   : > { %v2285_v25 = vpack.c.bf16 %v1785_v18, %v1784_v17  ;;  %v1297_v48 = vpop.f32.mrf.mxu0 }
 0x1a5   : > { %v1382_v23 = vadd.f32 %v1297_v48, %v3177_v45  ;;  %v1608_v26 = vpop.f32.mrf.mxu1  ;;  %v1752_v27 = vmul.f32 0.2, %v1684_v12  ;;  %vm1718_vm4 = vcmp.ge.f32.partialorder %v1684_v12, 0.0 }
 0x1a6   : > { %2338 = vst [vmem:[%s3220_s28 + $0x38] sm:$0xff] %v2285_v25   ;;  %v2597_v35 = vpop.f32.mrf.mxu0 }
 0x1a7   : > { %v1685_v28 = vadd.f32 %v1600_v2, %v1382_v23  ;;  %v2671_v32 = vpop.f32.mrf.mxu1  ;;  %v1786_v44 = vsel %vm1718_vm4, %v1684_v12, %v1752_v27 }
 0x1a8   : > { %v1302_v33 = vpop.f32.mrf.mxu0 }
 0x1a9   : > { %vm1719_vm5 = vcmp.ge.f32.partialorder %v1685_v28, 0.0  ;;  %v1753_v36 = vmul.f32 0.2, %v1685_v28  ;;  %v1383_v22 = vadd.f32 %v1302_v33, %v3181_v52  ;;  %v1613_v34 = vpop.f32.mrf.mxu1 }
 0x1aa   : > { %v2600_v58 = vpop.f32.mrf.mxu0 }
 0x1ab   : > { %v1787_v38 = vsel %vm1719_vm5, %v1685_v28, %v1753_v36  ;;  %v1686_v41 = vadd.f32 %v1605_v24, %v1383_v22  ;;  %v2674_v42 = vpop.f32.mrf.mxu1 }
 0x1ac   : > { %v2290_v45 = vpack.c.bf16 %v1787_v38, %v1786_v44  ;;  %v1305_v46 = vpop.f32.mrf.mxu0 }
 0x1ad   : > { %v1384_v47 = vadd.f32 %v1305_v46, %v3183_v57  ;;  %v1616_v49 = vpop.f32.mrf.mxu1  ;;  %v1754_v3 = vmul.f32 0.2, %v1686_v41  ;;  %vm1720_vm6 = vcmp.ge.f32.partialorder %v1686_v41, 0.0 }
 0x1ae   : > { %2339 = vst [vmem:[%s3220_s28 + $0x40] sm:$0xff] %v2290_v45   ;;  %v2601_v50 = vpop.f32.mrf.mxu0 }
 0x1af   : > { %v1687_v55 = vadd.f32 %v1608_v26, %v1384_v47  ;;  %v2675_v53 = vpop.f32.mrf.mxu1  ;;  %v1788_v60 = vsel %vm1720_vm6, %v1686_v41, %v1754_v3 }
 0x1b0   : > { %v1310_v54 = vpop.f32.mrf.mxu0 }
 0x1b1   : > { %vm1721_vm7 = vcmp.ge.f32.partialorder %v1687_v55, 0.0  ;;  %v1755_v52 = vmul.f32 0.2, %v1687_v55  ;;  %v1385_v1 = vadd.f32 %v1310_v54, %v3185_v63  ;;  %v1621_v30 = vpop.f32.mrf.mxu1 }
 0x1b2   : > { %v2604_v56 = vpop.f32.mrf.mxu0 }
 0x1b3   : > { %v1789_v62 = vsel %vm1721_vm7, %v1687_v55, %v1755_v52  ;;  %v1688_v0 = vadd.f32 %v1613_v34, %v1385_v1  ;;  %v2678_v61 = vpop.f32.mrf.mxu1 }
 0x1b4   : > { %v2295_v57 = vpack.c.bf16 %v1789_v62, %v1788_v60  ;;  %v1313_v15 = vpop.f32.mrf.mxu0 }
 0x1b5   : > { %v1386_v2 = vadd.f32 %v1313_v15, %v3187_v8  ;;  %v1624_v6 = vpop.f32.mrf.mxu1  ;;  %v1756_v9 = vmul.f32 0.2, %v1688_v0  ;;  %vm1722_vm8 = vcmp.ge.f32.partialorder %v1688_v0, 0.0 }
 0x1b6   : > { %2340 = vst [vmem:[%s3220_s28 + $0x48] sm:$0xff] %v2295_v57   ;;  %v2605_v7 = vpop.f32.mrf.mxu0 }
 0x1b7   : > { %v1689_v40 = vadd.f32 %v1616_v49, %v1386_v2  ;;  %v2679_v10 = vpop.f32.mrf.mxu1  ;;  %v1790_v17 = vsel %vm1722_vm8, %v1688_v0, %v1756_v9 }
 0x1b8   : > { %v1318_v14 = vpop.f32.mrf.mxu0 }
 0x1b9   : > { %vm1723_vm9 = vcmp.ge.f32.partialorder %v1689_v40, 0.0  ;;  %v1757_v63 = vmul.f32 0.2, %v1689_v40  ;;  %v1387_v13 = vadd.f32 %v1318_v14, %v3189_v16  ;;  %v1629_v24 = vpop.f32.mrf.mxu1 }
 0x1ba   : > { %v2608_v4 = vpop.f32.mrf.mxu0 }
 0x1bb   : > { %v1791_v18 = vsel %vm1723_vm9, %v1689_v40, %v1757_v63  ;;  %v1690_v12 = vadd.f32 %v1621_v30, %v1387_v13  ;;  %v2682_v19 = vpop.f32.mrf.mxu1 }
 0x1bc   : > { %v2300_v8 = vpack.c.bf16 %v1791_v18, %v1790_v17  ;;  %v1321_v25 = vpop.f32.mrf.mxu0 }
 0x1bd   : > { %v1388_v48 = vadd.f32 %v1321_v25, %v3191_v21  ;;  %v1632_v23 = vpop.f32.mrf.mxu1  ;;  %v1758_v35 = vmul.f32 0.2, %v1690_v12  ;;  %vm1724_vm10 = vcmp.ge.f32.partialorder %v1690_v12, 0.0 }
 0x1be   : > { %2341 = vst [vmem:[%s3220_s28 + $0x50] sm:$0xff] %v2300_v8   ;;  %v2609_v26 = vpop.f32.mrf.mxu0 }
 0x1bf   : > { %v1691_v27 = vadd.f32 %v1624_v6, %v1388_v48  ;;  %v2683_v28 = vpop.f32.mrf.mxu1  ;;  %v1792_v34 = vsel %vm1724_vm10, %v1690_v12, %v1758_v35 }
 0x1c0   : > { %v1326_v32 = vpop.f32.mrf.mxu0 }
 0x1c1   : > { %vm1725_vm11 = vcmp.ge.f32.partialorder %v1691_v27, 0.0  ;;  %v1759_v16 = vmul.f32 0.2, %v1691_v27  ;;  %v1389_v33 = vadd.f32 %v1326_v32, %v3193_v29  ;;  %v1637_v36 = vpop.f32.mrf.mxu1 }
 0x1c2   : > { %v2612_v22 = vpop.f32.mrf.mxu0 }
 0x1c3   : > { %v1793_v58 = vsel %vm1725_vm11, %v1691_v27, %v1759_v16  ;;  %v1692_v44 = vadd.f32 %v1629_v24, %v1389_v33  ;;  %v2686_v38 = vpop.f32.mrf.mxu1 }
 0x1c4   : > { %v2305_v21 = vpack.c.bf16 %v1793_v58, %v1792_v34  ;;  %v1329_v41 = vpop.f32.mrf.mxu0 }
 0x1c5   : > { %v1390_v42 = vadd.f32 %v1329_v41, %v3195_v37  ;;  %v1640_v45 = vpop.f32.mrf.mxu1  ;;  %v1760_v47 = vmul.f32 0.2, %v1692_v44  ;;  %vm1726_vm12 = vcmp.ge.f32.partialorder %v1692_v44, 0.0 }
 0x1c6   : > { %2342 = vst [vmem:[%s3220_s28 + $0x58] sm:$0xff] %v2305_v21   ;;  %v2613_v46 = vpop.f32.mrf.mxu0 }
 0x1c7   : > { %v1693_v49 = vadd.f32 %v1632_v23, %v1390_v42  ;;  %v2687_v50 = vpop.f32.mrf.mxu1  ;;  %v1794_v52 = vsel %vm1726_vm12, %v1692_v44, %v1760_v47 }
 0x1c8   : > { %v1334_v3 = vpop.f32.mrf.mxu0 }
 0x1c9   : > { %vm1727_vm13 = vcmp.ge.f32.partialorder %v1693_v49, 0.0  ;;  %v1761_v29 = vmul.f32 0.2, %v1693_v49  ;;  %v1391_v55 = vadd.f32 %v1334_v3, %v3197_v43  ;;  %v1645_v53 = vpop.f32.mrf.mxu1 }
 0x1ca   : > { %v2616_v54 = vpop.f32.mrf.mxu0 }
 0x1cb   : > { %v1795_v1 = vsel %vm1727_vm13, %v1693_v49, %v1761_v29  ;;  %v1694_v30 = vadd.f32 %v1637_v36, %v1391_v55  ;;  %v2690_v56 = vpop.f32.mrf.mxu1 }
 0x1cc   : > { %v2310_v37 = vpack.c.bf16 %v1795_v1, %v1794_v52  ;;  %v1337_v60 = vpop.f32.mrf.mxu0 }
 0x1cd   : > { %v1392_v62 = vadd.f32 %v1337_v60, %v3199_v51  ;;  %v1648_v0 = vpop.f32.mrf.mxu1  ;;  %v1762_v57 = vmul.f32 0.2, %v1694_v30  ;;  %vm1728_vm14 = vcmp.ge.f32.partialorder %v1694_v30, 0.0 }
 0x1ce   : > { %2343 = vst [vmem:[%s3220_s28 + $0x60] sm:$0xff] %v2310_v37   ;;  %v2617_v61 = vpop.f32.mrf.mxu0 }
 0x1cf   : > { %v1695_v15 = vadd.f32 %v1640_v45, %v1392_v62  ;;  %v2691_v2 = vpop.f32.mrf.mxu1  ;;  %v1796_v10 = vsel %vm1728_vm14, %v1694_v30, %v1762_v57 }
 0x1d0   : > { %v1342_v6 = vpop.f32.mrf.mxu0 }
 0x1d1   : > { %vm1729_vm15 = vcmp.ge.f32.partialorder %v1695_v15, 0.0  ;;  %v1763_v43 = vmul.f32 0.2, %v1695_v15  ;;  %v1393_v7 = vadd.f32 %v1342_v6, %v3201_v59  ;;  %v1653_v9 = vpop.f32.mrf.mxu1 }
 0x1d2   : > { %v2620_v40 = vpop.f32.mrf.mxu0 }
 0x1d3   : > { %v1797_v14 = vsel %vm1729_vm15, %v1695_v15, %v1763_v43  ;;  %v1696_v63 = vadd.f32 %v1645_v53, %v1393_v7  ;;  %v2694_v13 = vpop.f32.mrf.mxu1 }
 0x1d4   : > { %v2315_v51 = vpack.c.bf16 %v1797_v14, %v1796_v10  ;;  %v1345_v24 = vpop.f32.mrf.mxu0 }
 0x1d5   : > { %v1394_v4 = vadd.f32 %v1345_v24, %v3203_v5  ;;  %v1656_v17 = vpop.f32.mrf.mxu1  ;;  %v1764_v12 = vmul.f32 0.2, %v1696_v63  ;;  %vm1730_vm0 = vcmp.ge.f32.partialorder %v1696_v63, 0.0 }
 0x1d6   : > { %2344 = vst [vmem:[%s3220_s28 + $0x68] sm:$0xff] %v2315_v51   ;;  %v2621_v18 = vpop.f32.mrf.mxu0 }
 0x1d7   : > { %v1697_v19 = vadd.f32 %v1648_v0, %v1394_v4  ;;  %v2695_v8 = vpop.f32.mrf.mxu1  ;;  %v1798_v35 = vsel %vm1730_vm0, %v1696_v63, %v1764_v12 }
 0x1d8   : > { %v1350_v25 = vpop.f32.mrf.mxu0 }
 0x1d9   : > { %vm1731_vm1 = vcmp.ge.f32.partialorder %v1697_v19, 0.0  ;;  %v1765_v59 = vmul.f32 0.2, %v1697_v19  ;;  %v1395_v48 = vadd.f32 %v1350_v25, %v3205_v11  ;;  %v1661_v23 = vpop.f32.mrf.mxu1 }
 0x1da   : > { %v2624_v26 = vpop.f32.mrf.mxu0 }
 0x1db   : > { %v1799_v27 = vsel %vm1731_vm1, %v1697_v19, %v1765_v59  ;;  %v1698_v28 = vadd.f32 %v1653_v9, %v1395_v48  ;;  %v2698_v32 = vpop.f32.mrf.mxu1 }
 0x1dc   : > { %v2320_v5 = vpack.c.bf16 %v1799_v27, %v1798_v35  ;;  %v1353_v16 = vpop.f32.mrf.mxu0 }
 0x1dd   : > { %v1396_v33 = vadd.f32 %v1353_v16, %v3207_v20  ;;  %v1664_v36 = vpop.f32.mrf.mxu1  ;;  %v1766_v34 = vmul.f32 0.2, %v1698_v28  ;;  %vm1732_vm2 = vcmp.ge.f32.partialorder %v1698_v28, 0.0 }
 0x1de   : > { %2345 = vst [vmem:[%s3220_s28 + $0x70] sm:$0xff] %v2320_v5   ;;  %v2625_v22 = vpop.f32.mrf.mxu0 }
 0x1df   : > { %v1699_v58 = vadd.f32 %v1656_v17, %v1396_v33  ;;  %v2699_v44 = vpop.f32.mrf.mxu1  ;;  %v1800_v42 = vsel %vm1732_vm2, %v1698_v28, %v1766_v34 }
 0x1e0   : > { %v1358_v38 = vpop.f32.mrf.mxu0 }
 0x1e1   : > { %vm1733_vm3 = vcmp.ge.f32.partialorder %v1699_v58, 0.0  ;;  %v1767_v11 = vmul.f32 0.2, %v1699_v58  ;;  %v1397_v21 = vadd.f32 %v1358_v38, %v3209_v31 }
 0x1e2   : > { %v2628_v41 = vpop.f32.mrf.mxu0 }
 0x1e3   : > { %v1801_v45 = vsel %vm1733_vm3, %v1699_v58, %v1767_v11  ;;  %v1700_v46 = vadd.f32 %v1661_v23, %v1397_v21 }
 0x1e4   : > { %v2325_v47 = vpack.c.bf16 %v1801_v45, %v1800_v42  ;;  %v1361_v20 = vpop.f32.mrf.mxu0 }
 0x1e5   : > { %v1398_v49 = vadd.f32 %v1361_v20, %v3211_v39  ;;  %v1768_v3 = vmul.f32 0.2, %v1700_v46  ;;  %vm1734_vm4 = vcmp.ge.f32.partialorder %v1700_v46, 0.0 }
 0x1e6   : > { %2346 = vst [vmem:[%s3220_s28 + $0x78] sm:$0xff] %v2325_v47   ;;  %v2629_v50 = vpop.f32.mrf.mxu0 }
 0x1e7   : > { %v1701_v29 = vadd.f32 %v1664_v36, %v1398_v49  ;;  %v1802_v53 = vsel %vm1734_vm4, %v1700_v46, %v1768_v3 }
 0x1e9   : > { %vm1735_vm5 = vcmp.ge.f32.partialorder %v1701_v29, 0.0  ;;  %v1769_v55 = vmul.f32 0.2, %v1701_v29 }
 0x1eb   : > { %v1803_v54 = vsel %vm1735_vm5, %v1701_v29, %v1769_v55 }
 0x1ec   : > { %v2330_v52 = vpack.c.bf16 %v1803_v54, %v1802_v53 }
 0x1ee   : > { %2347 = vst [vmem:[%s3220_s28 + $0x80] sm:$0xff] %v2330_v52  }
 0x1ef PF: > { %s12_s11 = sadd.s32 1, %s2791_s11   ;;  %s3282_s9 = smov %s2787_s10 }
 0x1f0   : > { %p9_p5 = scmp.ge.s32.totalorder %s12_s11, 4   ;;  %s3283_s10 = smov %s3285_s12 }
 0x1f2   :  { %11 = sbr.rel (!%p9_p5) target bundleno = 2 (0x2), region = 61 }

// kernel: patch_image_discriminator_forward.5
= control target key start
LH: loop header
LB: loop body
LE: loop exit
PB: predicated region body
PF: predicated region fallthrough
CT: control target
= control target key end

     0   :  { %s1468_s15 = smov 0   ;;  %s1470_s16 = smov 0   ;;  %s1683_s0 = inlined_call_operand.vmem [shape: bf16[2,88,32], index: 0, kind: input, shape index: {}]   ;;  %s1684_s1 = inlined_call_operand.vmem [shape: bf16[4,32,128], index: 1, kind: input, shape index: {}]   ;;  %s1685_s2 = inlined_call_operand.vmem [shape: f32[72,1], index: 2, kind: input, shape index: {}]   ;;  %s1686_s3 = inlined_call_operand.vmem [shape: bf16[2,72,128], index: 3, kind: output, shape index: {0}]   ;;  %s1687_s4 = inlined_call_operand.vmem [shape: f32[16,128], index: 4, kind: output, shape index: {1}]  }
   0x1   :  { %s1472_s17 = smov 0  }
   0x2 LB: > { %s27_s18 = sadd.s32 1, %s1434_s16  ;;  %p1142_p0 = scmp.ge.s32.totalorder %s1438_s17, 1  ;;  %s1438_s17 = sphi %s1472_s17, %s15_s17   ;;  %s1434_s16 = sphi %s1470_s16, %s1689_s16   ;;  %s1430_s15 = sphi %s1468_s15, %s1688_s15  }
   0x3   : > { %p29_p1 = scmp.ge.s32.totalorder %s27_s18, 2  ;;  %p192_p2 = scmp.lt.s32.totalorder %s1438_s17, 3 }
   0x5   : > { %s1691_s18 = smov (%p29_p1, %s27_s18), 0  ;;  %p193_p3 = pnand %p1142_p0, %p192_p2 }
   0x6   : > { %p232_p4 = scmp.lt.s32.totalorder (!%p193_p3), %s1430_s15, 1 }
   0x7   : > { %196 = sbr.rel (%p193_p3) target bundleno = 314 (0x13a), region = 32 }
   0xc   : > { %v1396_v0 = vld [vmem:[%s1684_s1 + $0x8] sm:$0xff]   ;;  %v1440_v1 = vmov 0.0   ;;  %v1397_v2 = vld [vmem:[%s1684_s1 + $0x18] sm:$0xff]   ;;  %v1398_v3 = vld [vmem:[%s1684_s1] sm:$0xff]   ;;  %vm1441_vm0 = vmmov 0   ;;  %s1693_s15 = smov (!%p232_p4, %s1430_s15), 1 }
   0xd   : > { %1293 = vmatprep.subr.bf16.mxu1 %v1440_v1  ;;  %1269 = vmatprep.subr.bf16.mxu0 %v1440_v1  ;;  %v1399_v4 = vld [vmem:[%s1684_s1 + $0x10] sm:$0xff]   ;;  %s1365_s27 = smul.u32 44, %s1693_s15  ;;  %vm356_vm1 = vcmask 261120   ;;  %v1403_v5 = vld [vmem:[%s1684_s1 + $0x38] sm:$0xff]   ;;  %v854_v6 = vld [vmem:[%s1685_s2] sm:$0xff]  ;;  %v1442_v8 = vmov 0  }
   0xe   : > { %1294 = vmatpush3.bf16.msra.mxu1 %v1396_v0  ;;  %1297 = vmatprep.mubr.msk.bf16.mxu1 %vm1441_vm0, %v1440_v1  ;;  %v855_v9 = vld [vmem:[%s1685_s2 + $0x8] sm:$0xff]  ;;  %v1407_v15 = vld [vmem:[%s1684_s1 + $0x30] sm:$0xff]   ;;  %vm304_vm2 = vsmask.f32 7424  ;;  %v1406_v26 = vld [vmem:[%s1684_s1 + $0x20] sm:$0xff]   ;;  %vm736_vm3 = vcmask 1046528  }
   0xf   : > { %1270 = vmatpush3.bf16.msra.mxu0 %v1397_v2  ;;  %1295 = vmatprep.subr.bf16.mxu1 %v1440_v1  ;;  %s1513_s30 = scalar_lea.vmem %s1683_s0, %s1365_s27  ;;  %v1402_v19 = vld [vmem:[%s1684_s1 + $0x28] sm:$0xff]   ;;  %v856_v27 = vld [vmem:[%s1685_s2 + $0x10] sm:$0xff]  ;;  %v858_v28 = vld [vmem:[%s1685_s2 + $0x20] sm:$0xff]  ;;  %s1145_s13 = sshll.u32 %s1693_s15, 3 }
  0x10   : > { %1271 = vmatprep.subr.bf16.mxu0 %v1440_v1  ;;  %1273 = vmatprep.mubr.msk.bf16.mxu0 %vm1441_vm0, %v1440_v1  ;;  %v1400_v7 = vld [vmem:[%s1513_s30] sm:$0xff]   ;;  %v1401_v10 = vld [vmem:[%s1513_s30 + $0x8] sm:$0xff]   ;;  %v1404_v14 = vld [vmem:[%s1513_s30 + $0x10] sm:$0xff]   ;;  %s257_s20 = scalar_lea.vmem %s1687_s4, %s1145_s13 }
  0x11   : > { %1394 = vset.pattern.permute.xlu0 %v1442_v8  ;;  %1395 = vset.pattern.permute.xlu1 %v1442_v8  ;;  %v306_v11 = vshrl.u32 %v1400_v7, 16  ;;  %v308_v12 = vshll.u32 %v1400_v7, 16  ;;  %v313_v13 = vshll.u32 %v1401_v10, 16  ;;  %v317_v20 = vshrl.u32 %v1401_v10, 16  ;;  %v1405_v25 = vld [vmem:[%s1513_s30 + $0x18] sm:$0xff]   ;;  %v860_v35 = vld [vmem:[%s1685_s2 + $0x30] sm:$0xff] }
  0x12   : > { %1296 = vmatpush3.bf16.msra.mxu1 %v1398_v3  ;;  %865 = vperm.xlu0 %1394, %v854_v6   ;;  %v321_v21 = vshll.u32 %v1404_v14, 16  ;;  %v857_v29 = vld [vmem:[%s1685_s2 + $0x18] sm:$0xff]  ;;  %v325_v31 = vshrl.u32 %v1404_v14, 16  ;;  %v329_v32 = vshll.u32 %v1405_v25, 16  ;;  %v268_v33 = vld [vmem:[%s1513_s30 + $0x20] sm:$0xf] }
  0x13   : > { %1272 = vmatpush3.bf16.msra.mxu0 %v1399_v4  ;;  %1341 = vmatprep.subr.bf16.mxu1 %v1440_v1  ;;  %v310_v16 = vrot.slane %v308_v12, 1  ;;  %v315_v17 = vrot.slane %v313_v13, 1  ;;  %v273_v34 = vld [vmem:[%s1513_s30 + $0x24] sm:$0x1]  ;;  %v859_v36 = vld [vmem:[%s1685_s2 + $0x28] sm:$0xff]  ;;  %v861_v41 = vld [vmem:[%s1685_s2 + $0x38] sm:$0xff]  ;;  %v1162_v51 = vcombine.low %v268_v33, %v268_v33 }
  0x14   : > { %1317 = vmatprep.subr.bf16.mxu0 %v1440_v1  ;;  %v323_v24 = vrot.slane %v321_v21, 1  ;;  %875 = vperm.xlu1 %1395, %v856_v27   ;;  %v331_v38 = vrot.slane %v329_v32, 1  ;;  %v1154_v39 = vcombine.low %v268_v33, %v273_v34  ;;  %v862_v40 = vld [vmem:[%s1685_s2 + $0x40] sm:$0xff]  ;;  %v333_v43 = vshrl.u32 %v1405_v25, 16  ;;  %v541_v48 = vld [vmem:[%s1513_s30 + $0x8] sm:$0xf] }
  0x15   : > { %1298 = vmatmul.mubr.msk.bf16.vlgmr.msra.gmra.mxu1 %vm356_vm1, %v1400_v7  ;;  %v311_v18 = vor.u32 %v310_v16, %v306_v11  ;;  %v319_v23 = vor.u32 %v317_v20, %v315_v17  ;;  %v540_v47 = vld [vmem:[%s1513_s30 + $0x4] sm:$0xf]  ;;  %v1411_v53 = vld [vmem:[%s1513_s30 + $0xc] sm:$0xff]   ;;  %v1413_v0 = vld [vmem:[%s1513_s30 + $0x14] sm:$0xff]  }
  0x16   : > { %1342 = vmatpush3.bf16.msra.mxu1 %v1403_v5  ;;  %1301 = vmatprep.mubr.msk.bf16.mxu1 %vm1441_vm0, %v1440_v1  ;;  %v327_v37 = vor.u32 %v325_v31, %v323_v24  ;;  %v337_v44 = vshll.u32 %v1154_v39, 16  ;;  %v335_v45 = vor.u32 %v333_v43, %v331_v38  ;;  %v727_v49 = vld [vmem:[%s1513_s30 + $0x4] sm:$0xe]  ;;  %v1174_v52 = vcombine.low %v540_v47, %v541_v48 }
  0x17   : > { %1343 = vmatprep.subr.bf16.mxu1 %v1440_v1  ;;  %870 = vperm.xlu0 %1394, %v855_v9   ;;  %v316_v22 = vsel %vm304_vm2, %v311_v18, %v315_v17  ;;  %v324_v30 = vsel %vm304_vm2, %v319_v23, %v323_v24  ;;  %v1190_v54 = vcombine.low %v727_v49, %v541_v48  ;;  %v341_v55 = vshrl.u32 %v1154_v39, 16  ;;  %v1414_v9 = vld [vmem:[%s1513_s30 + $0x1c] sm:$0xff]   ;;  %v1415_v17 = vld [vmem:[%s1513_s30 + $0x24] sm:$0x1f]   ;;  %s1366_s30 = smul.u32 36, %s1693_s15 }
  0x18   : > { %1274 = vmatmul.mubr.msk.bf16.vlgmr.msra.gmra.mxu0 %vm356_vm1, %v316_v22  ;;  %880 = vperm.xlu1 %1395, %v857_v29   ;;  %v332_v42 = vsel %vm304_vm2, %v327_v37, %v331_v38  ;;  %v339_v46 = vrot.slane %v337_v44, 1  ;;  %v583_v56 = vshll.u32 %v1174_v52, 16  ;;  %v738_v58 = vrot.slane %v1411_v53, 1 }
  0x19   : > { %1318 = vmatpush3.bf16.msra.mxu0 %v1402_v19  ;;  %1277 = vmatprep.mubr.msk.bf16.mxu0 %vm1441_vm0, %v1440_v1  ;;  %v737_v57 = vrot.slane %v1190_v54, 1  ;;  %v581_v60 = vshrl.u32 %v1174_v52, 16  ;;  %v588_v62 = vshll.u32 %v1411_v53, 16  ;;  %v740_v4 = vrot.slane %v1413_v0, 1  ;;  %s1656_s12 = scalar_lea.vmem %s1686_s3, %s1366_s30 }
  0x1a   : > { %1344 = vmatpush3.bf16.msra.mxu1 %v1407_v15  ;;  %1319 = vmatprep.subr.bf16.mxu0 %v1440_v1  ;;  %v340_v50 = vsel %vm304_vm2, %v335_v45, %v339_v46  ;;  %v343_v59 = vor.u32 %v341_v55, %v339_v46  ;;  %v585_v61 = vrot.slane %v583_v56, 1  ;;  %v592_v6 = vshrl.u32 %v1411_v53, 16 }
  0x1b   : > { %885 = vperm.xlu0 %1394, %v858_v28   ;;  %v739_v63 = vsel %vm736_vm3, %v737_v57, %v738_v58  ;;  %v590_v3 = vrot.slane %v588_v62, 1  ;;  %v596_v7 = vshll.u32 %v1413_v0, 16  ;;  %v741_v8 = vsel %vm736_vm3, %v738_v58, %v740_v4 }
  0x1c   : > { %890 = vperm.xlu1 %1395, %v859_v36   ;;  %v586_v2 = vor.u32 %v585_v61, %v581_v60  ;;  %v742_v12 = vrot.slane %v1414_v9, 1  ;;  %v604_v15 = vshll.u32 %v1414_v9, 16  ;;  %v744_v20 = vrot.slane %v1415_v17, 1 }
  0x1d   : > { %1302 = vmatmul.mubr.msk.bf16.gmra.mxu1 %vm356_vm1, %v1401_v10  ;;  %1320 = vmatpush3.bf16.msra.mxu0 %v1406_v26  ;;  %v594_v10 = vor.u32 %v592_v6, %v590_v3  ;;  %v598_v11 = vrot.slane %v596_v7, 1  ;;  %v608_v22 = vshrl.u32 %v1414_v9, 16  ;;  %v612_v23 = vshll.u32 %v1415_v17, 16 }
  0x1e   : > { %1305 = vmatprep.mubr.msk.bf16.mxu1 %vm1441_vm0, %v1440_v1  ;;  %v591_v5 = vsel %vm304_vm2, %v586_v2, %v590_v3  ;;  %v743_v16 = vsel %vm736_vm3, %v740_v4, %v742_v12  ;;  %v606_v19 = vrot.slane %v604_v15, 1  ;;  %v745_v24 = vsel %vm736_vm3, %v742_v12, %v744_v20 }
  0x1f   : > { %895 = vperm.xlu0 %1394, %v860_v35   ;;  %v599_v13 = vsel %vm304_vm2, %v594_v10, %v598_v11  ;;  %v614_v26 = vrot.slane %v612_v23, 1  ;;  %v616_v28 = vshrl.u32 %v1415_v17, 16 }
  0x20   : > { %1278 = vmatmul.mubr.msk.bf16.gmra.mxu0 %vm356_vm1, %v324_v30  ;;  %900 = vperm.xlu1 %1395, %v861_v41  }
  0x21   : > { %1281 = vmatprep.mubr.msk.bf16.mxu0 %vm1441_vm0, %v1440_v1  ;;  %v618_v29 = vor.u32 %v616_v28, %v614_v26 }
  0x23   : > { %905 = vperm.xlu0 %1394, %v862_v40  }
  0x25   : > { %1306 = vmatmul.mubr.msk.bf16.gmra.mxu1 %vm356_vm1, %v1404_v14  ;;  %v600_v14 = vshrl.u32 %v1413_v0, 16 }
  0x26   : > { %1309 = vmatprep.mubr.msk.bf16.mxu1 %vm1441_vm0, %v1440_v1 }
  0x27   : > { %v602_v18 = vor.u32 %v600_v14, %v598_v11 }
  0x28   : > { %1282 = vmatmul.mubr.msk.bf16.gmra.mxu0 %vm356_vm1, %v332_v42 }
  0x29   : > { %1285 = vmatprep.mubr.msk.bf16.mxu0 %vm1441_vm0, %v1440_v1  ;;  %v607_v21 = vsel %vm304_vm2, %v602_v18, %v606_v19 }
  0x2d   : > { %1310 = vmatmul.mubr.msk.bf16.gmra.mxu1 %vm356_vm1, %v1405_v25  ;;  %v610_v25 = vor.u32 %v608_v22, %v606_v19 }
  0x2e   : > { %1313 = vmatprep.mubr.msk.bf16.mxu1 %vm1441_vm0, %v1440_v1 }
  0x2f   : > { %v615_v27 = vsel %vm304_vm2, %v610_v25, %v614_v26 }
  0x30   : > { %1286 = vmatmul.mubr.msk.bf16.gmra.mxu0 %vm356_vm1, %v340_v50 }
  0x31   : > { %1289 = vmatprep.mubr.msk.bf16.mxu0 %vm1441_vm0, %v1440_v1 }
  0x35   : > { %1314 = vmatmul.mubr.msk.bf16.gmra.mxu1 %vm356_vm1, %v1162_v51 }
  0x36   : > { %1345 = vmatprep.mubr.msk.bf16.mxu1 %vm1441_vm0, %v1440_v1 }
  0x38   : > { %1290 = vmatmul.mubr.msk.bf16.gmra.mxu0 %vm356_vm1, %v343_v59 }
  0x39   : > { %1321 = vmatprep.mubr.msk.bf16.mxu0 %vm1441_vm0, %v1440_v1 }
  0x3d   : > { %1346 = vmatmul.mubr.msk.bf16.vlgmr.msra.gmra.mxu1 %vm356_vm1, %v739_v63 }
  0x3e   : > { %1349 = vmatprep.mubr.msk.bf16.mxu1 %vm1441_vm0, %v1440_v1 }
  0x40   : > { %1322 = vmatmul.mubr.msk.bf16.vlgmr.msra.gmra.mxu0 %vm356_vm1, %v591_v5 }
  0x41   : > { %1325 = vmatprep.mubr.msk.bf16.mxu0 %vm1441_vm0, %v1440_v1 }
  0x45   : > { %1350 = vmatmul.mubr.msk.bf16.gmra.mxu1 %vm356_vm1, %v741_v8 }
  0x46   : > { %1353 = vmatprep.mubr.msk.bf16.mxu1 %vm1441_vm0, %v1440_v1 }
  0x48   : > { %1326 = vmatmul.mubr.msk.bf16.gmra.mxu0 %vm356_vm1, %v599_v13 }
  0x49   : > { %1329 = vmatprep.mubr.msk.bf16.mxu0 %vm1441_vm0, %v1440_v1 }
  0x4d   : > { %1354 = vmatmul.mubr.msk.bf16.gmra.mxu1 %vm356_vm1, %v743_v16 }
  0x4e   : > { %1357 = vmatprep.mubr.msk.bf16.mxu1 %vm1441_vm0, %v1440_v1 }
  0x50   : > { %1330 = vmatmul.mubr.msk.bf16.gmra.mxu0 %vm356_vm1, %v607_v21 }
  0x51   : > { %1333 = vmatprep.mubr.msk.bf16.mxu0 %vm1441_vm0, %v1440_v1 }
  0x55   : > { %1358 = vmatmul.mubr.msk.bf16.gmra.mxu1 %vm356_vm1, %v745_v24 }
  0x56   : > { %1361 = vmatprep.mubr.msk.bf16.mxu1 %vm1441_vm0, %v1440_v1 }
  0x58   : > { %1334 = vmatmul.mubr.msk.bf16.gmra.mxu0 %vm356_vm1, %v615_v27 }
  0x59   : > { %1337 = vmatprep.mubr.msk.bf16.mxu0 %vm1441_vm0, %v1440_v1 }
  0x5d   : > { %1362 = vmatmul.mubr.msk.bf16.gmra.mxu1 %vm356_vm1, %v744_v20 }
  0x60   : > { %1338 = vmatmul.mubr.msk.bf16.gmra.mxu0 %vm356_vm1, %v618_v29 }
  0x8d   : > { %v866_v28 = vpop.permute.xlu0 %865 }
  0xd5   : > { %v502_v30 = vpop.f32.mrf.mxu1 }
  0xd7   : > { %v1299_v31 = vpop.f32.mrf.mxu1 }
  0xd8   : > { %v406_v34 = vpop.f32.mrf.mxu0 }
  0xd9   : > { %v505_v32 = vpop.f32.mrf.mxu1  ;;  %v503_v11 = vadd.f32 %v502_v30, %v406_v34 }
  0xda   : > { %v1275_v36 = vpop.f32.mrf.mxu0 }
  0xdb   : > { %v1300_v33 = vpop.f32.mrf.mxu1 }
  0xdc   : > { %v409_v38 = vpop.f32.mrf.mxu0 }
  0xdd   : > { %v510_v35 = vpop.f32.mrf.mxu1  ;;  %v506_v14 = vadd.f32 %v505_v32, %v409_v38 }
  0xde   : > { %v1276_v40 = vpop.f32.mrf.mxu0 }
  0xdf   : > { %v1303_v37 = vpop.f32.mrf.mxu1 }
  0xe0   : > { %v414_v42 = vpop.f32.mrf.mxu0  ;;  %v876_v37 = vpop.permute.xlu1 %875 }
  0xe1   : > { %v513_v39 = vpop.f32.mrf.mxu1  ;;  %v511_v25 = vadd.f32 %v510_v35, %v414_v42 }
  0xe2   : > { %v1279_v44 = vpop.f32.mrf.mxu0 }
  0xe3   : > { %v1304_v41 = vpop.f32.mrf.mxu1 }
  0xe4   : > { %v417_v1 = vpop.f32.mrf.mxu0 }
  0xe5   : > { %v518_v43 = vpop.f32.mrf.mxu1  ;;  %v514_v30 = vadd.f32 %v513_v39, %v417_v1 }
  0xe6   : > { %v1280_v47 = vpop.f32.mrf.mxu0 }
  0xe7   : > { %v1307_v45 = vpop.f32.mrf.mxu1  ;;  %v871_v47 = vpop.permute.xlu0 %870 }
  0xe8   : > { %v422_v49 = vpop.f32.mrf.mxu0 }
  0xe9   : > { %v1638_v46 = vpop.f32.mrf.mxu1  ;;  %v519_v40 = vadd.f32 %v518_v43, %v422_v49 }
  0xea   : > { %v1283_v51 = vpop.f32.mrf.mxu0 }
  0xeb   : > { %v1308_v48 = vpop.f32.mrf.mxu1 }
  0xec   : > { %v425_v53 = vpop.f32.mrf.mxu0 }
  0xed   : > { %v1640_v50 = vpop.f32.mrf.mxu1  ;;  %v522_v1 = vadd.f32 %v1638_v46, %v425_v53 }
  0xee   : > { %v1284_v55 = vpop.f32.mrf.mxu0 }
  0xef   : > { %v1311_v52 = vpop.f32.mrf.mxu1 }
  0xf0   : > { %v1644_v57 = vpop.f32.mrf.mxu0 }
  0xf1   : > { %v1642_v54 = vpop.f32.mrf.mxu1 }
  0xf2   : > { %v1287_v59 = vpop.f32.mrf.mxu0 }
  0xf3   : > { %v1312_v56 = vpop.f32.mrf.mxu1 }
  0xf4   : > { %v1648_v61 = vpop.f32.mrf.mxu0 }
  0xf5   : > { %v1646_v58 = vpop.f32.mrf.mxu1 }
  0xf6   : > { %v1288_v63 = vpop.f32.mrf.mxu0 }
  0xf7   : > { %v1315_v60 = vpop.f32.mrf.mxu1 }
  0xf8   : > { %v1650_v2 = vpop.f32.mrf.mxu0  ;;  %v881_v60 = vpop.permute.xlu1 %880 }
  0xf9   : > { %v537_v62 = vpop.f32.mrf.mxu1 }
  0xfa   : > { %v1291_v4 = vpop.f32.mrf.mxu0 }
  0xfb   : > { %v1316_v0 = vpop.f32.mrf.mxu1 }
  0xfc   : > { %v441_v6 = vpop.f32.mrf.mxu0 }
  0xfd   : > { %v807_v3 = vpop.f32.mrf.mxu1  ;;  %v527_v6 = vadd.f32 %v1640_v50, %v1644_v57 }
  0xfe   : > { %v1292_v8 = vpop.f32.mrf.mxu0 }
  0xff   : > { %v1347_v5 = vpop.f32.mrf.mxu1 }
 0x100   : > { %v680_v10 = vpop.f32.mrf.mxu0 }
 0x101   : > { %v810_v7 = vpop.f32.mrf.mxu1  ;;  %v718_v15 = vadd.f32 %v680_v10, %v503_v11 }
 0x102   : > { %v1323_v13 = vpop.f32.mrf.mxu0 }
 0x103   : > { %v1348_v9 = vpop.f32.mrf.mxu1  ;;  %v845_v21 = vadd.f32 %v807_v3, %v718_v15  ;;  %v886_v3 = vpop.permute.xlu0 %885 }
 0x104   : > { %v683_v17 = vpop.f32.mrf.mxu0 }
 0x105   : > { %v815_v12 = vpop.f32.mrf.mxu1  ;;  %v719_v18 = vadd.f32 %v683_v17, %v506_v14  ;;  %v908_v56 = vmul.f32 %v866_v28, %v845_v21 }
 0x106   : > { %v1324_v20 = vpop.f32.mrf.mxu0 }
 0x107   : > { %v1351_v16 = vpop.f32.mrf.mxu1  ;;  %v846_v22 = vadd.f32 %v810_v7, %v719_v18  ;;  %v931_v46 = vmul.f32 %v908_v56, %v908_v56  ;;  %v891_v18 = vpop.permute.xlu1 %890  ;;  %v530_v20 = vadd.f32 %v1642_v54, %v1648_v61 }
 0x108   : > { %v688_v24 = vpop.f32.mrf.mxu0 }
 0x109   : > { %v818_v19 = vpop.f32.mrf.mxu1  ;;  %v1221_v26 = vpack.c.bf16 %v846_v22, %v845_v21  ;;  %v720_v31 = vadd.f32 %v688_v24, %v511_v25  ;;  %v909_v52 = vmul.f32 %v871_v47, %v846_v22  ;;  %v896_v24 = vpop.permute.xlu0 %895 }
 0x10a   : > { %v1327_v29 = vpop.f32.mrf.mxu0 }
 0x10b   : > { %v1352_v23 = vpop.f32.mrf.mxu1  ;;  %1222 = vst [vmem:[%s1656_s12] sm:$0xff] %v1221_v26   ;;  %v847_v41 = vadd.f32 %v815_v12, %v720_v31  ;;  %v932_v0 = vmul.f32 %v909_v52, %v909_v52  ;;  %v917_v53 = vadd.f32 %v909_v52, %v908_v56 }
 0x10c   : > { %v691_v33 = vpop.f32.mrf.mxu0 }
 0x10d   : > { %v823_v27 = vpop.f32.mrf.mxu1  ;;  %v721_v34 = vadd.f32 %v691_v33, %v514_v30  ;;  %v910_v59 = vmul.f32 %v876_v37, %v847_v41  ;;  %v940_v15 = vadd.f32 %v932_v0, %v931_v46  ;;  %v535_v33 = vadd.f32 %v1646_v58, %v1650_v2  ;;  %v906_v58 = vpop.permute.xlu0 %905 }
 0x10e   : > { %v1328_v38 = vpop.f32.mrf.mxu0 }
 0x10f   : > { %v1355_v32 = vpop.f32.mrf.mxu1  ;;  %v848_v44 = vadd.f32 %v818_v19, %v721_v34  ;;  %v933_v9 = vmul.f32 %v910_v59, %v910_v59  ;;  %v918_v16 = vadd.f32 %v917_v53, %v910_v59  ;;  %v901_v38 = vpop.permute.xlu1 %900 }
 0x110   : > { %v696_v35 = vpop.f32.mrf.mxu0 }
 0x111   : > { %v826_v36 = vpop.f32.mrf.mxu1  ;;  %v1226_v42 = vpack.c.bf16 %v848_v44, %v847_v41  ;;  %v722_v48 = vadd.f32 %v696_v35, %v519_v40  ;;  %v911_v4 = vmul.f32 %v881_v60, %v848_v44  ;;  %v941_v22 = vadd.f32 %v940_v15, %v933_v9 }
 0x112   : > { %v1331_v39 = vpop.f32.mrf.mxu0 }
 0x113   : > { %v1356_v45 = vpop.f32.mrf.mxu1  ;;  %1238 = vst [vmem:[%s1656_s12 + $0x8] sm:$0xff] %v1226_v42   ;;  %v849_v62 = vadd.f32 %v823_v27, %v722_v48  ;;  %v934_v17 = vmul.f32 %v911_v4, %v911_v4  ;;  %v919_v23 = vadd.f32 %v918_v16, %v911_v4  ;;  %v954_v4 = vlaneseq }
 0x114   : > { %v699_v63 = vpop.f32.mrf.mxu0 }
 0x115   : > { %v831_v51 = vpop.f32.mrf.mxu1  ;;  %v723_v43 = vadd.f32 %v699_v63, %v522_v1  ;;  %v912_v10 = vmul.f32 %v886_v3, %v849_v62  ;;  %v942_v30 = vadd.f32 %v941_v22, %v934_v17  ;;  %v955_v46 = vshrl.u32 %v954_v4, 7 }
 0x116   : > { %v1332_v5 = vpop.f32.mrf.mxu0 }
 0x117   : > { %v1359_v55 = vpop.f32.mrf.mxu1  ;;  %v850_v7 = vadd.f32 %v826_v36, %v723_v43  ;;  %v935_v25 = vmul.f32 %v912_v10, %v912_v10  ;;  %v920_v31 = vadd.f32 %v919_v23, %v912_v10  ;;  %vm957_vm4 = vcmp.eq.s32.totalorder %v955_v46, 1 }
 0x118   : > { %v704_v11 = vpop.f32.mrf.mxu0  ;;  %vm956_vm5 = vcmp.eq.s32.totalorder %v955_v46, 0 }
 0x119   : > { %v834_v49 = vpop.f32.mrf.mxu1  ;;  %v1231_v12 = vpack.c.bf16 %v850_v7, %v849_v62  ;;  %v724_v13 = vadd.f32 %v704_v11, %v527_v6  ;;  %v913_v50 = vmul.f32 %v891_v18, %v850_v7  ;;  %v943_v36 = vadd.f32 %v942_v30, %v935_v25 }
 0x11a   : > { %v1335_v19 = vpop.f32.mrf.mxu0 }
 0x11b   : > { %v1360_v8 = vpop.f32.mrf.mxu1  ;;  %1239 = vst [vmem:[%s1656_s12 + $0x10] sm:$0xff] %v1231_v12   ;;  %v851_v57 = vadd.f32 %v831_v51, %v724_v13  ;;  %v936_v54 = vmul.f32 %v913_v50, %v913_v50  ;;  %v921_v37 = vadd.f32 %v920_v31, %v913_v50 }
 0x11c   : > { %v707_v26 = vpop.f32.mrf.mxu0 }
 0x11d   : > { %v839_v14 = vpop.f32.mrf.mxu1  ;;  %v914_v27 = vmul.f32 %v896_v24, %v851_v57  ;;  %v725_v28 = vadd.f32 %v707_v26, %v530_v20  ;;  %v944_v42 = vadd.f32 %v943_v36, %v936_v54 }
 0x11e   : > { %v1336_v32 = vpop.f32.mrf.mxu0 }
 0x11f   : > { %v1363_v21 = vpop.f32.mrf.mxu1  ;;  %v852_v61 = vadd.f32 %v834_v49, %v725_v28  ;;  %v937_v41 = vmul.f32 %v914_v27, %v914_v27  ;;  %v922_v48 = vadd.f32 %v921_v37, %v914_v27 }
 0x120   : > { %v712_v40 = vpop.f32.mrf.mxu0 }
 0x121   : > { %v842_v29 = vpop.f32.mrf.mxu1  ;;  %v915_v44 = vmul.f32 %v901_v38, %v852_v61  ;;  %v1236_v45 = vpack.c.bf16 %v852_v61, %v851_v57  ;;  %v726_v47 = vadd.f32 %v712_v40, %v535_v33  ;;  %v945_v39 = vadd.f32 %v944_v42, %v937_v41 }
 0x122   : > { %v1339_v35 = vpop.f32.mrf.mxu0 }
 0x123   : > { %v1364_v34 = vpop.f32.mrf.mxu1  ;;  %v938_v51 = vmul.f32 %v915_v44, %v915_v44  ;;  %1240 = vst [vmem:[%s1656_s12 + $0x18] sm:$0xff] %v1236_v45   ;;  %v853_v52 = vadd.f32 %v839_v14, %v726_v47  ;;  %v923_v1 = vadd.f32 %v922_v48, %v915_v44 }
 0x124   : > { %v715_v2 = vpop.f32.mrf.mxu0 }
 0x125   : > { %v916_v55 = vmul.f32 %v906_v58, %v853_v52  ;;  %v1217_v56 = vpack.c.bf16 %v853_v52, %v853_v52  ;;  %v946_v60 = vadd.f32 %v945_v39, %v938_v51 }
 0x126   : > { %v1340_v59 = vpop.f32.mrf.mxu0 }
 0x127   : > { %v924_v62 = vadd.f32 %v923_v1, %v916_v55  ;;  %v939_v63 = vmul.f32 %v916_v55, %v916_v55  ;;  %1006 = vst [vmem:[%s1656_s12 + $0x20] sm:$0xf] %v1217_v56 }
 0x129   : > { %v925_v43 = vrot.slane %v924_v62, 4  ;;  %v947_v49 = vadd.f32 %v946_v60, %v939_v63 }
 0x12b   : > { %v926_v0 = vadd.f32 %v925_v43, %v924_v62  ;;  %v948_v3 = vrot.slane %v947_v49, 4 }
 0x12d   : > { %v927_v5 = vrot.slane %v926_v0, 2  ;;  %v949_v6 = vadd.f32 %v948_v3, %v947_v49 }
 0x12f   : > { %v928_v7 = vadd.f32 %v927_v5, %v926_v0  ;;  %v950_v8 = vrot.slane %v949_v6, 2 }
 0x131   : > { %v951_v53 = vadd.f32 %v950_v8, %v949_v6  ;;  %v929_v9 = vrot.slane %v928_v7, 1 }
 0x133   : > { %v952_v10 = vrot.slane %v951_v53, 1  ;;  %v930_v12 = vadd.f32 %v929_v9, %v928_v7 }
 0x135   : > { %v953_v11 = vadd.f32 %v952_v10, %v951_v53 }
 0x137   : > { %v958_v13 = vsel %vm957_vm4, %v953_v11, 0.0 }
 0x138   : > { %v959_v14 = vsel %vm956_vm5, %v930_v12, %v958_v13 }
 0x139   : > { %960 = vst [vmem:[%s257_s20] sm:$0xff] %v959_v14 }
 0x13a PF: > { %s15_s17 = sadd.s32 1, %s1438_s17   ;;  %s1688_s15 = smov %s1434_s16 }
 0x13b   : > { %p12_p5 = scmp.ge.s32.totalorder %s15_s17, 4   ;;  %s1689_s16 = smov %s1691_s18 }
 0x13d   :  { %14 = sbr.rel (!%p12_p5) target bundleno = 2 (0x2), region = 80 }

// kernel: patch_image_discriminator_forward.6
= control target key start
LH: loop header
LB: loop body
LE: loop exit
PB: predicated region body
PF: predicated region fallthrough
CT: control target
= control target key end

     0   :  { %s1121_s15 = smov 0   ;;  %s1123_s16 = smov 0   ;;  %s1242_s0 = inlined_call_operand.vmem [shape: bf16[2,32,64], index: 0, kind: input, shape index: {}]   ;;  %s1243_s1 = inlined_call_operand.vmem [shape: bf16[4,64,128], index: 1, kind: input, shape index: {}]   ;;  %s1244_s2 = inlined_call_operand.vmem [shape: f32[24,1], index: 2, kind: input, shape index: {}]   ;;  %s1245_s3 = inlined_call_operand.vmem [shape: bf16[2,24,128], index: 3, kind: output, shape index: {0}]   ;;  %s1246_s4 = inlined_call_operand.vmem [shape: f32[16,128], index: 4, kind: output, shape index: {1}]  }
   0x1   :  { %s1125_s17 = smov 0  }
   0x2 LB: > { %s27_s18 = sadd.s32 1, %s1089_s16  ;;  %p876_p0 = scmp.ge.s32.totalorder %s1093_s17, 1  ;;  %s1093_s17 = sphi %s1125_s17, %s15_s17   ;;  %s1089_s16 = sphi %s1123_s16, %s1248_s16   ;;  %s1085_s15 = sphi %s1121_s15, %s1247_s15  }
   0x3   : > { %p29_p1 = scmp.ge.s32.totalorder %s27_s18, 2  ;;  %p192_p2 = scmp.lt.s32.totalorder %s1093_s17, 3 }
   0x5   : > { %s1250_s18 = smov (%p29_p1, %s27_s18), 0  ;;  %p193_p3 = pnand %p876_p0, %p192_p2 }
   0x6   : > { %p232_p4 = scmp.lt.s32.totalorder (!%p193_p3), %s1085_s15, 1 }
   0x7   : > { %196 = sbr.rel (%p193_p3) target bundleno = 271 (0x10f), region = 32 }
   0xc   : > { %v1049_v0 = vld [vmem:[%s1243_s1 + $0x38] sm:$0xff]   ;;  %v1051_v2 = vld [vmem:[%s1243_s1 + $0x30] sm:$0xff]   ;;  %s1252_s15 = smov (!%p232_p4, %s1085_s15), 1  ;;  %v1053_v4 = vld [vmem:[%s1243_s1 + $0x28] sm:$0xff]   ;;  %v1095_v6 = vmov 0   ;;  %vm331_vm0 = vcmask 523264  }
   0xd   : > { %v1050_v1 = vld [vmem:[%s1243_s1 + $0x18] sm:$0xff]   ;;  %973 = vmatprep.subr.bf16.mxu0 %v1049_v0  ;;  %v1052_v3 = vld [vmem:[%s1243_s1 + $0x10] sm:$0xff]   ;;  %s940_s29 = sshll.u32 %s1252_s15, 4  ;;  %v1054_v5 = vld [vmem:[%s1243_s1 + $0x8] sm:$0xff]   ;;  %1047 = vset.pattern.permute.xlu0 %v1095_v6  ;;  %vm291_vm1 = vsmask.f32 7424 }
   0xe   : > { %985 = vmatprep.subr.bf16.mxu1 %v1050_v1  ;;  %974 = vmatpush3.bf16.msra.mxu0 %v1049_v0  ;;  %s1163_s8 = scalar_lea.vmem %s1242_s0, %s940_s29  ;;  %v1055_v7 = vld [vmem:[%s1243_s1 + $0x20] sm:$0xff]   ;;  %v1061_v21 = vld [vmem:[%s1243_s1 + $0x58] sm:$0xff]   ;;  %v1063_v28 = vld [vmem:[%s1243_s1 + $0x50] sm:$0xff]   ;;  %vm593_vm2 = vcmask 1044480   ;;  %vm481_vm3 = vsmask.f32 5376 }
   0xf   : > { %986 = vmatpush3.bf16.msra.mxu1 %v1050_v1  ;;  %975 = vmatprep.subr.bf16.mxu0 %v1051_v2  ;;  %v260_v8 = vld [vmem:[%s1163_s8] sm:$0xf]  ;;  %v261_v9 = vld [vmem:[%s1163_s8 + $0x4] sm:$0xf]  ;;  %v262_v10 = vld [vmem:[%s1163_s8 + $0x8] sm:$0xf] }
  0x10   : > { %987 = vmatprep.subr.bf16.mxu1 %v1052_v3  ;;  %1048 = vset.pattern.permute.xlu1 %v1095_v6  ;;  %v1056_v11 = vld [vmem:[%s1243_s1] sm:$0xff]   ;;  %v271_v12 = vld [vmem:[%s1163_s8 + $0xc] sm:$0x1]  ;;  %v889_v13 = vcombine.low %v260_v8, %v261_v9  ;;  %v1062_v23 = vld [vmem:[%s1243_s1 + $0x78] sm:$0xff]   ;;  %v897_v26 = vcombine.low %v262_v10, %v262_v10  ;;  %s1021_s13 = smul.u32 12, %s1252_s15  ;;  %s880_s21 = sshll.u32 %s1252_s15, 3 }
  0x11   : > { %v465_v14 = vld [vmem:[%s1163_s8 + $0xc] sm:$0x7]  ;;  %v890_v15 = vcombine.low %v262_v10, %v271_v12  ;;  %v1064_v31 = vld [vmem:[%s1243_s1 + $0x70] sm:$0xff]   ;;  %v464_v33 = vld [vmem:[%s1163_s8] sm:$0xc]  ;;  %s257_s24 = scalar_lea.vmem %s1246_s4, %s880_s21 }
  0x12   : > { %976 = vmatpush3.bf16.msra.mxu0 %v1051_v2  ;;  %v293_v16 = vshrl.u32 %v889_v13, 16  ;;  %v295_v17 = vshll.u32 %v889_v13, 16  ;;  %993 = vmatprep.mubr.msk.bf16.mxu1 %vm331_vm0, %v889_v13  ;;  %v1177_v20 = vcombine.low %v262_v10, %v465_v14  ;;  %v912_v34 = vcombine.low %v464_v33, %v261_v9  ;;  %v580_v37 = vld [vmem:[%s1163_s8] sm:$0x8]  ;;  %v680_v39 = vld [vmem:[%s1244_s2 + $0x10] sm:$0xff]  ;;  %v1065_v42 = vld [vmem:[%s1243_s1 + $0x48] sm:$0xff]   ;;  %s251_s20 = scalar_lea.vmem %s1245_s3, %s1021_s13 }
  0x13   : > { %988 = vmatpush3.bf16.msra.mxu1 %v1052_v3  ;;  %977 = vmatprep.subr.bf16.mxu0 %v1053_v4  ;;  %v300_v18 = vshll.u32 %v890_v15, 16  ;;  %v304_v19 = vshrl.u32 %v890_v15, 16  ;;  %v678_v38 = vld [vmem:[%s1244_s2] sm:$0xff]  ;;  %v928_v40 = vcombine.low %v580_v37, %v261_v9  ;;  %v1066_v43 = vld [vmem:[%s1243_s1 + $0x68] sm:$0xff]  }
  0x14   : > { %989 = vmatprep.subr.bf16.mxu1 %v1054_v5  ;;  %v297_v22 = vrot.slane %v295_v17, 1  ;;  %v491_v29 = vshrl.u32 %v1177_v20, 16  ;;  %v494_v32 = vshll.u32 %v1177_v20, 16  ;;  %v595_v41 = vrot.slane %v1177_v20, 3  ;;  %683 = vperm.xlu0 %1047, %v678_v38   ;;  %v679_v50 = vld [vmem:[%s1244_s2 + $0x8] sm:$0xff]  ;;  %v1067_v52 = vld [vmem:[%s1243_s1 + $0x40] sm:$0xff]  }
  0x15   : > { %v302_v24 = vrot.slane %v300_v18, 1  ;;  %v483_v44 = vshrl.u32 %v912_v34, 16  ;;  %v486_v45 = vshll.u32 %v912_v34, 16  ;;  %v594_v46 = vrot.slane %v928_v40, 3  ;;  %693 = vperm.xlu1 %1048, %v680_v39   ;;  %v1068_v53 = vld [vmem:[%s1243_s1 + $0x60] sm:$0xff]  }
  0x16   : > { %978 = vmatpush3.bf16.msra.mxu0 %v1053_v4  ;;  %v298_v25 = vor.u32 %v297_v22, %v293_v16  ;;  %v493_v35 = vrot.slane %v491_v29, 2  ;;  %v496_v36 = vrot.slane %v494_v32, 3 }
  0x17   : > { %990 = vmatpush3.bf16.msra.mxu1 %v1054_v5  ;;  %979 = vmatprep.subr.bf16.mxu0 %v1055_v7  ;;  %v306_v27 = vor.u32 %v304_v19, %v302_v24  ;;  %v485_v47 = vrot.slane %v483_v44, 2  ;;  %v488_v48 = vrot.slane %v486_v45, 3  ;;  %v596_v51 = vsel %vm593_vm2, %v594_v46, %v595_v41 }
  0x18   : > { %991 = vmatprep.subr.bf16.mxu1 %v1056_v11  ;;  %v303_v30 = vsel %vm291_vm1, %v298_v25, %v302_v24  ;;  %v497_v49 = vor.u32 %v496_v36, %v493_v35  ;;  %688 = vperm.xlu0 %1047, %v679_v50   ;;  %v718_v35 = vlaneseq }
  0x19   : > { %981 = vmatprep.mubr.msk.bf16.mxu0 %vm331_vm0, %v303_v30  ;;  %v489_v54 = vor.u32 %v488_v48, %v485_v47 }
  0x1a   : > { %980 = vmatpush3.bf16.msra.mxu0 %v1055_v7  ;;  %v719_v40 = vshrl.u32 %v718_v35, 7 }
  0x1b   : > { %992 = vmatpush3.bf16.msra.mxu1 %v1056_v11  ;;  %997 = vmatprep.subr.bf16.mxu0 %v1061_v21  ;;  %v498_v55 = vsel %vm481_vm3, %v489_v54, %v497_v49 }
  0x1c   : > { %1009 = vmatprep.subr.bf16.mxu1 %v1062_v23  ;;  %vm721_vm4 = vcmp.eq.s32.totalorder %v719_v40, 1  ;;  %vm720_vm5 = vcmp.eq.s32.totalorder %v719_v40, 0 }
  0x1d   : > { %982 = vmatmul.mubr.msk.bf16.vlgmr.msra.gmra.mxu0 %vm331_vm0, %v306_v27 }
  0x1e   : > { %994 = vmatmul.mubr.msk.bf16.vlgmr.msra.gmra.mxu1 %vm331_vm0, %v897_v26  ;;  %998 = vmatpush3.bf16.msra.mxu0 %v1061_v21 }
  0x1f   : > { %1010 = vmatpush3.bf16.msra.mxu1 %v1062_v23  ;;  %999 = vmatprep.subr.bf16.mxu0 %v1063_v28 }
  0x20   : > { %1011 = vmatprep.subr.bf16.mxu1 %v1064_v31  ;;  %1017 = vmatprep.mubr.msk.bf16.mxu1 %vm331_vm0, %v596_v51 }
  0x21   : > { %1005 = vmatprep.mubr.msk.bf16.mxu0 %vm331_vm0, %v498_v55 }
  0x22   : > { %1000 = vmatpush3.bf16.msra.mxu0 %v1063_v28 }
  0x23   : > { %1012 = vmatpush3.bf16.msra.mxu1 %v1064_v31  ;;  %1001 = vmatprep.subr.bf16.mxu0 %v1065_v42 }
  0x24   : > { %1013 = vmatprep.subr.bf16.mxu1 %v1066_v43 }
  0x26   : > { %1002 = vmatpush3.bf16.msra.mxu0 %v1065_v42 }
  0x27   : > { %1014 = vmatpush3.bf16.msra.mxu1 %v1066_v43  ;;  %1003 = vmatprep.subr.bf16.mxu0 %v1067_v52 }
  0x28   : > { %1015 = vmatprep.subr.bf16.mxu1 %v1068_v53 }
  0x2a   : > { %1004 = vmatpush3.bf16.msra.mxu0 %v1067_v52 }
  0x2b   : > { %1016 = vmatpush3.bf16.msra.mxu1 %v1068_v53 }
  0x2d   : > { %1006 = vmatmul.mubr.msk.bf16.vlgmr.msra.gmra.mxu0 %vm331_vm0, %v497_v49 }
  0x2e   : > { %1018 = vmatmul.mubr.msk.bf16.vlgmr.msra.gmra.mxu1 %vm331_vm0, %v595_v41 }
  0x8f   : > { %v684_v8 = vpop.permute.xlu0 %683 }
  0x90   : > { %v694_v17 = vpop.permute.xlu1 %693 }
  0x93   : > { %v689_v21 = vpop.permute.xlu0 %688 }
  0xdd   : > { %v983_v56 = vpop.f32.mrf.mxu0 }
  0xde   : > { %v995_v57 = vpop.f32.mrf.mxu1 }
  0xdf   : > { %v372_v58 = vpop.f32.mrf.mxu0  ;;  %v459_v0 = vadd.f32 %v995_v57, %v983_v56 }
  0xe0   : > { %v450_v59 = vpop.f32.mrf.mxu1 }
  0xe1   : > { %v984_v60 = vpop.f32.mrf.mxu0  ;;  %v451_v3 = vadd.f32 %v450_v59, %v372_v58 }
  0xe2   : > { %v996_v61 = vpop.f32.mrf.mxu1 }
  0xe3   : > { %v375_v62 = vpop.f32.mrf.mxu0 }
  0xe4   : > { %v453_v63 = vpop.f32.mrf.mxu1 }
  0xe5   : > { %v454_v12 = vadd.f32 %v453_v63, %v375_v62 }
  0xed   : > { %v1007_v1 = vpop.f32.mrf.mxu0 }
  0xee   : > { %v1019_v2 = vpop.f32.mrf.mxu1  ;;  %v579_v4 = vadd.f32 %v1007_v1, %v459_v0 }
  0xef   : > { %v563_v5 = vpop.f32.mrf.mxu0 }
  0xf0   : > { %v661_v6 = vpop.f32.mrf.mxu1  ;;  %v677_v7 = vadd.f32 %v1019_v2, %v579_v4  ;;  %v577_v9 = vadd.f32 %v563_v5, %v451_v3 }
  0xf1   : > { %v1008_v10 = vpop.f32.mrf.mxu0 }
  0xf2   : > { %v1020_v11 = vpop.f32.mrf.mxu1  ;;  %v943_v13 = vpack.c.bf16 %v677_v7, %v677_v7  ;;  %v675_v14 = vadd.f32 %v661_v6, %v577_v9  ;;  %v698_v22 = vmul.f32 %v694_v17, %v677_v7 }
  0xf3   : > { %v566_v15 = vpop.f32.mrf.mxu0 }
  0xf4   : > { %740 = vst [vmem:[%s251_s20 + $0x8] sm:$0xf] %v943_v13  ;;  %v578_v16 = vadd.f32 %v566_v15, %v454_v12  ;;  %v664_v18 = vpop.f32.mrf.mxu1  ;;  %v696_v19 = vmul.f32 %v684_v8, %v675_v14  ;;  %v709_v28 = vmul.f32 %v698_v22, %v698_v22 }
  0xf6   : > { %v676_v20 = vadd.f32 %v664_v18, %v578_v16  ;;  %v707_v25 = vmul.f32 %v696_v19, %v696_v19 }
  0xf8   : > { %v697_v23 = vmul.f32 %v689_v21, %v676_v20  ;;  %v947_v24 = vpack.c.bf16 %v676_v20, %v675_v14 }
  0xfa   : > { %v699_v26 = vadd.f32 %v697_v23, %v696_v19  ;;  %v708_v27 = vmul.f32 %v697_v23, %v697_v23  ;;  %948 = vst [vmem:[%s251_s20] sm:$0xff] %v947_v24  }
  0xfc   : > { %v700_v29 = vadd.f32 %v699_v26, %v698_v22  ;;  %v710_v30 = vadd.f32 %v708_v27, %v707_v25 }
  0xfe   : > { %v701_v31 = vrot.slane %v700_v29, 4  ;;  %v711_v32 = vadd.f32 %v710_v30, %v709_v28 }
 0x100   : > { %v702_v33 = vadd.f32 %v701_v31, %v700_v29  ;;  %v712_v34 = vrot.slane %v711_v32, 4 }
 0x102   : > { %v703_v36 = vrot.slane %v702_v33, 2  ;;  %v713_v37 = vadd.f32 %v712_v34, %v711_v32 }
 0x104   : > { %v704_v38 = vadd.f32 %v703_v36, %v702_v33  ;;  %v714_v39 = vrot.slane %v713_v37, 2 }
 0x106   : > { %v715_v41 = vadd.f32 %v714_v39, %v713_v37  ;;  %v705_v42 = vrot.slane %v704_v38, 1 }
 0x108   : > { %v716_v43 = vrot.slane %v715_v41, 1  ;;  %v706_v45 = vadd.f32 %v705_v42, %v704_v38 }
 0x10a   : > { %v717_v44 = vadd.f32 %v716_v43, %v715_v41 }
 0x10c   : > { %v722_v46 = vsel %vm721_vm4, %v717_v44, 0.0 }
 0x10d   : > { %v723_v47 = vsel %vm720_vm5, %v706_v45, %v722_v46 }
 0x10e   : > { %724 = vst [vmem:[%s257_s24] sm:$0xff] %v723_v47 }
 0x10f PF: > { %s15_s17 = sadd.s32 1, %s1093_s17   ;;  %s1247_s15 = smov %s1089_s16 }
 0x110   : > { %p12_p5 = scmp.ge.s32.totalorder %s15_s17, 4   ;;  %s1248_s16 = smov %s1250_s18 }
 0x112   :  { %14 = sbr.rel (!%p12_p5) target bundleno = 2 (0x2), region = 80 }

// kernel: patch_image_discriminator_forward.7
= control target key start
LH: loop header
LB: loop body
LE: loop exit
PB: predicated region body
PF: predicated region fallthrough
CT: control target
= control target key end

     0   :  { %s1006_s9 = smov 0   ;;  %s1008_s10 = smov 0   ;;  %s1193_s0 = inlined_call_operand.vmem [shape: bf16[2,16,128], index: 0, kind: input, shape index: {}]   ;;  %s1194_s1 = inlined_call_operand.vmem [shape: bf16[4,128,128], index: 1, kind: input, shape index: {}]   ;;  %s1195_s2 = inlined_call_operand.vmem [shape: f32[2,8,128], index: 2, kind: output, shape index: {}]  }
   0x1   :  { %s1010_s11 = smov 0  }
   0x2 LB: > { %s24_s12 = sadd.s32 1, %s983_s10  ;;  %p698_p0 = scmp.ge.s32.totalorder %s987_s11, 1  ;;  %s987_s11 = sphi %s1010_s11, %s12_s11   ;;  %s983_s10 = sphi %s1008_s10, %s1197_s10   ;;  %s979_s9 = sphi %s1006_s9, %s1196_s9  }
   0x3   : > { %p26_p1 = scmp.ge.s32.totalorder %s24_s12, 2  ;;  %p126_p2 = scmp.lt.s32.totalorder %s987_s11, 3 }
   0x5   : > { %s1199_s12 = smov (%p26_p1, %s24_s12), 0  ;;  %p127_p3 = pnand %p698_p0, %p126_p2 }
   0x6   : > { %p150_p4 = scmp.lt.s32.totalorder (!%p127_p3), %s979_s9, 1 }
   0x7   : > { %130 = sbr.rel (%p127_p3) target bundleno = 277 (0x115), region = 28 }
   0xc   : > { %v930_v0 = vld [vmem:[%s1194_s1 + $0x78] sm:$0xff]   ;;  %v989_v1 = vmov 0.0   ;;  %v932_v3 = vld [vmem:[%s1194_s1 + $0x70] sm:$0xff]   ;;  %vm990_vm0 = vmmov 0   ;;  %v934_v5 = vld [vmem:[%s1194_s1 + $0x68] sm:$0xff]   ;;  %s1201_s9 = smov (!%p150_p4, %s979_s9), 1 }
   0xd   : > { %824 = vmatprep.subr.bf16.mxu0 %v989_v1  ;;  %844 = vmatprep.subr.bf16.mxu1 %v989_v1  ;;  %v931_v2 = vld [vmem:[%s1194_s1 + $0x38] sm:$0xff]   ;;  %v933_v4 = vld [vmem:[%s1194_s1 + $0x30] sm:$0xff]   ;;  %v935_v6 = vld [vmem:[%s1194_s1 + $0x28] sm:$0xff]   ;;  %s787_s29 = sshll.u32 %s1201_s9, 3 }
   0xe   : > { %825 = vmatpush3.bf16.msra.mxu0 %v930_v0  ;;  %840 = vmatprep.mubr.msk.bf16.mxu0 %vm990_vm0, %v989_v1  ;;  %v936_v7 = vld [vmem:[%s1194_s1 + $0x60] sm:$0xff]   ;;  %v938_v9 = vld [vmem:[%s1194_s1 + $0x58] sm:$0xff]   ;;  %s1075_s6 = scalar_lea.vmem %s1193_s0, %s787_s29  ;;  %v940_v12 = vld [vmem:[%s1194_s1 + $0x50] sm:$0xff]   ;;  %s161_s14 = scalar_lea.vmem %s1195_s2, %s787_s29 }
   0xf   : > { %845 = vmatpush3.bf16.msra.mxu1 %v931_v2  ;;  %826 = vmatprep.subr.bf16.mxu0 %v989_v1  ;;  %v937_v8 = vld [vmem:[%s1194_s1 + $0x20] sm:$0xff]   ;;  %v939_v10 = vld [vmem:[%s1194_s1 + $0x18] sm:$0xff]   ;;  %v941_v13 = vld [vmem:[%s1194_s1 + $0x10] sm:$0xff]  }
  0x10   : > { %846 = vmatprep.subr.bf16.mxu1 %v989_v1  ;;  %860 = vmatprep.mubr.msk.bf16.mxu1 %vm990_vm0, %v989_v1  ;;  %v946_v11 = vld [vmem:[%s1075_s6] sm:$0x1f]   ;;  %v942_v15 = vld [vmem:[%s1194_s1 + $0x48] sm:$0xff]   ;;  %v947_v23 = vld [vmem:[%s1194_s1 + $0xb8] sm:$0xff]  }
  0x11   : > { %v207_v14 = vshll.u32 %v946_v11, 16  ;;  %v943_v16 = vld [vmem:[%s1194_s1 + $0x8] sm:$0xff]   ;;  %v205_v17 = vshrl.u32 %v946_v11, 16  ;;  %v944_v19 = vld [vmem:[%s1194_s1 + $0x40] sm:$0xff]   ;;  %v948_v24 = vld [vmem:[%s1194_s1 + $0xf8] sm:$0xff]  }
  0x12   : > { %827 = vmatpush3.bf16.msra.mxu0 %v932_v3  ;;  %v945_v20 = vld [vmem:[%s1194_s1] sm:$0xff]   ;;  %v949_v25 = vld [vmem:[%s1194_s1 + $0xb0] sm:$0xff]   ;;  %v951_v27 = vld [vmem:[%s1194_s1 + $0xa8] sm:$0xff]  }
  0x13   : > { %847 = vmatpush3.bf16.msra.mxu1 %v933_v4  ;;  %828 = vmatprep.subr.bf16.mxu0 %v989_v1  ;;  %v209_v18 = vrot.slane %v207_v14, 1  ;;  %v163_v22 = vld [vmem:[%s1075_s6] sm:$0xf]  ;;  %v950_v26 = vld [vmem:[%s1194_s1 + $0xf0] sm:$0xff]   ;;  %v952_v28 = vld [vmem:[%s1194_s1 + $0xe8] sm:$0xff]  }
  0x14   : > { %848 = vmatprep.subr.bf16.mxu1 %v989_v1  ;;  %v953_v29 = vld [vmem:[%s1194_s1 + $0xa0] sm:$0xff]   ;;  %v955_v31 = vld [vmem:[%s1194_s1 + $0x98] sm:$0xff]   ;;  %v957_v36 = vld [vmem:[%s1194_s1 + $0x90] sm:$0xff]  }
  0x15   : > { %v210_v21 = vor.u32 %v209_v18, %v205_v17  ;;  %v954_v30 = vld [vmem:[%s1194_s1 + $0xe0] sm:$0xff]   ;;  %v956_v34 = vld [vmem:[%s1194_s1 + $0xd8] sm:$0xff]   ;;  %v958_v37 = vld [vmem:[%s1194_s1 + $0xd0] sm:$0xff]  }
  0x16   : > { %829 = vmatpush3.bf16.msra.mxu0 %v934_v5  ;;  %v388_v32 = vld [vmem:[%s1075_s6] sm:$0xe]  ;;  %v389_v33 = vld [vmem:[%s1075_s6 + $0x4] sm:$0x3]  ;;  %v959_v40 = vld [vmem:[%s1194_s1 + $0x88] sm:$0xff]  }
  0x17   : > { %849 = vmatpush3.bf16.msra.mxu1 %v935_v6  ;;  %830 = vmatprep.subr.bf16.mxu0 %v989_v1  ;;  %v751_v35 = vcombine.low %v388_v32, %v389_v33  ;;  %v960_v41 = vld [vmem:[%s1194_s1 + $0xc8] sm:$0xff]   ;;  %v510_v42 = vld [vmem:[%s1075_s6] sm:$0xc] }
  0x18   : > { %850 = vmatprep.subr.bf16.mxu1 %v989_v1  ;;  %v961_v45 = vld [vmem:[%s1194_s1 + $0x80] sm:$0xff]   ;;  %v776_v46 = vcombine.low %v510_v42, %v389_v33 }
  0x19   : > { %v413_v38 = vshrl.u32 %v751_v35, 16  ;;  %v416_v39 = vshll.u32 %v751_v35, 16  ;;  %v962_v47 = vld [vmem:[%s1194_s1 + $0xc0] sm:$0xff]  }
  0x1a   : > { %831 = vmatpush3.bf16.msra.mxu0 %v936_v7  ;;  %v531_v49 = vrot.slane %v776_v46, 2 }
  0x1b   : > { %851 = vmatpush3.bf16.msra.mxu1 %v937_v8  ;;  %832 = vmatprep.subr.bf16.mxu0 %v989_v1  ;;  %v415_v43 = vrot.slane %v413_v38, 1  ;;  %v418_v44 = vrot.slane %v416_v39, 2 }
  0x1c   : > { %852 = vmatprep.subr.bf16.mxu1 %v989_v1 }
  0x1d   : > { %v419_v48 = vor.u32 %v418_v44, %v415_v43 }
  0x1e   : > { %833 = vmatpush3.bf16.msra.mxu0 %v938_v9 }
  0x1f   : > { %853 = vmatpush3.bf16.msra.mxu1 %v939_v10  ;;  %834 = vmatprep.subr.bf16.mxu0 %v989_v1 }
  0x20   : > { %854 = vmatprep.subr.bf16.mxu1 %v989_v1 }
  0x22   : > { %835 = vmatpush3.bf16.msra.mxu0 %v940_v12 }
  0x23   : > { %855 = vmatpush3.bf16.msra.mxu1 %v941_v13  ;;  %836 = vmatprep.subr.bf16.mxu0 %v989_v1 }
  0x24   : > { %856 = vmatprep.subr.bf16.mxu1 %v989_v1 }
  0x26   : > { %837 = vmatpush3.bf16.msra.mxu0 %v942_v15 }
  0x27   : > { %857 = vmatpush3.bf16.msra.mxu1 %v943_v16  ;;  %838 = vmatprep.subr.bf16.mxu0 %v989_v1 }
  0x28   : > { %858 = vmatprep.subr.bf16.mxu1 %v989_v1 }
  0x2a   : > { %839 = vmatpush3.bf16.msra.mxu0 %v944_v19 }
  0x2b   : > { %859 = vmatpush3.bf16.msra.mxu1 %v945_v20  ;;  %864 = vmatprep.subr.bf16.mxu0 %v989_v1 }
  0x2c   : > { %884 = vmatprep.subr.bf16.mxu1 %v989_v1 }
  0x2d   : > { %841 = vmatmul.mubr.bf16.vlgmr.msra.gmra.mxu0 %v210_v21 }
  0x2e   : > { %861 = vmatmul.mubr.bf16.vlgmr.msra.gmra.mxu1 %v163_v22  ;;  %865 = vmatpush3.bf16.msra.mxu0 %v947_v23 }
  0x2f   : > { %885 = vmatpush3.bf16.msra.mxu1 %v948_v24  ;;  %866 = vmatprep.subr.bf16.mxu0 %v989_v1 }
  0x30   : > { %886 = vmatprep.subr.bf16.mxu1 %v989_v1  ;;  %880 = vmatprep.mubr.msk.bf16.mxu0 %vm990_vm0, %v989_v1 }
  0x31   : > { %900 = vmatprep.mubr.msk.bf16.mxu1 %vm990_vm0, %v989_v1 }
  0x32   : > { %867 = vmatpush3.bf16.msra.mxu0 %v949_v25 }
  0x33   : > { %887 = vmatpush3.bf16.msra.mxu1 %v950_v26  ;;  %868 = vmatprep.subr.bf16.mxu0 %v989_v1 }
  0x34   : > { %888 = vmatprep.subr.bf16.mxu1 %v989_v1 }
  0x36   : > { %869 = vmatpush3.bf16.msra.mxu0 %v951_v27 }
  0x37   : > { %889 = vmatpush3.bf16.msra.mxu1 %v952_v28  ;;  %870 = vmatprep.subr.bf16.mxu0 %v989_v1 }
  0x38   : > { %890 = vmatprep.subr.bf16.mxu1 %v989_v1 }
  0x3a   : > { %871 = vmatpush3.bf16.msra.mxu0 %v953_v29 }
  0x3b   : > { %891 = vmatpush3.bf16.msra.mxu1 %v954_v30  ;;  %872 = vmatprep.subr.bf16.mxu0 %v989_v1 }
  0x3c   : > { %892 = vmatprep.subr.bf16.mxu1 %v989_v1 }
  0x3e   : > { %873 = vmatpush3.bf16.msra.mxu0 %v955_v31 }
  0x3f   : > { %893 = vmatpush3.bf16.msra.mxu1 %v956_v34  ;;  %874 = vmatprep.subr.bf16.mxu0 %v989_v1 }
  0x40   : > { %894 = vmatprep.subr.bf16.mxu1 %v989_v1 }
  0x42   : > { %875 = vmatpush3.bf16.msra.mxu0 %v957_v36 }
  0x43   : > { %895 = vmatpush3.bf16.msra.mxu1 %v958_v37  ;;  %876 = vmatprep.subr.bf16.mxu0 %v989_v1 }
  0x44   : > { %896 = vmatprep.subr.bf16.mxu1 %v989_v1 }
  0x46   : > { %877 = vmatpush3.bf16.msra.mxu0 %v959_v40 }
  0x47   : > { %897 = vmatpush3.bf16.msra.mxu1 %v960_v41  ;;  %878 = vmatprep.subr.bf16.mxu0 %v989_v1 }
  0x48   : > { %898 = vmatprep.subr.bf16.mxu1 %v989_v1 }
  0x4a   : > { %879 = vmatpush3.bf16.msra.mxu0 %v961_v45 }
  0x4b   : > { %899 = vmatpush3.bf16.msra.mxu1 %v962_v47 }
  0x4d   : > { %881 = vmatmul.mubr.bf16.vlgmr.msra.gmra.mxu0 %v419_v48 }
  0x4e   : > { %901 = vmatmul.mubr.bf16.vlgmr.msra.gmra.mxu1 %v531_v49 }
  0xed   : > { %v294_v50 = vpop.f32.mrf.mxu0 }
  0xee   : > { %v382_v51 = vpop.f32.mrf.mxu1 }
  0xef   : > { %v842_v52 = vpop.f32.mrf.mxu0  ;;  %v383_v58 = vadd.f32 %v382_v51, %v294_v50 }
  0xf0   : > { %v862_v53 = vpop.f32.mrf.mxu1 }
  0xf1   : > { %v297_v54 = vpop.f32.mrf.mxu0 }
  0xf2   : > { %v385_v55 = vpop.f32.mrf.mxu1 }
  0xf3   : > { %v843_v56 = vpop.f32.mrf.mxu0 }
  0xf4   : > { %v863_v57 = vpop.f32.mrf.mxu1 }
 0x10d   : > { %v503_v59 = vpop.f32.mrf.mxu0 }
 0x10e   : > { %v509_v60 = vadd.f32 %v503_v59, %v383_v58  ;;  %v615_v61 = vpop.f32.mrf.mxu1 }
 0x10f   : > { %v882_v62 = vpop.f32.mrf.mxu0 }
 0x110   : > { %v621_v63 = vadd.f32 %v615_v61, %v509_v60  ;;  %v902_v0 = vpop.f32.mrf.mxu1 }
 0x111   : > { %v506_v1 = vpop.f32.mrf.mxu0 }
 0x112   : > { %622 = vst [vmem:[%s161_s14] sm:$0xff] %v621_v63  ;;  %v618_v2 = vpop.f32.mrf.mxu1 }
 0x113   : > { %v883_v3 = vpop.f32.mrf.mxu0 }
 0x114   : > { %v903_v4 = vpop.f32.mrf.mxu1 }
 0x115 PF: > { %s12_s11 = sadd.s32 1, %s987_s11   ;;  %s1196_s9 = smov %s983_s10 }
 0x116   : > { %p9_p5 = scmp.ge.s32.totalorder %s12_s11, 4   ;;  %s1197_s10 = smov %s1199_s12 }
 0x118   :  { %11 = sbr.rel (!%p9_p5) target bundleno = 2 (0x2), region = 61 }

</bundles_post_ra>
